<compile_context>
chip_gen: v7x
topology: tpu7x:2x2x1
jax: 0.10.0
libtpu: 0.0.40
codegen_flags: <defaults>
</compile_context>

<pallas_src>
import functools

import jax
import jax.numpy as jnp
from jax import lax
from jax.experimental import pallas as pl
from jax.experimental.pallas import tpu as pltpu


# ----------------------------------------------------------------------------
# helpers
# ----------------------------------------------------------------------------
def _round_up(x, m):
    return ((x + m - 1) // m) * m


def _cdiv(a, b):
    return -(-a // b)


def _vmem_capacity_bytes():
    try:
        return int(pltpu.get_tpu_info().vmem_capacity_bytes)
    except Exception:
        return 64 * 1024 * 1024  # conservative default (v7x per-core VMEM)


def _plan_chunk(S, Bb, E_max, Hp, t_max):
    """Pick timesteps-per-grid-step T (balanced over chunks) and the VMEM limit."""
    Gp = 4 * Hp
    cap = _vmem_capacity_bytes()
    vmem_limit = (cap * 25) // 32  # ~100 MiB on 128 MiB parts, ~50 MiB on v7x (64 MiB)
    # Fixed VMEM: weights (counted double-buffered to stay conservative even with
    # Buffered(1)), bias, h/c scratch and the final h/c output blocks.
    fixed = (2 * (E_max * Gp * 2) + 2 * (Hp * Gp * 2) + 2 * (Gp * 4)
             + 2 * (Bb * Hp * (2 + 4)))
    # Per-timestep VMEM: x chunk (bf16, x2 buffers) + out chunk (bf16, x2 buffers)
    # + f32 gates scratch.
    per_t = 2 * (Bb * E_max * 2) + 2 * (Bb * Hp * 2) + Bb * Gp * 4
    budget = vmem_limit - fixed - (4 << 20)          # 4 MiB headroom
    t_fit = max(1, budget // per_t) if budget > 0 else 1
    t_cap = max(1, min(t_max, t_fit))
    n_chunks = _cdiv(S, t_cap)
    T = _cdiv(S, n_chunks)                           # balanced chunks -> minimal padding
    return T, n_chunks, int(vmem_limit)


def _permute_pad_gates(w, H, Hp):
    """Last dim (4H, PyTorch order [i,f,g,o]) -> (4Hp, order [i,f,o,g]), zero padded."""
    wi, wf, wg, wo = jnp.split(w, 4, axis=-1)
    blocks = [wi, wf, wo, wg]
    pad = Hp - H
    if pad:
        widths = [(0, 0)] * (w.ndim - 1) + [(0, pad)]
        blocks = [jnp.pad(b, widths) for b in blocks]
    return jnp.concatenate(blocks, axis=-1)


# ----------------------------------------------------------------------------
# Pallas kernel: fused input GEMM + recurrence for one chunk of T timesteps.
# grid = (n_batch_blocks ["parallel"], n_time_chunks ["arbitrary"]).
#   x_ref   : (T, Bb, E)   bf16   time-major input chunk
#   wih_ref : (E, 4Hp)     bf16   input weights (resident, gate order [i,f,o,g])
#   whh_ref : (Hp, 4Hp)    bf16   recurrent weights (resident)
#   bias_ref: (1, 4Hp)     f32    b_ih + b_hh
#   out_ref : (T, Bb, Hp)  bf16   per-step hidden outputs
#   gx_sc   : (T, Bb, 4Hp) f32    chunk input projection (VMEM only, never HBM)
#   h_sc/c_sc: (Bb, Hp)    bf16 / f32 carried state across chunks
# ----------------------------------------------------------------------------
def _lstm_chunk_kernel(x_ref, wih_ref, whh_ref, bias_ref,
                       out_ref, h_out_ref, c_out_ref,
                       gx_sc, h_sc, c_sc, *, seq_len, unroll):
    chunk = pl.program_id(1)
    T, Bb, E = x_ref.shape
    Hp = h_sc.shape[-1]

    @pl.when(chunk == 0)
    def _():
        h_sc[...] = jnp.zeros(h_sc.shape, h_sc.dtype)
        c_sc[...] = jnp.zeros(c_sc.shape, c_sc.dtype)

    # Fused input projection for the whole chunk: one MXU GEMM (T*Bb, E) @ (E, 4Hp),
    # bf16 operands, f32 accumulation; bias folded in here.
    x2 = x_ref[...].reshape(T * Bb, E)
    gx = jnp.dot(x2, wih_ref[...], preferred_element_type=jnp.float32)
    gx_sc[...] = gx.reshape(T, Bb, 4 * Hp) + bias_ref[...]

    whh = whh_ref[...]                                     # (Hp, 4Hp) bf16, resident

    def step(t, carry):
        h, c = carry                                       # h: bf16, c: f32
        gates = gx_sc[t] + jnp.dot(h, whh, preferred_element_type=jnp.float32)
        sig = jax.nn.sigmoid(gates[:, :3 * Hp])            # [i, f, o] in one EUP pass
        g_g = jnp.tanh(gates[:, 3 * Hp:])
        i_g = sig[:, :Hp]
        f_g = sig[:, Hp:2 * Hp]
        o_g = sig[:, 2 * Hp:3 * Hp]
        c_raw = f_g * c + i_g * g_g
        h_raw = o_g * jnp.tanh(c_raw)
        if seq_len is not None:
            # Tail-masking for padded timesteps: freeze the carry (scalar 0/1 blend
            # keeps the lowering a simple splat-multiply).
            keep = ((chunk * T + t) < seq_len).astype(jnp.float32)
            c_new = keep * c_raw + (1.0 - keep) * c
            h_new = (keep * h_raw + (1.0 - keep) * h.astype(jnp.float32)
                     ).astype(jnp.bfloat16)
        else:
            c_new = c_raw
            h_new = h_raw.astype(jnp.bfloat16)
        out_ref[t] = h_new                                 # lane-dense bf16 store
        return h_new, c_new

    h_fin, c_fin = lax.fori_loop(0, T, step, (h_sc[...], c_sc[...]), unroll=unroll)
    h_sc[...] = h_fin
    c_sc[...] = c_fin

    @pl.when(chunk == pl.num_programs(1) - 1)
    def _():
        h_out_ref[...] = h_fin
        c_out_ref[...] = c_fin


# Flips to False (once) if this JAX build rejects pipeline_mode=pl.Buffered(1).
_SINGLE_BUFFER_WEIGHTS = [True]


def lstm_layer(x_tm, w_ih, w_hh, bias, H, Hp, *, n_b, T, seq_len, vmem_limit):
    """One LSTM layer (fused input GEMM + recurrence inside the Pallas kernel).

    x_tm : (S_pad, Bp, E_x) bf16, time-major, batch padded to Bp = n_b * Bb.
    Returns (out (S_pad,Bp,Hp) bf16, h (Bp,Hp) bf16, c (Bp,Hp) f32), padded; caller slices.
    """
    S_pad, Bp, E_x = x_tm.shape
    Bb = Bp // n_b
    Gp = 4 * Hp
    E_w = w_ih.shape[0]
    n_chunks = S_pad // T

    # Padded / gate-permuted weights (zero pads keep padded lanes exactly 0).
    w_ih_p = w_ih if E_x == E_w else jnp.pad(w_ih, ((0, E_x - E_w), (0, 0)))
    w_ih_p = _permute_pad_gates(w_ih_p, H, Hp).astype(jnp.bfloat16)              # (E_x,4Hp)
    w_hh_p = _permute_pad_gates(jnp.pad(w_hh, ((0, Hp - H), (0, 0))), H, Hp)
    w_hh_p = w_hh_p.astype(jnp.bfloat16)                                         # (Hp,4Hp)
    bias_p = _permute_pad_gates(bias, H, Hp).reshape(1, Gp).astype(jnp.float32)  # (1,4Hp)

    kernel = functools.partial(
        _lstm_chunk_kernel,
        seq_len=(None if S_pad == seq_len else seq_len),
        unroll=min(T, 8))

    out_shapes = (
        jax.ShapeDtypeStruct((S_pad, Bp, Hp), jnp.bfloat16),   # per-step hidden outputs
        jax.ShapeDtypeStruct((Bp, Hp), jnp.bfloat16),          # final h
        jax.ShapeDtypeStruct((Bp, Hp), jnp.float32),           # final c
    )

    def _build(single_buffer_weights):
        res = {"pipeline_mode": pl.Buffered(1)} if single_buffer_weights else {}
        grid_spec = pltpu.PrefetchScalarGridSpec(
            num_scalar_prefetch=0,
            grid=(n_b, n_chunks),                               # (batch blocks, time chunks)
            in_specs=[
                pl.BlockSpec((T, Bb, E_x), lambda b, c: (c, b, 0)),    # x chunk
                pl.BlockSpec((E_x, Gp), lambda b, c: (0, 0), **res),   # W_ih (resident)
                pl.BlockSpec((Hp, Gp), lambda b, c: (0, 0), **res),    # W_hh (resident)
                pl.BlockSpec((1, Gp), lambda b, c: (0, 0), **res),     # bias  (resident)
            ],
            out_specs=[
                pl.BlockSpec((T, Bb, Hp), lambda b, c: (c, b, 0)),
                pl.BlockSpec((Bb, Hp), lambda b, c: (b, 0)),
                pl.BlockSpec((Bb, Hp), lambda b, c: (b, 0)),
            ],
            scratch_shapes=[
                pltpu.VMEM((T, Bb, Gp), jnp.float32),           # chunk input projection
                pltpu.VMEM((Bb, Hp), jnp.bfloat16),             # h carry
                pltpu.VMEM((Bb, Hp), jnp.float32),              # c carry
            ],
        )
        return pl.pallas_call(
            kernel,
            out_shape=out_shapes,
            grid_spec=grid_spec,
            compiler_params=pltpu.CompilerParams(
                dimension_semantics=("parallel", "arbitrary"),  # batch || , time sequential
                vmem_limit_bytes=vmem_limit),
        )(x_tm, w_ih_p, w_hh_p, bias_p)

    if _SINGLE_BUFFER_WEIGHTS[0]:
        try:
            return _build(True)
        except Exception:
            _SINGLE_BUFFER_WEIGHTS[0] = False   # pipeline_mode unsupported -> default buffering
    return _build(False)


# ----------------------------------------------------------------------------
# Encoder forward (embedding gather is XLA glue; everything per-layer is the kernel).
# ----------------------------------------------------------------------------
def encoder_forward(params, token_ids, *, t_max=64):
    """token_ids: (B, S) int32 -> (output (B,S,H) f32, (h_n, c_n) each (L,B,H) f32)."""
    B, S = token_ids.shape
    H = params["w_hh"][0].shape[0]
    E = params["embedding"].shape[1]
    L = len(params["w_ih"])
    Hp = _round_up(H, 128)

    # Split the batch into two blocks (-> the two TensorCores on v7x via the "parallel"
    # grid axis) once it is big enough; otherwise a single block.
    if B > 8:
        Bp, n_b = _round_up(B, 16), 2
    else:
        Bp, n_b = _round_up(B, 8), 1
    Bb = Bp // n_b

    T, n_chunks, vmem_limit = _plan_chunk(S, Bb, max(E, Hp), Hp, t_max)
    S_pad = n_chunks * T

    # Time-major gather: transpose the cheap int32 ids, not the activations; cast to bf16
    # once (MXU operand dtype), pad batch rows and tail timesteps (tail is masked in-kernel).
    x = jnp.take(params["embedding"], token_ids.T, axis=0).astype(jnp.bfloat16)   # (S,B,E)
    x = jnp.pad(x, ((0, S_pad - S), (0, Bp - B), (0, 0)))

    hs, cs = [], []
    for l in range(L):
        x, h, c = lstm_layer(x, params["w_ih"][l], params["w_hh"][l], params["bias"][l],
                             H, Hp, n_b=n_b, T=T, seq_len=S, vmem_limit=vmem_limit)
        hs.append(h[:B, :H].astype(jnp.float32))
        cs.append(c[:B, :H])

    output = jnp.transpose(x[:S, :B, :H], (1, 0, 2)).astype(jnp.float32)          # (B,S,H)
    return output, (jnp.stack(hs, axis=0), jnp.stack(cs, axis=0))


# ----------------------------------------------------------------------------
# Deterministic parameter init (PyTorch-like U(-1/sqrt(H), 1/sqrt(H)))
# ----------------------------------------------------------------------------
def init_params(key, vocab, embed_dim, hidden_dim, num_layers):
    keys = jax.random.split(key, 1 + 4 * num_layers)
    params = {"embedding": jax.random.normal(keys[0], (vocab, embed_dim), jnp.float32)}
    k = 1.0 / jnp.sqrt(hidden_dim)
    w_ih, w_hh, bias = [], [], []
    for l in range(num_layers):
        e_in = embed_dim if l == 0 else hidden_dim
        k0, k1, k2, k3 = keys[1 + 4 * l: 5 + 4 * l]
        # stored transposed vs PyTorch: (in_features, 4H), gate order [i, f, g, o]
        w_ih.append(jax.random.uniform(k0, (e_in, 4 * hidden_dim), jnp.float32, -k, k))
        w_hh.append(jax.random.uniform(k1, (hidden_dim, 4 * hidden_dim), jnp.float32, -k, k))
        b_ih = jax.random.uniform(k2, (4 * hidden_dim,), jnp.float32, -k, k)
        b_hh = jax.random.uniform(k3, (4 * hidden_dim,), jnp.float32, -k, k)
        bias.append(b_ih + b_hh)                                   # (4H,)
    params["w_ih"], params["w_hh"], params["bias"] = w_ih, w_hh, bias
    return params


# ----------------------------------------------------------------------------
# Pure-JAX reference (lax.scan LSTM, same bf16 matmul-operand policy) for checks
# ----------------------------------------------------------------------------
def reference_forward(params, token_ids):
    x = jnp.take(params["embedding"], token_ids.T, axis=0).astype(jnp.float32)   # (S,B,E)
    B = token_ids.shape[0]
    H = params["w_hh"][0].shape[0]
    hs, cs = [], []
    for l in range(len(params["w_ih"])):
        w_ih = params["w_ih"][l].astype(jnp.bfloat16)
        w_hh = params["w_hh"][l].astype(jnp.bfloat16)
        b = params["bias"][l]

        def step(carry, x_t, w_ih=w_ih, w_hh=w_hh, b=b):
            h, c = carry
            g = (jnp.dot(x_t.astype(jnp.bfloat16), w_ih, preferred_element_type=jnp.float32)
                 + jnp.dot(h.astype(jnp.bfloat16), w_hh, preferred_element_type=jnp.float32)
                 + b)
            i = jax.nn.sigmoid(g[:, 0:H])
            f = jax.nn.sigmoid(g[:, H:2 * H])
            gg = jnp.tanh(g[:, 2 * H:3 * H])
            o = jax.nn.sigmoid(g[:, 3 * H:4 * H])
            c_new = f * c + i * gg
            h_new = o * jnp.tanh(c_new)
            return (h_new, c_new), h_new

        (h, c), x = lax.scan(step, (jnp.zeros((B, H)), jnp.zeros((B, H))), x)
        hs.append(h)
        cs.append(c)
    return jnp.transpose(x, (1, 0, 2)), (jnp.stack(hs), jnp.stack(cs))


if __name__ == "__main__":
    VOCAB, EMBED_DIM, HIDDEN_DIM, NUM_LAYERS = 50, 32, 32, 2
    B, S = 2, 8

    key = jax.random.PRNGKey(0)
    pkey, ikey = jax.random.split(key)
    params = init_params(pkey, VOCAB, EMBED_DIM, HIDDEN_DIM, NUM_LAYERS)
    token_ids = jax.random.randint(ikey, (B, S), 0, VOCAB, dtype=jnp.int32)

    output, (h_n, c_n) = encoder_forward(params, token_ids)
    jax.block_until_ready((output, h_n, c_n))

    # correctness vs pure-JAX reference (bf16 matmul / bf16 h storage -> loose tolerance)
    ref_out, (ref_h, ref_c) = reference_forward(params, token_ids)
    assert output.shape == (B, S, HIDDEN_DIM)
    assert h_n.shape == (NUM_LAYERS, B, HIDDEN_DIM)
    assert c_n.shape == (NUM_LAYERS, B, HIDDEN_DIM)
    assert jnp.allclose(output, ref_out, atol=1e-2)
    assert jnp.allclose(h_n, ref_h, atol=1e-2)
    assert jnp.allclose(c_n, ref_c, atol=1e-2)

    # exercise the awkward-S path: prime S with a forced small chunk -> padded tail
    # timesteps must be masked (carry / final state unaffected).
    token_ids2 = jax.random.randint(jax.random.PRNGKey(1), (3, 7), 0, VOCAB, dtype=jnp.int32)
    out2, (h2, c2) = encoder_forward(params, token_ids2, t_max=3)
    jax.block_until_ready((out2, h2, c2))
    ref_out2, (ref_h2, ref_c2) = reference_forward(params, token_ids2)
    assert jnp.allclose(out2, ref_out2, atol=1e-2)
    assert jnp.allclose(h2, ref_h2, atol=1e-2)
    assert jnp.allclose(c2, ref_c2, atol=1e-2)

    print("KERNEL_OK")
</pallas_src>

<mosaic_0001>
module attributes {stable_mosaic.version = 11 : i64} {
  func.func @_lstm_chunk_kernel(%arg0: i32, %arg1: i32, %arg2: memref<8x8x32xbf16, #tpu.memory_space<vmem>>, %arg3: memref<32x512xbf16, #tpu.memory_space<vmem>>, %arg4: memref<128x512xbf16, #tpu.memory_space<vmem>>, %arg5: memref<1x512xf32, #tpu.memory_space<vmem>>, %arg6: memref<8x8x128xbf16, #tpu.memory_space<vmem>>, %arg7: memref<8x128xbf16, #tpu.memory_space<vmem>>, %arg8: memref<8x128xf32, #tpu.memory_space<vmem>>, %arg9: memref<8x8x512xf32, #tpu.memory_space<vmem>>, %arg10: memref<8x128xbf16, #tpu.memory_space<vmem>>, %arg11: memref<8x128xf32, #tpu.memory_space<vmem>>) attributes {dimension_semantics = [#tpu.dimension_semantics<parallel>, #tpu.dimension_semantics<arbitrary>], iteration_bounds = array<i64: 1, 1>, scalar_prefetch = 0 : i64, scratch_operands = 3 : i64, tpu.core_type = #tpu.core_type<tc>, window_params = [{transform_indices = @transform_0, window_bounds = array<i64: 8, 8, 32>}, {pipeline_mode = #tpu.pipeline_mode<synchronous>, transform_indices = @transform_1, window_bounds = array<i64: 32, 512>}, {pipeline_mode = #tpu.pipeline_mode<synchronous>, transform_indices = @transform_2, window_bounds = array<i64: 128, 512>}, {pipeline_mode = #tpu.pipeline_mode<synchronous>, transform_indices = @transform_3, window_bounds = array<i64: 1, 512>}, {transform_indices = @transform_4, window_bounds = array<i64: 8, 8, 128>}, {transform_indices = @transform_5, window_bounds = array<i64: 8, 128>}, {transform_indices = @transform_6, window_bounds = array<i64: 8, 128>}]} {
    %c0_i32 = arith.constant 0 : i32
    %0 = arith.cmpi eq, %arg1, %c0_i32 : i32
    %1 = arith.extui %0 : i1 to i32
    %c0_i32_0 = arith.constant 0 : i32
    %2 = arith.cmpi ne, %1, %c0_i32_0 : i32
    scf.if %2 {
      %cst_71 = arith.constant 0.000000e+00 : bf16
      %229 = vector.broadcast %cst_71 : bf16 to vector<8x128xbf16>
      %c0_72 = arith.constant 0 : index
      %c0_73 = arith.constant 0 : index
      %230 = vector.load %arg10[%c0_72, %c0_73] : memref<8x128xbf16, #tpu.memory_space<vmem>>, vector<8x128xbf16>
      tpu.vector_store %arg10[%c0_72, %c0_73], %229 {strides = array<i32>} : memref<8x128xbf16, #tpu.memory_space<vmem>>, vector<8x128xbf16>,
      %cst_74 = arith.constant 0.000000e+00 : f32
      %231 = vector.broadcast %cst_74 : f32 to vector<8x128xf32>
      %c0_75 = arith.constant 0 : index
      %c0_76 = arith.constant 0 : index
      %232 = vector.load %arg11[%c0_75, %c0_76] : memref<8x128xf32, #tpu.memory_space<vmem>>, vector<8x128xf32>
      tpu.vector_store %arg11[%c0_75, %c0_76], %231 {strides = array<i32>} : memref<8x128xf32, #tpu.memory_space<vmem>>, vector<8x128xf32>,
    } else {
    }
    %c0 = arith.constant 0 : index
    %c0_1 = arith.constant 0 : index
    %c0_2 = arith.constant 0 : index
    %3 = vector.load %arg2[%c0, %c0_1, %c0_2] : memref<8x8x32xbf16, #tpu.memory_space<vmem>>, vector<8x8x32xbf16>
    %4 = vector.shape_cast %3 : vector<8x8x32xbf16> to vector<64x32xbf16>
    %c0_3 = arith.constant 0 : index
    %c0_4 = arith.constant 0 : index
    %5 = vector.load %arg3[%c0_3, %c0_4] : memref<32x512xbf16, #tpu.memory_space<vmem>>, vector<32x512xbf16>
    %cst = arith.constant dense<0.000000e+00> : vector<64x512xf32>
    %6 = tpu.matmul %4, %5, %cst {dimension_numbers = #tpu.dot_dimension_numbers<[1], [0], [0], [1], [0, 0, 1, 1], [], []>} : vector<64x32xbf16>, vector<32x512xbf16>, vector<64x512xf32> -> vector<64x512xf32>
    %7 = vector.shape_cast %6 : vector<64x512xf32> to vector<8x8x512xf32>
    %c0_5 = arith.constant 0 : index
    %c0_6 = arith.constant 0 : index
    %8 = vector.load %arg5[%c0_5, %c0_6] : memref<1x512xf32, #tpu.memory_space<vmem>>, vector<1x512xf32>
    %9 = vector.shape_cast %8 : vector<1x512xf32> to vector<1x1x512xf32>
    %10 = vector.broadcast %9 : vector<1x1x512xf32> to vector<8x8x512xf32>
    %11 = arith.addf %7, %10 : vector<8x8x512xf32>
    %c0_7 = arith.constant 0 : index
    %c0_8 = arith.constant 0 : index
    %c0_9 = arith.constant 0 : index
    %12 = vector.load %arg9[%c0_7, %c0_8, %c0_9] : memref<8x8x512xf32, #tpu.memory_space<vmem>>, vector<8x8x512xf32>
    tpu.vector_store %arg9[%c0_7, %c0_8, %c0_9], %11 {strides = array<i32>} : memref<8x8x512xf32, #tpu.memory_space<vmem>>, vector<8x8x512xf32>,
    %c0_10 = arith.constant 0 : index
    %c0_11 = arith.constant 0 : index
    %13 = vector.load %arg4[%c0_10, %c0_11] : memref<128x512xbf16, #tpu.memory_space<vmem>>, vector<128x512xbf16>
    %c0_12 = arith.constant 0 : index
    %c0_13 = arith.constant 0 : index
    %14 = vector.load %arg10[%c0_12, %c0_13] : memref<8x128xbf16, #tpu.memory_space<vmem>>, vector<8x128xbf16>
    %c0_14 = arith.constant 0 : index
    %c0_15 = arith.constant 0 : index
    %15 = vector.load %arg11[%c0_14, %c0_15] : memref<8x128xf32, #tpu.memory_space<vmem>>, vector<8x128xf32>
    %c0_i32_16 = arith.constant 0 : i32
    %16 = arith.index_cast %c0_i32_16 : i32 to index
    %c0_17 = arith.constant 0 : index
    %c0_18 = arith.constant 0 : index
    %17 = vector.load %arg9[%16, %c0_17, %c0_18] : memref<8x8x512xf32, #tpu.memory_space<vmem>>, vector<1x8x512xf32>
    %18 = vector.shape_cast %17 : vector<1x8x512xf32> to vector<8x512xf32>
    %cst_19 = arith.constant dense<0.000000e+00> : vector<8x512xf32>
    %19 = tpu.matmul %14, %13, %cst_19 {dimension_numbers = #tpu.dot_dimension_numbers<[1], [0], [0], [1], [0, 0, 1, 1], [], []>} : vector<8x128xbf16>, vector<128x512xbf16>, vector<8x512xf32> -> vector<8x512xf32>
    %20 = arith.addf %18, %19 : vector<8x512xf32>
    %21 = vector.extract_strided_slice %20 {offsets = [0, 0], sizes = [8, 384], strides = [1, 1]} : vector<8x512xf32> to vector<8x384xf32>
    %22 = arith.negf %21 : vector<8x384xf32>
    %23 = math.exp %22 : vector<8x384xf32>
    %cst_20 = arith.constant 1.000000e+00 : f32
    %24 = vector.broadcast %cst_20 : f32 to vector<8x384xf32>
    %25 = arith.addf %24, %23 : vector<8x384xf32>
    %26 = arith.divf %24, %25 : vector<8x384xf32>
    %27 = vector.extract_strided_slice %20 {offsets = [0, 384], sizes = [8, 128], strides = [1, 1]} : vector<8x512xf32> to vector<8x128xf32>
    %28 = math.tanh %27 : vector<8x128xf32>
    %29 = vector.extract_strided_slice %26 {offsets = [0, 0], sizes = [8, 128], strides = [1, 1]} : vector<8x384xf32> to vector<8x128xf32>
    %30 = vector.extract_strided_slice %26 {offsets = [0, 128], sizes = [8, 128], strides = [1, 1]} : vector<8x384xf32> to vector<8x128xf32>
    %31 = vector.extract_strided_slice %26 {offsets = [0, 256], sizes = [8, 128], strides = [1, 1]} : vector<8x384xf32> to vector<8x128xf32>
    %32 = arith.mulf %30, %15 : vector<8x128xf32>
    %33 = arith.mulf %29, %28 : vector<8x128xf32>
    %34 = arith.addf %32, %33 : vector<8x128xf32>
    %35 = math.tanh %34 : vector<8x128xf32>
    %36 = arith.mulf %31, %35 : vector<8x128xf32>
    %37 = arith.truncf %36 : vector<8x128xf32> to vector<8x128xbf16>
    %38 = arith.index_cast %c0_i32_16 : i32 to index
    %c0_21 = arith.constant 0 : index
    %c0_22 = arith.constant 0 : index
    %39 = vector.load %arg6[%38, %c0_21, %c0_22] : memref<8x8x128xbf16, #tpu.memory_space<vmem>>, vector<1x8x128xbf16>
    %40 = vector.shape_cast %39 : vector<1x8x128xbf16> to vector<8x128xbf16>
    %41 = vector.shape_cast %37 : vector<8x128xbf16> to vector<1x8x128xbf16>
    tpu.vector_store %arg6[%38, %c0_21, %c0_22], %41 {strides = array<i32>} : memref<8x8x128xbf16, #tpu.memory_space<vmem>>, vector<1x8x128xbf16>,
    %c1_i32 = arith.constant 1 : i32
    %42 = arith.index_cast %c1_i32 : i32 to index
    %c0_23 = arith.constant 0 : index
    %c0_24 = arith.constant 0 : index
    %43 = vector.load %arg9[%42, %c0_23, %c0_24] : memref<8x8x512xf32, #tpu.memory_space<vmem>>, vector<1x8x512xf32>
    %44 = vector.shape_cast %43 : vector<1x8x512xf32> to vector<8x512xf32>
    %cst_25 = arith.constant dense<0.000000e+00> : vector<8x512xf32>
    %45 = tpu.matmul %37, %13, %cst_25 {dimension_numbers = #tpu.dot_dimension_numbers<[1], [0], [0], [1], [0, 0, 1, 1], [], []>} : vector<8x128xbf16>, vector<128x512xbf16>, vector<8x512xf32> -> vector<8x512xf32>
    %46 = arith.addf %44, %45 : vector<8x512xf32>
    %47 = vector.extract_strided_slice %46 {offsets = [0, 0], sizes = [8, 384], strides = [1, 1]} : vector<8x512xf32> to vector<8x384xf32>
    %48 = arith.negf %47 : vector<8x384xf32>
    %49 = math.exp %48 : vector<8x384xf32>
    %cst_26 = arith.constant 1.000000e+00 : f32
    %50 = vector.broadcast %cst_26 : f32 to vector<8x384xf32>
    %51 = arith.addf %50, %49 : vector<8x384xf32>
    %52 = arith.divf %50, %51 : vector<8x384xf32>
    %53 = vector.extract_strided_slice %46 {offsets = [0, 384], sizes = [8, 128], strides = [1, 1]} : vector<8x512xf32> to vector<8x128xf32>
    %54 = math.tanh %53 : vector<8x128xf32>
    %55 = vector.extract_strided_slice %52 {offsets = [0, 0], sizes = [8, 128], strides = [1, 1]} : vector<8x384xf32> to vector<8x128xf32>
    %56 = vector.extract_strided_slice %52 {offsets = [0, 128], sizes = [8, 128], strides = [1, 1]} : vector<8x384xf32> to vector<8x128xf32>
    %57 = vector.extract_strided_slice %52 {offsets = [0, 256], sizes = [8, 128], strides = [1, 1]} : vector<8x384xf32> to vector<8x128xf32>
    %58 = arith.mulf %56, %34 : vector<8x128xf32>
    %59 = arith.mulf %55, %54 : vector<8x128xf32>
    %60 = arith.addf %58, %59 : vector<8x128xf32>
    %61 = math.tanh %60 : vector<8x128xf32>
    %62 = arith.mulf %57, %61 : vector<8x128xf32>
    %63 = arith.truncf %62 : vector<8x128xf32> to vector<8x128xbf16>
    %64 = arith.index_cast %c1_i32 : i32 to index
    %c0_27 = arith.constant 0 : index
    %c0_28 = arith.constant 0 : index
    %65 = vector.load %arg6[%64, %c0_27, %c0_28] : memref<8x8x128xbf16, #tpu.memory_space<vmem>>, vector<1x8x128xbf16>
    %66 = vector.shape_cast %65 : vector<1x8x128xbf16> to vector<8x128xbf16>
    %67 = vector.shape_cast %63 : vector<8x128xbf16> to vector<1x8x128xbf16>
    tpu.vector_store %arg6[%64, %c0_27, %c0_28], %67 {strides = array<i32>} : memref<8x8x128xbf16, #tpu.memory_space<vmem>>, vector<1x8x128xbf16>,
    %c2_i32 = arith.constant 2 : i32
    %68 = arith.index_cast %c2_i32 : i32 to index
    %c0_29 = arith.constant 0 : index
    %c0_30 = arith.constant 0 : index
    %69 = vector.load %arg9[%68, %c0_29, %c0_30] : memref<8x8x512xf32, #tpu.memory_space<vmem>>, vector<1x8x512xf32>
    %70 = vector.shape_cast %69 : vector<1x8x512xf32> to vector<8x512xf32>
    %cst_31 = arith.constant dense<0.000000e+00> : vector<8x512xf32>
    %71 = tpu.matmul %63, %13, %cst_31 {dimension_numbers = #tpu.dot_dimension_numbers<[1], [0], [0], [1], [0, 0, 1, 1], [], []>} : vector<8x128xbf16>, vector<128x512xbf16>, vector<8x512xf32> -> vector<8x512xf32>
    %72 = arith.addf %70, %71 : vector<8x512xf32>
    %73 = vector.extract_strided_slice %72 {offsets = [0, 0], sizes = [8, 384], strides = [1, 1]} : vector<8x512xf32> to vector<8x384xf32>
    %74 = arith.negf %73 : vector<8x384xf32>
    %75 = math.exp %74 : vector<8x384xf32>
    %cst_32 = arith.constant 1.000000e+00 : f32
    %76 = vector.broadcast %cst_32 : f32 to vector<8x384xf32>
    %77 = arith.addf %76, %75 : vector<8x384xf32>
    %78 = arith.divf %76, %77 : vector<8x384xf32>
    %79 = vector.extract_strided_slice %72 {offsets = [0, 384], sizes = [8, 128], strides = [1, 1]} : vector<8x512xf32> to vector<8x128xf32>
    %80 = math.tanh %79 : vector<8x128xf32>
    %81 = vector.extract_strided_slice %78 {offsets = [0, 0], sizes = [8, 128], strides = [1, 1]} : vector<8x384xf32> to vector<8x128xf32>
    %82 = vector.extract_strided_slice %78 {offsets = [0, 128], sizes = [8, 128], strides = [1, 1]} : vector<8x384xf32> to vector<8x128xf32>
    %83 = vector.extract_strided_slice %78 {offsets = [0, 256], sizes = [8, 128], strides = [1, 1]} : vector<8x384xf32> to vector<8x128xf32>
    %84 = arith.mulf %82, %60 : vector<8x128xf32>
    %85 = arith.mulf %81, %80 : vector<8x128xf32>
    %86 = arith.addf %84, %85 : vector<8x128xf32>
    %87 = math.tanh %86 : vector<8x128xf32>
    %88 = arith.mulf %83, %87 : vector<8x128xf32>
    %89 = arith.truncf %88 : vector<8x128xf32> to vector<8x128xbf16>
    %90 = arith.index_cast %c2_i32 : i32 to index
    %c0_33 = arith.constant 0 : index
    %c0_34 = arith.constant 0 : index
    %91 = vector.load %arg6[%90, %c0_33, %c0_34] : memref<8x8x128xbf16, #tpu.memory_space<vmem>>, vector<1x8x128xbf16>
    %92 = vector.shape_cast %91 : vector<1x8x128xbf16> to vector<8x128xbf16>
    %93 = vector.shape_cast %89 : vector<8x128xbf16> to vector<1x8x128xbf16>
    tpu.vector_store %arg6[%90, %c0_33, %c0_34], %93 {strides = array<i32>} : memref<8x8x128xbf16, #tpu.memory_space<vmem>>, vector<1x8x128xbf16>,
    %c3_i32 = arith.constant 3 : i32
    %94 = arith.index_cast %c3_i32 : i32 to index
    %c0_35 = arith.constant 0 : index
    %c0_36 = arith.constant 0 : index
    %95 = vector.load %arg9[%94, %c0_35, %c0_36] : memref<8x8x512xf32, #tpu.memory_space<vmem>>, vector<1x8x512xf32>
    %96 = vector.shape_cast %95 : vector<1x8x512xf32> to vector<8x512xf32>
    %cst_37 = arith.constant dense<0.000000e+00> : vector<8x512xf32>
    %97 = tpu.matmul %89, %13, %cst_37 {dimension_numbers = #tpu.dot_dimension_numbers<[1], [0], [0], [1], [0, 0, 1, 1], [], []>} : vector<8x128xbf16>, vector<128x512xbf16>, vector<8x512xf32> -> vector<8x512xf32>
    %98 = arith.addf %96, %97 : vector<8x512xf32>
    %99 = vector.extract_strided_slice %98 {offsets = [0, 0], sizes = [8, 384], strides = [1, 1]} : vector<8x512xf32> to vector<8x384xf32>
    %100 = arith.negf %99 : vector<8x384xf32>
    %101 = math.exp %100 : vector<8x384xf32>
    %cst_38 = arith.constant 1.000000e+00 : f32
    %102 = vector.broadcast %cst_38 : f32 to vector<8x384xf32>
    %103 = arith.addf %102, %101 : vector<8x384xf32>
    %104 = arith.divf %102, %103 : vector<8x384xf32>
    %105 = vector.extract_strided_slice %98 {offsets = [0, 384], sizes = [8, 128], strides = [1, 1]} : vector<8x512xf32> to vector<8x128xf32>
    %106 = math.tanh %105 : vector<8x128xf32>
    %107 = vector.extract_strided_slice %104 {offsets = [0, 0], sizes = [8, 128], strides = [1, 1]} : vector<8x384xf32> to vector<8x128xf32>
    %108 = vector.extract_strided_slice %104 {offsets = [0, 128], sizes = [8, 128], strides = [1, 1]} : vector<8x384xf32> to vector<8x128xf32>
    %109 = vector.extract_strided_slice %104 {offsets = [0, 256], sizes = [8, 128], strides = [1, 1]} : vector<8x384xf32> to vector<8x128xf32>
    %110 = arith.mulf %108, %86 : vector<8x128xf32>
    %111 = arith.mulf %107, %106 : vector<8x128xf32>
    %112 = arith.addf %110, %111 : vector<8x128xf32>
    %113 = math.tanh %112 : vector<8x128xf32>
    %114 = arith.mulf %109, %113 : vector<8x128xf32>
    %115 = arith.truncf %114 : vector<8x128xf32> to vector<8x128xbf16>
    %116 = arith.index_cast %c3_i32 : i32 to index
    %c0_39 = arith.constant 0 : index
    %c0_40 = arith.constant 0 : index
    %117 = vector.load %arg6[%116, %c0_39, %c0_40] : memref<8x8x128xbf16, #tpu.memory_space<vmem>>, vector<1x8x128xbf16>
    %118 = vector.shape_cast %117 : vector<1x8x128xbf16> to vector<8x128xbf16>
    %119 = vector.shape_cast %115 : vector<8x128xbf16> to vector<1x8x128xbf16>
    tpu.vector_store %arg6[%116, %c0_39, %c0_40], %119 {strides = array<i32>} : memref<8x8x128xbf16, #tpu.memory_space<vmem>>, vector<1x8x128xbf16>,
    %c4_i32 = arith.constant 4 : i32
    %120 = arith.index_cast %c4_i32 : i32 to index
    %c0_41 = arith.constant 0 : index
    %c0_42 = arith.constant 0 : index
    %121 = vector.load %arg9[%120, %c0_41, %c0_42] : memref<8x8x512xf32, #tpu.memory_space<vmem>>, vector<1x8x512xf32>
    %122 = vector.shape_cast %121 : vector<1x8x512xf32> to vector<8x512xf32>
    %cst_43 = arith.constant dense<0.000000e+00> : vector<8x512xf32>
    %123 = tpu.matmul %115, %13, %cst_43 {dimension_numbers = #tpu.dot_dimension_numbers<[1], [0], [0], [1], [0, 0, 1, 1], [], []>} : vector<8x128xbf16>, vector<128x512xbf16>, vector<8x512xf32> -> vector<8x512xf32>
    %124 = arith.addf %122, %123 : vector<8x512xf32>
    %125 = vector.extract_strided_slice %124 {offsets = [0, 0], sizes = [8, 384], strides = [1, 1]} : vector<8x512xf32> to vector<8x384xf32>
    %126 = arith.negf %125 : vector<8x384xf32>
    %127 = math.exp %126 : vector<8x384xf32>
    %cst_44 = arith.constant 1.000000e+00 : f32
    %128 = vector.broadcast %cst_44 : f32 to vector<8x384xf32>
    %129 = arith.addf %128, %127 : vector<8x384xf32>
    %130 = arith.divf %128, %129 : vector<8x384xf32>
    %131 = vector.extract_strided_slice %124 {offsets = [0, 384], sizes = [8, 128], strides = [1, 1]} : vector<8x512xf32> to vector<8x128xf32>
    %132 = math.tanh %131 : vector<8x128xf32>
    %133 = vector.extract_strided_slice %130 {offsets = [0, 0], sizes = [8, 128], strides = [1, 1]} : vector<8x384xf32> to vector<8x128xf32>
    %134 = vector.extract_strided_slice %130 {offsets = [0, 128], sizes = [8, 128], strides = [1, 1]} : vector<8x384xf32> to vector<8x128xf32>
    %135 = vector.extract_strided_slice %130 {offsets = [0, 256], sizes = [8, 128], strides = [1, 1]} : vector<8x384xf32> to vector<8x128xf32>
    %136 = arith.mulf %134, %112 : vector<8x128xf32>
    %137 = arith.mulf %133, %132 : vector<8x128xf32>
    %138 = arith.addf %136, %137 : vector<8x128xf32>
    %139 = math.tanh %138 : vector<8x128xf32>
    %140 = arith.mulf %135, %139 : vector<8x128xf32>
    %141 = arith.truncf %140 : vector<8x128xf32> to vector<8x128xbf16>
    %142 = arith.index_cast %c4_i32 : i32 to index
    %c0_45 = arith.constant 0 : index
    %c0_46 = arith.constant 0 : index
    %143 = vector.load %arg6[%142, %c0_45, %c0_46] : memref<8x8x128xbf16, #tpu.memory_space<vmem>>, vector<1x8x128xbf16>
    %144 = vector.shape_cast %143 : vector<1x8x128xbf16> to vector<8x128xbf16>
    %145 = vector.shape_cast %141 : vector<8x128xbf16> to vector<1x8x128xbf16>
    tpu.vector_store %arg6[%142, %c0_45, %c0_46], %145 {strides = array<i32>} : memref<8x8x128xbf16, #tpu.memory_space<vmem>>, vector<1x8x128xbf16>,
    %c5_i32 = arith.constant 5 : i32
    %146 = arith.index_cast %c5_i32 : i32 to index
    %c0_47 = arith.constant 0 : index
    %c0_48 = arith.constant 0 : index
    %147 = vector.load %arg9[%146, %c0_47, %c0_48] : memref<8x8x512xf32, #tpu.memory_space<vmem>>, vector<1x8x512xf32>
    %148 = vector.shape_cast %147 : vector<1x8x512xf32> to vector<8x512xf32>
    %cst_49 = arith.constant dense<0.000000e+00> : vector<8x512xf32>
    %149 = tpu.matmul %141, %13, %cst_49 {dimension_numbers = #tpu.dot_dimension_numbers<[1], [0], [0], [1], [0, 0, 1, 1], [], []>} : vector<8x128xbf16>, vector<128x512xbf16>, vector<8x512xf32> -> vector<8x512xf32>
    %150 = arith.addf %148, %149 : vector<8x512xf32>
    %151 = vector.extract_strided_slice %150 {offsets = [0, 0], sizes = [8, 384], strides = [1, 1]} : vector<8x512xf32> to vector<8x384xf32>
    %152 = arith.negf %151 : vector<8x384xf32>
    %153 = math.exp %152 : vector<8x384xf32>
    %cst_50 = arith.constant 1.000000e+00 : f32
    %154 = vector.broadcast %cst_50 : f32 to vector<8x384xf32>
    %155 = arith.addf %154, %153 : vector<8x384xf32>
    %156 = arith.divf %154, %155 : vector<8x384xf32>
    %157 = vector.extract_strided_slice %150 {offsets = [0, 384], sizes = [8, 128], strides = [1, 1]} : vector<8x512xf32> to vector<8x128xf32>
    %158 = math.tanh %157 : vector<8x128xf32>
    %159 = vector.extract_strided_slice %156 {offsets = [0, 0], sizes = [8, 128], strides = [1, 1]} : vector<8x384xf32> to vector<8x128xf32>
    %160 = vector.extract_strided_slice %156 {offsets = [0, 128], sizes = [8, 128], strides = [1, 1]} : vector<8x384xf32> to vector<8x128xf32>
    %161 = vector.extract_strided_slice %156 {offsets = [0, 256], sizes = [8, 128], strides = [1, 1]} : vector<8x384xf32> to vector<8x128xf32>
    %162 = arith.mulf %160, %138 : vector<8x128xf32>
    %163 = arith.mulf %159, %158 : vector<8x128xf32>
    %164 = arith.addf %162, %163 : vector<8x128xf32>
    %165 = math.tanh %164 : vector<8x128xf32>
    %166 = arith.mulf %161, %165 : vector<8x128xf32>
    %167 = arith.truncf %166 : vector<8x128xf32> to vector<8x128xbf16>
    %168 = arith.index_cast %c5_i32 : i32 to index
    %c0_51 = arith.constant 0 : index
    %c0_52 = arith.constant 0 : index
    %169 = vector.load %arg6[%168, %c0_51, %c0_52] : memref<8x8x128xbf16, #tpu.memory_space<vmem>>, vector<1x8x128xbf16>
    %170 = vector.shape_cast %169 : vector<1x8x128xbf16> to vector<8x128xbf16>
    %171 = vector.shape_cast %167 : vector<8x128xbf16> to vector<1x8x128xbf16>
    tpu.vector_store %arg6[%168, %c0_51, %c0_52], %171 {strides = array<i32>} : memref<8x8x128xbf16, #tpu.memory_space<vmem>>, vector<1x8x128xbf16>,
    %c6_i32 = arith.constant 6 : i32
    %172 = arith.index_cast %c6_i32 : i32 to index
    %c0_53 = arith.constant 0 : index
    %c0_54 = arith.constant 0 : index
    %173 = vector.load %arg9[%172, %c0_53, %c0_54] : memref<8x8x512xf32, #tpu.memory_space<vmem>>, vector<1x8x512xf32>
    %174 = vector.shape_cast %173 : vector<1x8x512xf32> to vector<8x512xf32>
    %cst_55 = arith.constant dense<0.000000e+00> : vector<8x512xf32>
    %175 = tpu.matmul %167, %13, %cst_55 {dimension_numbers = #tpu.dot_dimension_numbers<[1], [0], [0], [1], [0, 0, 1, 1], [], []>} : vector<8x128xbf16>, vector<128x512xbf16>, vector<8x512xf32> -> vector<8x512xf32>
    %176 = arith.addf %174, %175 : vector<8x512xf32>
    %177 = vector.extract_strided_slice %176 {offsets = [0, 0], sizes = [8, 384], strides = [1, 1]} : vector<8x512xf32> to vector<8x384xf32>
    %178 = arith.negf %177 : vector<8x384xf32>
    %179 = math.exp %178 : vector<8x384xf32>
    %cst_56 = arith.constant 1.000000e+00 : f32
    %180 = vector.broadcast %cst_56 : f32 to vector<8x384xf32>
    %181 = arith.addf %180, %179 : vector<8x384xf32>
    %182 = arith.divf %180, %181 : vector<8x384xf32>
    %183 = vector.extract_strided_slice %176 {offsets = [0, 384], sizes = [8, 128], strides = [1, 1]} : vector<8x512xf32> to vector<8x128xf32>
    %184 = math.tanh %183 : vector<8x128xf32>
    %185 = vector.extract_strided_slice %182 {offsets = [0, 0], sizes = [8, 128], strides = [1, 1]} : vector<8x384xf32> to vector<8x128xf32>
    %186 = vector.extract_strided_slice %182 {offsets = [0, 128], sizes = [8, 128], strides = [1, 1]} : vector<8x384xf32> to vector<8x128xf32>
    %187 = vector.extract_strided_slice %182 {offsets = [0, 256], sizes = [8, 128], strides = [1, 1]} : vector<8x384xf32> to vector<8x128xf32>
    %188 = arith.mulf %186, %164 : vector<8x128xf32>
    %189 = arith.mulf %185, %184 : vector<8x128xf32>
    %190 = arith.addf %188, %189 : vector<8x128xf32>
    %191 = math.tanh %190 : vector<8x128xf32>
    %192 = arith.mulf %187, %191 : vector<8x128xf32>
    %193 = arith.truncf %192 : vector<8x128xf32> to vector<8x128xbf16>
    %194 = arith.index_cast %c6_i32 : i32 to index
    %c0_57 = arith.constant 0 : index
    %c0_58 = arith.constant 0 : index
    %195 = vector.load %arg6[%194, %c0_57, %c0_58] : memref<8x8x128xbf16, #tpu.memory_space<vmem>>, vector<1x8x128xbf16>
    %196 = vector.shape_cast %195 : vector<1x8x128xbf16> to vector<8x128xbf16>
    %197 = vector.shape_cast %193 : vector<8x128xbf16> to vector<1x8x128xbf16>
    tpu.vector_store %arg6[%194, %c0_57, %c0_58], %197 {strides = array<i32>} : memref<8x8x128xbf16, #tpu.memory_space<vmem>>, vector<1x8x128xbf16>,
    %c7_i32 = arith.constant 7 : i32
    %198 = arith.index_cast %c7_i32 : i32 to index
    %c0_59 = arith.constant 0 : index
    %c0_60 = arith.constant 0 : index
    %199 = vector.load %arg9[%198, %c0_59, %c0_60] : memref<8x8x512xf32, #tpu.memory_space<vmem>>, vector<1x8x512xf32>
    %200 = vector.shape_cast %199 : vector<1x8x512xf32> to vector<8x512xf32>
    %cst_61 = arith.constant dense<0.000000e+00> : vector<8x512xf32>
    %201 = tpu.matmul %193, %13, %cst_61 {dimension_numbers = #tpu.dot_dimension_numbers<[1], [0], [0], [1], [0, 0, 1, 1], [], []>} : vector<8x128xbf16>, vector<128x512xbf16>, vector<8x512xf32> -> vector<8x512xf32>
    %202 = arith.addf %200, %201 : vector<8x512xf32>
    %203 = vector.extract_strided_slice %202 {offsets = [0, 0], sizes = [8, 384], strides = [1, 1]} : vector<8x512xf32> to vector<8x384xf32>
    %204 = arith.negf %203 : vector<8x384xf32>
    %205 = math.exp %204 : vector<8x384xf32>
    %cst_62 = arith.constant 1.000000e+00 : f32
    %206 = vector.broadcast %cst_62 : f32 to vector<8x384xf32>
    %207 = arith.addf %206, %205 : vector<8x384xf32>
    %208 = arith.divf %206, %207 : vector<8x384xf32>
    %209 = vector.extract_strided_slice %202 {offsets = [0, 384], sizes = [8, 128], strides = [1, 1]} : vector<8x512xf32> to vector<8x128xf32>
    %210 = math.tanh %209 : vector<8x128xf32>
    %211 = vector.extract_strided_slice %208 {offsets = [0, 0], sizes = [8, 128], strides = [1, 1]} : vector<8x384xf32> to vector<8x128xf32>
    %212 = vector.extract_strided_slice %208 {offsets = [0, 128], sizes = [8, 128], strides = [1, 1]} : vector<8x384xf32> to vector<8x128xf32>
    %213 = vector.extract_strided_slice %208 {offsets = [0, 256], sizes = [8, 128], strides = [1, 1]} : vector<8x384xf32> to vector<8x128xf32>
    %214 = arith.mulf %212, %190 : vector<8x128xf32>
    %215 = arith.mulf %211, %210 : vector<8x128xf32>
    %216 = arith.addf %214, %215 : vector<8x128xf32>
    %217 = math.tanh %216 : vector<8x128xf32>
    %218 = arith.mulf %213, %217 : vector<8x128xf32>
    %219 = arith.truncf %218 : vector<8x128xf32> to vector<8x128xbf16>
    %220 = arith.index_cast %c7_i32 : i32 to index
    %c0_63 = arith.constant 0 : index
    %c0_64 = arith.constant 0 : index
    %221 = vector.load %arg6[%220, %c0_63, %c0_64] : memref<8x8x128xbf16, #tpu.memory_space<vmem>>, vector<1x8x128xbf16>
    %222 = vector.shape_cast %221 : vector<1x8x128xbf16> to vector<8x128xbf16>
    %223 = vector.shape_cast %219 : vector<8x128xbf16> to vector<1x8x128xbf16>
    tpu.vector_store %arg6[%220, %c0_63, %c0_64], %223 {strides = array<i32>} : memref<8x8x128xbf16, #tpu.memory_space<vmem>>, vector<1x8x128xbf16>,
    %c8_i32 = arith.constant 8 : i32
    %c0_65 = arith.constant 0 : index
    %c0_66 = arith.constant 0 : index
    %224 = vector.load %arg10[%c0_65, %c0_66] : memref<8x128xbf16, #tpu.memory_space<vmem>>, vector<8x128xbf16>
    tpu.vector_store %arg10[%c0_65, %c0_66], %219 {strides = array<i32>} : memref<8x128xbf16, #tpu.memory_space<vmem>>, vector<8x128xbf16>,
    %c0_67 = arith.constant 0 : index
    %c0_68 = arith.constant 0 : index
    %225 = vector.load %arg11[%c0_67, %c0_68] : memref<8x128xf32, #tpu.memory_space<vmem>>, vector<8x128xf32>
    tpu.vector_store %arg11[%c0_67, %c0_68], %216 {strides = array<i32>} : memref<8x128xf32, #tpu.memory_space<vmem>>, vector<8x128xf32>,
    %c0_i32_69 = arith.constant 0 : i32
    %226 = arith.cmpi eq, %arg1, %c0_i32_69 : i32
    %227 = arith.extui %226 : i1 to i32
    %c0_i32_70 = arith.constant 0 : i32
    %228 = arith.cmpi ne, %227, %c0_i32_70 : i32
    scf.if %228 {
      %c0_71 = arith.constant 0 : index
      %c0_72 = arith.constant 0 : index
      %229 = vector.load %arg7[%c0_71, %c0_72] : memref<8x128xbf16, #tpu.memory_space<vmem>>, vector<8x128xbf16>
      tpu.vector_store %arg7[%c0_71, %c0_72], %219 {strides = array<i32>} : memref<8x128xbf16, #tpu.memory_space<vmem>>, vector<8x128xbf16>,
      %c0_73 = arith.constant 0 : index
      %c0_74 = arith.constant 0 : index
      %230 = vector.load %arg8[%c0_73, %c0_74] : memref<8x128xf32, #tpu.memory_space<vmem>>, vector<8x128xf32>
      tpu.vector_store %arg8[%c0_73, %c0_74], %216 {strides = array<i32>} : memref<8x128xf32, #tpu.memory_space<vmem>>, vector<8x128xf32>,
    } else {
    }
    return
  }
  func.func @transform_0(%arg0: i32, %arg1: i32) -> (i32, i32, i32) {
    %c0_i32 = arith.constant 0 : i32
    %c0_i32_0 = arith.constant 0 : i32
    return %arg1, %arg0, %c0_i32 : i32, i32, i32
  }
  func.func @transform_1(%arg0: i32, %arg1: i32) -> (i32, i32) {
    %c0_i32 = arith.constant 0 : i32
    %c0_i32_0 = arith.constant 0 : i32
    %c0_i32_1 = arith.constant 0 : i32
    return %c0_i32, %c0_i32_0 : i32, i32
  }
  func.func @transform_2(%arg0: i32, %arg1: i32) -> (i32, i32) {
    %c0_i32 = arith.constant 0 : i32
    %c0_i32_0 = arith.constant 0 : i32
    %c0_i32_1 = arith.constant 0 : i32
    return %c0_i32, %c0_i32_0 : i32, i32
  }
  func.func @transform_3(%arg0: i32, %arg1: i32) -> (i32, i32) {
    %c0_i32 = arith.constant 0 : i32
    %c0_i32_0 = arith.constant 0 : i32
    %c0_i32_1 = arith.constant 0 : i32
    return %c0_i32, %c0_i32_0 : i32, i32
  }
  func.func @transform_4(%arg0: i32, %arg1: i32) -> (i32, i32, i32) {
    %c0_i32 = arith.constant 0 : i32
    %c0_i32_0 = arith.constant 0 : i32
    return %arg1, %arg0, %c0_i32 : i32, i32, i32
  }
  func.func @transform_5(%arg0: i32, %arg1: i32) -> (i32, i32) {
    %c0_i32 = arith.constant 0 : i32
    %c0_i32_0 = arith.constant 0 : i32
    return %arg0, %c0_i32 : i32, i32
  }
  func.func @transform_6(%arg0: i32, %arg1: i32) -> (i32, i32) {
    %c0_i32 = arith.constant 0 : i32
    %c0_i32_0 = arith.constant 0 : i32
    return %arg0, %c0_i32 : i32, i32
  }
}

module attributes {stable_mosaic.version = 11 : i64} {
  func.func @_lstm_chunk_kernel(%arg0: i32, %arg1: i32, %arg2: memref<8x8x32xbf16, #tpu.memory_space<vmem>>, %arg3: memref<32x512xbf16, #tpu.memory_space<vmem>>, %arg4: memref<128x512xbf16, #tpu.memory_space<vmem>>, %arg5: memref<1x512xf32, #tpu.memory_space<vmem>>, %arg6: memref<8x8x128xbf16, #tpu.memory_space<vmem>>, %arg7: memref<8x128xbf16, #tpu.memory_space<vmem>>, %arg8: memref<8x128xf32, #tpu.memory_space<vmem>>, %arg9: memref<8x8x512xf32, #tpu.memory_space<vmem>>, %arg10: memref<8x128xbf16, #tpu.memory_space<vmem>>, %arg11: memref<8x128xf32, #tpu.memory_space<vmem>>) attributes {dimension_semantics = [#tpu.dimension_semantics<parallel>, #tpu.dimension_semantics<arbitrary>], iteration_bounds = array<i64: 1, 1>, scalar_prefetch = 0 : i64, scratch_operands = 3 : i64, tpu.core_type = #tpu.core_type<tc>, window_params = [{transform_indices = @transform_0, window_bounds = array<i64: 8, 8, 32>}, {pipeline_mode = #tpu.pipeline_mode<synchronous>, transform_indices = @transform_1, window_bounds = array<i64: 32, 512>}, {pipeline_mode = #tpu.pipeline_mode<synchronous>, transform_indices = @transform_2, window_bounds = array<i64: 128, 512>}, {pipeline_mode = #tpu.pipeline_mode<synchronous>, transform_indices = @transform_3, window_bounds = array<i64: 1, 512>}, {transform_indices = @transform_4, window_bounds = array<i64: 8, 8, 128>}, {transform_indices = @transform_5, window_bounds = array<i64: 8, 128>}, {transform_indices = @transform_6, window_bounds = array<i64: 8, 128>}]} {
    %c0_i32 = arith.constant 0 : i32
    %0 = arith.cmpi eq, %arg1, %c0_i32 : i32
    %1 = arith.extui %0 : i1 to i32
    %c0_i32_0 = arith.constant 0 : i32
    %2 = arith.cmpi ne, %1, %c0_i32_0 : i32
    scf.if %2 {
      %cst_71 = arith.constant 0.000000e+00 : bf16
      %229 = vector.broadcast %cst_71 : bf16 to vector<8x128xbf16>
      %c0_72 = arith.constant 0 : index
      %c0_73 = arith.constant 0 : index
      %230 = vector.load %arg10[%c0_72, %c0_73] : memref<8x128xbf16, #tpu.memory_space<vmem>>, vector<8x128xbf16>
      tpu.vector_store %arg10[%c0_72, %c0_73], %229 {strides = array<i32>} : memref<8x128xbf16, #tpu.memory_space<vmem>>, vector<8x128xbf16>,
      %cst_74 = arith.constant 0.000000e+00 : f32
      %231 = vector.broadcast %cst_74 : f32 to vector<8x128xf32>
      %c0_75 = arith.constant 0 : index
      %c0_76 = arith.constant 0 : index
      %232 = vector.load %arg11[%c0_75, %c0_76] : memref<8x128xf32, #tpu.memory_space<vmem>>, vector<8x128xf32>
      tpu.vector_store %arg11[%c0_75, %c0_76], %231 {strides = array<i32>} : memref<8x128xf32, #tpu.memory_space<vmem>>, vector<8x128xf32>,
    } else {
    }
    %c0 = arith.constant 0 : index
    %c0_1 = arith.constant 0 : index
    %c0_2 = arith.constant 0 : index
    %3 = vector.load %arg2[%c0, %c0_1, %c0_2] : memref<8x8x32xbf16, #tpu.memory_space<vmem>>, vector<8x8x32xbf16>
    %4 = vector.shape_cast %3 : vector<8x8x32xbf16> to vector<64x32xbf16>
    %c0_3 = arith.constant 0 : index
    %c0_4 = arith.constant 0 : index
    %5 = vector.load %arg3[%c0_3, %c0_4] : memref<32x512xbf16, #tpu.memory_space<vmem>>, vector<32x512xbf16>
    %cst = arith.constant dense<0.000000e+00> : vector<64x512xf32>
    %6 = tpu.matmul %4, %5, %cst {dimension_numbers = #tpu.dot_dimension_numbers<[1], [0], [0], [1], [0, 0, 1, 1], [], []>} : vector<64x32xbf16>, vector<32x512xbf16>, vector<64x512xf32> -> vector<64x512xf32>
    %7 = vector.shape_cast %6 : vector<64x512xf32> to vector<8x8x512xf32>
    %c0_5 = arith.constant 0 : index
    %c0_6 = arith.constant 0 : index
    %8 = vector.load %arg5[%c0_5, %c0_6] : memref<1x512xf32, #tpu.memory_space<vmem>>, vector<1x512xf32>
    %9 = vector.shape_cast %8 : vector<1x512xf32> to vector<1x1x512xf32>
    %10 = vector.broadcast %9 : vector<1x1x512xf32> to vector<8x8x512xf32>
    %11 = arith.addf %7, %10 : vector<8x8x512xf32>
    %c0_7 = arith.constant 0 : index
    %c0_8 = arith.constant 0 : index
    %c0_9 = arith.constant 0 : index
    %12 = vector.load %arg9[%c0_7, %c0_8, %c0_9] : memref<8x8x512xf32, #tpu.memory_space<vmem>>, vector<8x8x512xf32>
    tpu.vector_store %arg9[%c0_7, %c0_8, %c0_9], %11 {strides = array<i32>} : memref<8x8x512xf32, #tpu.memory_space<vmem>>, vector<8x8x512xf32>,
    %c0_10 = arith.constant 0 : index
    %c0_11 = arith.constant 0 : index
    %13 = vector.load %arg4[%c0_10, %c0_11] : memref<128x512xbf16, #tpu.memory_space<vmem>>, vector<128x512xbf16>
    %c0_12 = arith.constant 0 : index
    %c0_13 = arith.constant 0 : index
    %14 = vector.load %arg10[%c0_12, %c0_13] : memref<8x128xbf16, #tpu.memory_space<vmem>>, vector<8x128xbf16>
    %c0_14 = arith.constant 0 : index
    %c0_15 = arith.constant 0 : index
    %15 = vector.load %arg11[%c0_14, %c0_15] : memref<8x128xf32, #tpu.memory_space<vmem>>, vector<8x128xf32>
    %c0_i32_16 = arith.constant 0 : i32
    %16 = arith.index_cast %c0_i32_16 : i32 to index
    %c0_17 = arith.constant 0 : index
    %c0_18 = arith.constant 0 : index
    %17 = vector.load %arg9[%16, %c0_17, %c0_18] : memref<8x8x512xf32, #tpu.memory_space<vmem>>, vector<1x8x512xf32>
    %18 = vector.shape_cast %17 : vector<1x8x512xf32> to vector<8x512xf32>
    %cst_19 = arith.constant dense<0.000000e+00> : vector<8x512xf32>
    %19 = tpu.matmul %14, %13, %cst_19 {dimension_numbers = #tpu.dot_dimension_numbers<[1], [0], [0], [1], [0, 0, 1, 1], [], []>} : vector<8x128xbf16>, vector<128x512xbf16>, vector<8x512xf32> -> vector<8x512xf32>
    %20 = arith.addf %18, %19 : vector<8x512xf32>
    %21 = vector.extract_strided_slice %20 {offsets = [0, 0], sizes = [8, 384], strides = [1, 1]} : vector<8x512xf32> to vector<8x384xf32>
    %22 = arith.negf %21 : vector<8x384xf32>
    %23 = math.exp %22 : vector<8x384xf32>
    %cst_20 = arith.constant 1.000000e+00 : f32
    %24 = vector.broadcast %cst_20 : f32 to vector<8x384xf32>
    %25 = arith.addf %24, %23 : vector<8x384xf32>
    %26 = arith.divf %24, %25 : vector<8x384xf32>
    %27 = vector.extract_strided_slice %20 {offsets = [0, 384], sizes = [8, 128], strides = [1, 1]} : vector<8x512xf32> to vector<8x128xf32>
    %28 = math.tanh %27 : vector<8x128xf32>
    %29 = vector.extract_strided_slice %26 {offsets = [0, 0], sizes = [8, 128], strides = [1, 1]} : vector<8x384xf32> to vector<8x128xf32>
    %30 = vector.extract_strided_slice %26 {offsets = [0, 128], sizes = [8, 128], strides = [1, 1]} : vector<8x384xf32> to vector<8x128xf32>
    %31 = vector.extract_strided_slice %26 {offsets = [0, 256], sizes = [8, 128], strides = [1, 1]} : vector<8x384xf32> to vector<8x128xf32>
    %32 = arith.mulf %30, %15 : vector<8x128xf32>
    %33 = arith.mulf %29, %28 : vector<8x128xf32>
    %34 = arith.addf %32, %33 : vector<8x128xf32>
    %35 = math.tanh %34 : vector<8x128xf32>
    %36 = arith.mulf %31, %35 : vector<8x128xf32>
    %37 = arith.truncf %36 : vector<8x128xf32> to vector<8x128xbf16>
    %38 = arith.index_cast %c0_i32_16 : i32 to index
    %c0_21 = arith.constant 0 : index
    %c0_22 = arith.constant 0 : index
    %39 = vector.load %arg6[%38, %c0_21, %c0_22] : memref<8x8x128xbf16, #tpu.memory_space<vmem>>, vector<1x8x128xbf16>
    %40 = vector.shape_cast %39 : vector<1x8x128xbf16> to vector<8x128xbf16>
    %41 = vector.shape_cast %37 : vector<8x128xbf16> to vector<1x8x128xbf16>
    tpu.vector_store %arg6[%38, %c0_21, %c0_22], %41 {strides = array<i32>} : memref<8x8x128xbf16, #tpu.memory_space<vmem>>, vector<1x8x128xbf16>,
    %c1_i32 = arith.constant 1 : i32
    %42 = arith.index_cast %c1_i32 : i32 to index
    %c0_23 = arith.constant 0 : index
    %c0_24 = arith.constant 0 : index
    %43 = vector.load %arg9[%42, %c0_23, %c0_24] : memref<8x8x512xf32, #tpu.memory_space<vmem>>, vector<1x8x512xf32>
    %44 = vector.shape_cast %43 : vector<1x8x512xf32> to vector<8x512xf32>
    %cst_25 = arith.constant dense<0.000000e+00> : vector<8x512xf32>
    %45 = tpu.matmul %37, %13, %cst_25 {dimension_numbers = #tpu.dot_dimension_numbers<[1], [0], [0], [1], [0, 0, 1, 1], [], []>} : vector<8x128xbf16>, vector<128x512xbf16>, vector<8x512xf32> -> vector<8x512xf32>
    %46 = arith.addf %44, %45 : vector<8x512xf32>
    %47 = vector.extract_strided_slice %46 {offsets = [0, 0], sizes = [8, 384], strides = [1, 1]} : vector<8x512xf32> to vector<8x384xf32>
    %48 = arith.negf %47 : vector<8x384xf32>
    %49 = math.exp %48 : vector<8x384xf32>
    %cst_26 = arith.constant 1.000000e+00 : f32
    %50 = vector.broadcast %cst_26 : f32 to vector<8x384xf32>
    %51 = arith.addf %50, %49 : vector<8x384xf32>
    %52 = arith.divf %50, %51 : vector<8x384xf32>
    %53 = vector.extract_strided_slice %46 {offsets = [0, 384], sizes = [8, 128], strides = [1, 1]} : vector<8x512xf32> to vector<8x128xf32>
    %54 = math.tanh %53 : vector<8x128xf32>
    %55 = vector.extract_strided_slice %52 {offsets = [0, 0], sizes = [8, 128], strides = [1, 1]} : vector<8x384xf32> to vector<8x128xf32>
    %56 = vector.extract_strided_slice %52 {offsets = [0, 128], sizes = [8, 128], strides = [1, 1]} : vector<8x384xf32> to vector<8x128xf32>
    %57 = vector.extract_strided_slice %52 {offsets = [0, 256], sizes = [8, 128], strides = [1, 1]} : vector<8x384xf32> to vector<8x128xf32>
    %58 = arith.mulf %56, %34 : vector<8x128xf32>
    %59 = arith.mulf %55, %54 : vector<8x128xf32>
    %60 = arith.addf %58, %59 : vector<8x128xf32>
    %61 = math.tanh %60 : vector<8x128xf32>
    %62 = arith.mulf %57, %61 : vector<8x128xf32>
    %63 = arith.truncf %62 : vector<8x128xf32> to vector<8x128xbf16>
    %64 = arith.index_cast %c1_i32 : i32 to index
    %c0_27 = arith.constant 0 : index
    %c0_28 = arith.constant 0 : index
    %65 = vector.load %arg6[%64, %c0_27, %c0_28] : memref<8x8x128xbf16, #tpu.memory_space<vmem>>, vector<1x8x128xbf16>
    %66 = vector.shape_cast %65 : vector<1x8x128xbf16> to vector<8x128xbf16>
    %67 = vector.shape_cast %63 : vector<8x128xbf16> to vector<1x8x128xbf16>
    tpu.vector_store %arg6[%64, %c0_27, %c0_28], %67 {strides = array<i32>} : memref<8x8x128xbf16, #tpu.memory_space<vmem>>, vector<1x8x128xbf16>,
    %c2_i32 = arith.constant 2 : i32
    %68 = arith.index_cast %c2_i32 : i32 to index
    %c0_29 = arith.constant 0 : index
    %c0_30 = arith.constant 0 : index
    %69 = vector.load %arg9[%68, %c0_29, %c0_30] : memref<8x8x512xf32, #tpu.memory_space<vmem>>, vector<1x8x512xf32>
    %70 = vector.shape_cast %69 : vector<1x8x512xf32> to vector<8x512xf32>
    %cst_31 = arith.constant dense<0.000000e+00> : vector<8x512xf32>
    %71 = tpu.matmul %63, %13, %cst_31 {dimension_numbers = #tpu.dot_dimension_numbers<[1], [0], [0], [1], [0, 0, 1, 1], [], []>} : vector<8x128xbf16>, vector<128x512xbf16>, vector<8x512xf32> -> vector<8x512xf32>
    %72 = arith.addf %70, %71 : vector<8x512xf32>
    %73 = vector.extract_strided_slice %72 {offsets = [0, 0], sizes = [8, 384], strides = [1, 1]} : vector<8x512xf32> to vector<8x384xf32>
    %74 = arith.negf %73 : vector<8x384xf32>
    %75 = math.exp %74 : vector<8x384xf32>
    %cst_32 = arith.constant 1.000000e+00 : f32
    %76 = vector.broadcast %cst_32 : f32 to vector<8x384xf32>
    %77 = arith.addf %76, %75 : vector<8x384xf32>
    %78 = arith.divf %76, %77 : vector<8x384xf32>
    %79 = vector.extract_strided_slice %72 {offsets = [0, 384], sizes = [8, 128], strides = [1, 1]} : vector<8x512xf32> to vector<8x128xf32>
    %80 = math.tanh %79 : vector<8x128xf32>
    %81 = vector.extract_strided_slice %78 {offsets = [0, 0], sizes = [8, 128], strides = [1, 1]} : vector<8x384xf32> to vector<8x128xf32>
    %82 = vector.extract_strided_slice %78 {offsets = [0, 128], sizes = [8, 128], strides = [1, 1]} : vector<8x384xf32> to vector<8x128xf32>
    %83 = vector.extract_strided_slice %78 {offsets = [0, 256], sizes = [8, 128], strides = [1, 1]} : vector<8x384xf32> to vector<8x128xf32>
    %84 = arith.mulf %82, %60 : vector<8x128xf32>
    %85 = arith.mulf %81, %80 : vector<8x128xf32>
    %86 = arith.addf %84, %85 : vector<8x128xf32>
    %87 = math.tanh %86 : vector<8x128xf32>
    %88 = arith.mulf %83, %87 : vector<8x128xf32>
    %89 = arith.truncf %88 : vector<8x128xf32> to vector<8x128xbf16>
    %90 = arith.index_cast %c2_i32 : i32 to index
    %c0_33 = arith.constant 0 : index
    %c0_34 = arith.constant 0 : index
    %91 = vector.load %arg6[%90, %c0_33, %c0_34] : memref<8x8x128xbf16, #tpu.memory_space<vmem>>, vector<1x8x128xbf16>
    %92 = vector.shape_cast %91 : vector<1x8x128xbf16> to vector<8x128xbf16>
    %93 = vector.shape_cast %89 : vector<8x128xbf16> to vector<1x8x128xbf16>
    tpu.vector_store %arg6[%90, %c0_33, %c0_34], %93 {strides = array<i32>} : memref<8x8x128xbf16, #tpu.memory_space<vmem>>, vector<1x8x128xbf16>,
    %c3_i32 = arith.constant 3 : i32
    %94 = arith.index_cast %c3_i32 : i32 to index
    %c0_35 = arith.constant 0 : index
    %c0_36 = arith.constant 0 : index
    %95 = vector.load %arg9[%94, %c0_35, %c0_36] : memref<8x8x512xf32, #tpu.memory_space<vmem>>, vector<1x8x512xf32>
    %96 = vector.shape_cast %95 : vector<1x8x512xf32> to vector<8x512xf32>
    %cst_37 = arith.constant dense<0.000000e+00> : vector<8x512xf32>
    %97 = tpu.matmul %89, %13, %cst_37 {dimension_numbers = #tpu.dot_dimension_numbers<[1], [0], [0], [1], [0, 0, 1, 1], [], []>} : vector<8x128xbf16>, vector<128x512xbf16>, vector<8x512xf32> -> vector<8x512xf32>
    %98 = arith.addf %96, %97 : vector<8x512xf32>
    %99 = vector.extract_strided_slice %98 {offsets = [0, 0], sizes = [8, 384], strides = [1, 1]} : vector<8x512xf32> to vector<8x384xf32>
    %100 = arith.negf %99 : vector<8x384xf32>
    %101 = math.exp %100 : vector<8x384xf32>
    %cst_38 = arith.constant 1.000000e+00 : f32
    %102 = vector.broadcast %cst_38 : f32 to vector<8x384xf32>
    %103 = arith.addf %102, %101 : vector<8x384xf32>
    %104 = arith.divf %102, %103 : vector<8x384xf32>
    %105 = vector.extract_strided_slice %98 {offsets = [0, 384], sizes = [8, 128], strides = [1, 1]} : vector<8x512xf32> to vector<8x128xf32>
    %106 = math.tanh %105 : vector<8x128xf32>
    %107 = vector.extract_strided_slice %104 {offsets = [0, 0], sizes = [8, 128], strides = [1, 1]} : vector<8x384xf32> to vector<8x128xf32>
    %108 = vector.extract_strided_slice %104 {offsets = [0, 128], sizes = [8, 128], strides = [1, 1]} : vector<8x384xf32> to vector<8x128xf32>
    %109 = vector.extract_strided_slice %104 {offsets = [0, 256], sizes = [8, 128], strides = [1, 1]} : vector<8x384xf32> to vector<8x128xf32>
    %110 = arith.mulf %108, %86 : vector<8x128xf32>
    %111 = arith.mulf %107, %106 : vector<8x128xf32>
    %112 = arith.addf %110, %111 : vector<8x128xf32>
    %113 = math.tanh %112 : vector<8x128xf32>
    %114 = arith.mulf %109, %113 : vector<8x128xf32>
    %115 = arith.truncf %114 : vector<8x128xf32> to vector<8x128xbf16>
    %116 = arith.index_cast %c3_i32 : i32 to index
    %c0_39 = arith.constant 0 : index
    %c0_40 = arith.constant 0 : index
    %117 = vector.load %arg6[%116, %c0_39, %c0_40] : memref<8x8x128xbf16, #tpu.memory_space<vmem>>, vector<1x8x128xbf16>
    %118 = vector.shape_cast %117 : vector<1x8x128xbf16> to vector<8x128xbf16>
    %119 = vector.shape_cast %115 : vector<8x128xbf16> to vector<1x8x128xbf16>
    tpu.vector_store %arg6[%116, %c0_39, %c0_40], %119 {strides = array<i32>} : memref<8x8x128xbf16, #tpu.memory_space<vmem>>, vector<1x8x128xbf16>,
    %c4_i32 = arith.constant 4 : i32
    %120 = arith.index_cast %c4_i32 : i32 to index
    %c0_41 = arith.constant 0 : index
    %c0_42 = arith.constant 0 : index
    %121 = vector.load %arg9[%120, %c0_41, %c0_42] : memref<8x8x512xf32, #tpu.memory_space<vmem>>, vector<1x8x512xf32>
    %122 = vector.shape_cast %121 : vector<1x8x512xf32> to vector<8x512xf32>
    %cst_43 = arith.constant dense<0.000000e+00> : vector<8x512xf32>
    %123 = tpu.matmul %115, %13, %cst_43 {dimension_numbers = #tpu.dot_dimension_numbers<[1], [0], [0], [1], [0, 0, 1, 1], [], []>} : vector<8x128xbf16>, vector<128x512xbf16>, vector<8x512xf32> -> vector<8x512xf32>
    %124 = arith.addf %122, %123 : vector<8x512xf32>
    %125 = vector.extract_strided_slice %124 {offsets = [0, 0], sizes = [8, 384], strides = [1, 1]} : vector<8x512xf32> to vector<8x384xf32>
    %126 = arith.negf %125 : vector<8x384xf32>
    %127 = math.exp %126 : vector<8x384xf32>
    %cst_44 = arith.constant 1.000000e+00 : f32
    %128 = vector.broadcast %cst_44 : f32 to vector<8x384xf32>
    %129 = arith.addf %128, %127 : vector<8x384xf32>
    %130 = arith.divf %128, %129 : vector<8x384xf32>
    %131 = vector.extract_strided_slice %124 {offsets = [0, 384], sizes = [8, 128], strides = [1, 1]} : vector<8x512xf32> to vector<8x128xf32>
    %132 = math.tanh %131 : vector<8x128xf32>
    %133 = vector.extract_strided_slice %130 {offsets = [0, 0], sizes = [8, 128], strides = [1, 1]} : vector<8x384xf32> to vector<8x128xf32>
    %134 = vector.extract_strided_slice %130 {offsets = [0, 128], sizes = [8, 128], strides = [1, 1]} : vector<8x384xf32> to vector<8x128xf32>
    %135 = vector.extract_strided_slice %130 {offsets = [0, 256], sizes = [8, 128], strides = [1, 1]} : vector<8x384xf32> to vector<8x128xf32>
    %136 = arith.mulf %134, %112 : vector<8x128xf32>
    %137 = arith.mulf %133, %132 : vector<8x128xf32>
    %138 = arith.addf %136, %137 : vector<8x128xf32>
    %139 = math.tanh %138 : vector<8x128xf32>
    %140 = arith.mulf %135, %139 : vector<8x128xf32>
    %141 = arith.truncf %140 : vector<8x128xf32> to vector<8x128xbf16>
    %142 = arith.index_cast %c4_i32 : i32 to index
    %c0_45 = arith.constant 0 : index
    %c0_46 = arith.constant 0 : index
    %143 = vector.load %arg6[%142, %c0_45, %c0_46] : memref<8x8x128xbf16, #tpu.memory_space<vmem>>, vector<1x8x128xbf16>
    %144 = vector.shape_cast %143 : vector<1x8x128xbf16> to vector<8x128xbf16>
    %145 = vector.shape_cast %141 : vector<8x128xbf16> to vector<1x8x128xbf16>
    tpu.vector_store %arg6[%142, %c0_45, %c0_46], %145 {strides = array<i32>} : memref<8x8x128xbf16, #tpu.memory_space<vmem>>, vector<1x8x128xbf16>,
    %c5_i32 = arith.constant 5 : i32
    %146 = arith.index_cast %c5_i32 : i32 to index
    %c0_47 = arith.constant 0 : index
    %c0_48 = arith.constant 0 : index
    %147 = vector.load %arg9[%146, %c0_47, %c0_48] : memref<8x8x512xf32, #tpu.memory_space<vmem>>, vector<1x8x512xf32>
    %148 = vector.shape_cast %147 : vector<1x8x512xf32> to vector<8x512xf32>
    %cst_49 = arith.constant dense<0.000000e+00> : vector<8x512xf32>
    %149 = tpu.matmul %141, %13, %cst_49 {dimension_numbers = #tpu.dot_dimension_numbers<[1], [0], [0], [1], [0, 0, 1, 1], [], []>} : vector<8x128xbf16>, vector<128x512xbf16>, vector<8x512xf32> -> vector<8x512xf32>
    %150 = arith.addf %148, %149 : vector<8x512xf32>
    %151 = vector.extract_strided_slice %150 {offsets = [0, 0], sizes = [8, 384], strides = [1, 1]} : vector<8x512xf32> to vector<8x384xf32>
    %152 = arith.negf %151 : vector<8x384xf32>
    %153 = math.exp %152 : vector<8x384xf32>
    %cst_50 = arith.constant 1.000000e+00 : f32
    %154 = vector.broadcast %cst_50 : f32 to vector<8x384xf32>
    %155 = arith.addf %154, %153 : vector<8x384xf32>
    %156 = arith.divf %154, %155 : vector<8x384xf32>
    %157 = vector.extract_strided_slice %150 {offsets = [0, 384], sizes = [8, 128], strides = [1, 1]} : vector<8x512xf32> to vector<8x128xf32>
    %158 = math.tanh %157 : vector<8x128xf32>
    %159 = vector.extract_strided_slice %156 {offsets = [0, 0], sizes = [8, 128], strides = [1, 1]} : vector<8x384xf32> to vector<8x128xf32>
    %160 = vector.extract_strided_slice %156 {offsets = [0, 128], sizes = [8, 128], strides = [1, 1]} : vector<8x384xf32> to vector<8x128xf32>
    %161 = vector.extract_strided_slice %156 {offsets = [0, 256], sizes = [8, 128], strides = [1, 1]} : vector<8x384xf32> to vector<8x128xf32>
    %162 = arith.mulf %160, %138 : vector<8x128xf32>
    %163 = arith.mulf %159, %158 : vector<8x128xf32>
    %164 = arith.addf %162, %163 : vector<8x128xf32>
    %165 = math.tanh %164 : vector<8x128xf32>
    %166 = arith.mulf %161, %165 : vector<8x128xf32>
    %167 = arith.truncf %166 : vector<8x128xf32> to vector<8x128xbf16>
    %168 = arith.index_cast %c5_i32 : i32 to index
    %c0_51 = arith.constant 0 : index
    %c0_52 = arith.constant 0 : index
    %169 = vector.load %arg6[%168, %c0_51, %c0_52] : memref<8x8x128xbf16, #tpu.memory_space<vmem>>, vector<1x8x128xbf16>
    %170 = vector.shape_cast %169 : vector<1x8x128xbf16> to vector<8x128xbf16>
    %171 = vector.shape_cast %167 : vector<8x128xbf16> to vector<1x8x128xbf16>
    tpu.vector_store %arg6[%168, %c0_51, %c0_52], %171 {strides = array<i32>} : memref<8x8x128xbf16, #tpu.memory_space<vmem>>, vector<1x8x128xbf16>,
    %c6_i32 = arith.constant 6 : i32
    %172 = arith.index_cast %c6_i32 : i32 to index
    %c0_53 = arith.constant 0 : index
    %c0_54 = arith.constant 0 : index
    %173 = vector.load %arg9[%172, %c0_53, %c0_54] : memref<8x8x512xf32, #tpu.memory_space<vmem>>, vector<1x8x512xf32>
    %174 = vector.shape_cast %173 : vector<1x8x512xf32> to vector<8x512xf32>
    %cst_55 = arith.constant dense<0.000000e+00> : vector<8x512xf32>
    %175 = tpu.matmul %167, %13, %cst_55 {dimension_numbers = #tpu.dot_dimension_numbers<[1], [0], [0], [1], [0, 0, 1, 1], [], []>} : vector<8x128xbf16>, vector<128x512xbf16>, vector<8x512xf32> -> vector<8x512xf32>
    %176 = arith.addf %174, %175 : vector<8x512xf32>
    %177 = vector.extract_strided_slice %176 {offsets = [0, 0], sizes = [8, 384], strides = [1, 1]} : vector<8x512xf32> to vector<8x384xf32>
    %178 = arith.negf %177 : vector<8x384xf32>
    %179 = math.exp %178 : vector<8x384xf32>
    %cst_56 = arith.constant 1.000000e+00 : f32
    %180 = vector.broadcast %cst_56 : f32 to vector<8x384xf32>
    %181 = arith.addf %180, %179 : vector<8x384xf32>
    %182 = arith.divf %180, %181 : vector<8x384xf32>
    %183 = vector.extract_strided_slice %176 {offsets = [0, 384], sizes = [8, 128], strides = [1, 1]} : vector<8x512xf32> to vector<8x128xf32>
    %184 = math.tanh %183 : vector<8x128xf32>
    %185 = vector.extract_strided_slice %182 {offsets = [0, 0], sizes = [8, 128], strides = [1, 1]} : vector<8x384xf32> to vector<8x128xf32>
    %186 = vector.extract_strided_slice %182 {offsets = [0, 128], sizes = [8, 128], strides = [1, 1]} : vector<8x384xf32> to vector<8x128xf32>
    %187 = vector.extract_strided_slice %182 {offsets = [0, 256], sizes = [8, 128], strides = [1, 1]} : vector<8x384xf32> to vector<8x128xf32>
    %188 = arith.mulf %186, %164 : vector<8x128xf32>
    %189 = arith.mulf %185, %184 : vector<8x128xf32>
    %190 = arith.addf %188, %189 : vector<8x128xf32>
    %191 = math.tanh %190 : vector<8x128xf32>
    %192 = arith.mulf %187, %191 : vector<8x128xf32>
    %193 = arith.truncf %192 : vector<8x128xf32> to vector<8x128xbf16>
    %194 = arith.index_cast %c6_i32 : i32 to index
    %c0_57 = arith.constant 0 : index
    %c0_58 = arith.constant 0 : index
    %195 = vector.load %arg6[%194, %c0_57, %c0_58] : memref<8x8x128xbf16, #tpu.memory_space<vmem>>, vector<1x8x128xbf16>
    %196 = vector.shape_cast %195 : vector<1x8x128xbf16> to vector<8x128xbf16>
    %197 = vector.shape_cast %193 : vector<8x128xbf16> to vector<1x8x128xbf16>
    tpu.vector_store %arg6[%194, %c0_57, %c0_58], %197 {strides = array<i32>} : memref<8x8x128xbf16, #tpu.memory_space<vmem>>, vector<1x8x128xbf16>,
    %c7_i32 = arith.constant 7 : i32
    %198 = arith.index_cast %c7_i32 : i32 to index
    %c0_59 = arith.constant 0 : index
    %c0_60 = arith.constant 0 : index
    %199 = vector.load %arg9[%198, %c0_59, %c0_60] : memref<8x8x512xf32, #tpu.memory_space<vmem>>, vector<1x8x512xf32>
    %200 = vector.shape_cast %199 : vector<1x8x512xf32> to vector<8x512xf32>
    %cst_61 = arith.constant dense<0.000000e+00> : vector<8x512xf32>
    %201 = tpu.matmul %193, %13, %cst_61 {dimension_numbers = #tpu.dot_dimension_numbers<[1], [0], [0], [1], [0, 0, 1, 1], [], []>} : vector<8x128xbf16>, vector<128x512xbf16>, vector<8x512xf32> -> vector<8x512xf32>
    %202 = arith.addf %200, %201 : vector<8x512xf32>
    %203 = vector.extract_strided_slice %202 {offsets = [0, 0], sizes = [8, 384], strides = [1, 1]} : vector<8x512xf32> to vector<8x384xf32>
    %204 = arith.negf %203 : vector<8x384xf32>
    %205 = math.exp %204 : vector<8x384xf32>
    %cst_62 = arith.constant 1.000000e+00 : f32
    %206 = vector.broadcast %cst_62 : f32 to vector<8x384xf32>
    %207 = arith.addf %206, %205 : vector<8x384xf32>
    %208 = arith.divf %206, %207 : vector<8x384xf32>
    %209 = vector.extract_strided_slice %202 {offsets = [0, 384], sizes = [8, 128], strides = [1, 1]} : vector<8x512xf32> to vector<8x128xf32>
    %210 = math.tanh %209 : vector<8x128xf32>
    %211 = vector.extract_strided_slice %208 {offsets = [0, 0], sizes = [8, 128], strides = [1, 1]} : vector<8x384xf32> to vector<8x128xf32>
    %212 = vector.extract_strided_slice %208 {offsets = [0, 128], sizes = [8, 128], strides = [1, 1]} : vector<8x384xf32> to vector<8x128xf32>
    %213 = vector.extract_strided_slice %208 {offsets = [0, 256], sizes = [8, 128], strides = [1, 1]} : vector<8x384xf32> to vector<8x128xf32>
    %214 = arith.mulf %212, %190 : vector<8x128xf32>
    %215 = arith.mulf %211, %210 : vector<8x128xf32>
    %216 = arith.addf %214, %215 : vector<8x128xf32>
    %217 = math.tanh %216 : vector<8x128xf32>
    %218 = arith.mulf %213, %217 : vector<8x128xf32>
    %219 = arith.truncf %218 : vector<8x128xf32> to vector<8x128xbf16>
    %220 = arith.index_cast %c7_i32 : i32 to index
    %c0_63 = arith.constant 0 : index
    %c0_64 = arith.constant 0 : index
    %221 = vector.load %arg6[%220, %c0_63, %c0_64] : memref<8x8x128xbf16, #tpu.memory_space<vmem>>, vector<1x8x128xbf16>
    %222 = vector.shape_cast %221 : vector<1x8x128xbf16> to vector<8x128xbf16>
    %223 = vector.shape_cast %219 : vector<8x128xbf16> to vector<1x8x128xbf16>
    tpu.vector_store %arg6[%220, %c0_63, %c0_64], %223 {strides = array<i32>} : memref<8x8x128xbf16, #tpu.memory_space<vmem>>, vector<1x8x128xbf16>,
    %c8_i32 = arith.constant 8 : i32
    %c0_65 = arith.constant 0 : index
    %c0_66 = arith.constant 0 : index
    %224 = vector.load %arg10[%c0_65, %c0_66] : memref<8x128xbf16, #tpu.memory_space<vmem>>, vector<8x128xbf16>
    tpu.vector_store %arg10[%c0_65, %c0_66], %219 {strides = array<i32>} : memref<8x128xbf16, #tpu.memory_space<vmem>>, vector<8x128xbf16>,
    %c0_67 = arith.constant 0 : index
    %c0_68 = arith.constant 0 : index
    %225 = vector.load %arg11[%c0_67, %c0_68] : memref<8x128xf32, #tpu.memory_space<vmem>>, vector<8x128xf32>
    tpu.vector_store %arg11[%c0_67, %c0_68], %216 {strides = array<i32>} : memref<8x128xf32, #tpu.memory_space<vmem>>, vector<8x128xf32>,
    %c0_i32_69 = arith.constant 0 : i32
    %226 = arith.cmpi eq, %arg1, %c0_i32_69 : i32
    %227 = arith.extui %226 : i1 to i32
    %c0_i32_70 = arith.constant 0 : i32
    %228 = arith.cmpi ne, %227, %c0_i32_70 : i32
    scf.if %228 {
      %c0_71 = arith.constant 0 : index
      %c0_72 = arith.constant 0 : index
      %229 = vector.load %arg7[%c0_71, %c0_72] : memref<8x128xbf16, #tpu.memory_space<vmem>>, vector<8x128xbf16>
      tpu.vector_store %arg7[%c0_71, %c0_72], %219 {strides = array<i32>} : memref<8x128xbf16, #tpu.memory_space<vmem>>, vector<8x128xbf16>,
      %c0_73 = arith.constant 0 : index
      %c0_74 = arith.constant 0 : index
      %230 = vector.load %arg8[%c0_73, %c0_74] : memref<8x128xf32, #tpu.memory_space<vmem>>, vector<8x128xf32>
      tpu.vector_store %arg8[%c0_73, %c0_74], %216 {strides = array<i32>} : memref<8x128xf32, #tpu.memory_space<vmem>>, vector<8x128xf32>,
    } else {
    }
    return
  }
  func.func @transform_0(%arg0: i32, %arg1: i32) -> (i32, i32, i32) {
    %c0_i32 = arith.constant 0 : i32
    %c0_i32_0 = arith.constant 0 : i32
    return %arg1, %arg0, %c0_i32 : i32, i32, i32
  }
  func.func @transform_1(%arg0: i32, %arg1: i32) -> (i32, i32) {
    %c0_i32 = arith.constant 0 : i32
    %c0_i32_0 = arith.constant 0 : i32
    %c0_i32_1 = arith.constant 0 : i32
    return %c0_i32, %c0_i32_0 : i32, i32
  }
  func.func @transform_2(%arg0: i32, %arg1: i32) -> (i32, i32) {
    %c0_i32 = arith.constant 0 : i32
    %c0_i32_0 = arith.constant 0 : i32
    %c0_i32_1 = arith.constant 0 : i32
    return %c0_i32, %c0_i32_0 : i32, i32
  }
  func.func @transform_3(%arg0: i32, %arg1: i32) -> (i32, i32) {
    %c0_i32 = arith.constant 0 : i32
    %c0_i32_0 = arith.constant 0 : i32
    %c0_i32_1 = arith.constant 0 : i32
    return %c0_i32, %c0_i32_0 : i32, i32
  }
  func.func @transform_4(%arg0: i32, %arg1: i32) -> (i32, i32, i32) {
    %c0_i32 = arith.constant 0 : i32
    %c0_i32_0 = arith.constant 0 : i32
    return %arg1, %arg0, %c0_i32 : i32, i32, i32
  }
  func.func @transform_5(%arg0: i32, %arg1: i32) -> (i32, i32) {
    %c0_i32 = arith.constant 0 : i32
    %c0_i32_0 = arith.constant 0 : i32
    return %arg0, %c0_i32 : i32, i32
  }
  func.func @transform_6(%arg0: i32, %arg1: i32) -> (i32, i32) {
    %c0_i32 = arith.constant 0 : i32
    %c0_i32_0 = arith.constant 0 : i32
    return %arg0, %c0_i32 : i32, i32
  }
}

</mosaic_0001>

<bundles_post_ra>
// kernel: tpu_custom_call.1
= control target key start
LH: loop header
LB: loop body
LE: loop exit
PB: predicated region body
PF: predicated region fallthrough
CT: control target
= control target key end

     0   :  { %12 = vsyncpa [#allocation6], 0  ;;  %s2707_s0 = inlined_call_operand.hbm [shape: bf16[8,8,32], index: 0, kind: input, shape index: {}]   ;;  %s2708_s1 = inlined_call_operand.hbm [shape: bf16[32,512], index: 1, kind: input, shape index: {}]   ;;  %s2709_s2 = inlined_call_operand.hbm [shape: bf16[128,512], index: 2, kind: input, shape index: {}]   ;;  %s2710_s3 = inlined_call_operand.vmem [shape: f32[1,512], index: 3, kind: input, shape index: {}]   ;;  %s2711_s4 = inlined_call_operand.hbm [shape: bf16[8,8,128], index: 4, kind: output, shape index: {0}]   ;;  %s2712_s5 = inlined_call_operand.hbm [shape: bf16[8,128], index: 5, kind: output, shape index: {1}]   ;;  %s2713_s6 = inlined_call_operand.hbm [shape: f32[8,128], index: 6, kind: output, shape index: {2}]  }
   0x1   :  { %13 = vsyncpa [#allocation9], 0 }
   0x2   :  { %14 = vsyncpa [#allocation7], 0 }
   0x3   :  { %15 = vsyncpa [#allocation13], 0  ;;  %s2030_s21 = smov [#allocation8]   ;;  %s1890_s25 = scalar_lea.hbm %s2708_s1, 1024 }
   0x4   :  { %s33_s22 = sshll.u32 %s2030_s21, 4  ;;  %p1891_p0 = scmp.ne.s32.totalorder %s2708_s1, %s1890_s25  ;;  %s34_s22 = int_to_ptr.vmem [resolvable:$true] %s33_s22 }
   0x5   :  { %p1894_p1 = scmp.lt.u32.totalorder %s1890_s25, %s2708_s1 }
   0x7   :  { %p1896_p2 = pnand %p1894_p1, %p1891_p0 }
   0x9   :  { %1899 = shalt.err (!%p1896_p2)
}
   0xa   :  { %s1900_s30 = scalar_lea.vmem %s34_s22, 1024  ;;  %p1905_p4 = scmp.lt.s32.totalorder %s34_s22, %s34_s22 }
   0xb   :  { %p1901_p3 = scmp.ne.s32.totalorder %s34_s22, %s1900_s30  ;;  %p1906_p5 = scmp.lt.s32.totalorder %s1900_s30, %s1900_s30 }
   0xd   :  { %p1907_p6 = por %p1906_p5, %p1905_p4 }
   0xf   :  { %p1908_p7 = pnand %p1907_p6, %p1901_p3 }
  0x11   :  { %1911 = shalt.err (!%p1908_p7)
}
  0x12   :  { %s2031_s7 = smov 256   ;;  %s2032_s8 = smov 16  }
  0x13   :  { %39 = dma.hbm_to_vmem [thread:$0]  %s2708_s1, 1024, %s34_s22, [#allocation9], %s2031_s7, %s2031_s7, %s2032_s8  }
  0x14   :  { %s2033_s11 = smov [#allocation5]   ;;  %s1912_s15 = scalar_lea.hbm %s2707_s0, 512 }
  0x15   :  { %s21_s12 = sshll.u32 %s2033_s11, 4  ;;  %p1913_p8 = scmp.ne.s32.totalorder %s2707_s0, %s1912_s15  ;;  %s22_s12 = int_to_ptr.vmem [resolvable:$true] %s21_s12 }
  0x16   :  { %p1916_p9 = scmp.lt.u32.totalorder %s1912_s15, %s2707_s0 }
  0x18   :  { %p1918_p10 = pnand %p1916_p9, %p1913_p8 }
  0x1a   :  { %1921 = shalt.err (!%p1918_p10)
}
  0x1b   :  { %s1922_s20 = scalar_lea.vmem %s22_s12, 512  ;;  %p1927_p12 = scmp.lt.s32.totalorder %s22_s12, %s22_s12 }
  0x1c   :  { %p1923_p11 = scmp.ne.s32.totalorder %s22_s12, %s1922_s20  ;;  %p1928_p13 = scmp.lt.s32.totalorder %s1922_s20, %s1922_s20 }
  0x1e   :  { %p1929_p0 = por %p1928_p13, %p1927_p12 }
  0x20   :  { %p1930_p1 = pnand %p1929_p0, %p1923_p11 }
  0x22   :  { %1933 = shalt.err (!%p1930_p1)
}
  0x23   :  { %s2034_s1 = smov 64   ;;  %s2035_s21 = smov 4  }
  0x24   :  { %27 = dma.hbm_to_vmem [thread:$0]  %s2707_s0, 512, %s22_s12, [#allocation6], %s2034_s1, %s2034_s1, %s2035_s21  }
  0x25   :  { %s2036_s24 = smov [#allocation10]   ;;  %s1934_s28 = scalar_lea.hbm %s2709_s2, 4096 }
  0x26   :  { %s45_s25 = sshll.u32 %s2036_s24, 4  ;;  %p1935_p2 = scmp.ne.s32.totalorder %s2709_s2, %s1934_s28  ;;  %s46_s25 = int_to_ptr.vmem [resolvable:$true] %s45_s25 }
  0x27   :  { %p1938_p3 = scmp.lt.u32.totalorder %s1934_s28, %s2709_s2 }
  0x29   :  { %p1940_p4 = pnand %p1938_p3, %p1935_p2 }
  0x2b   :  { %1943 = shalt.err (!%p1940_p4)
}
  0x2c   :  { %s1944_s11 = scalar_lea.vmem %s46_s25, 4096  ;;  %p1949_p6 = scmp.lt.s32.totalorder %s46_s25, %s46_s25 }
  0x2d   :  { %p1945_p5 = scmp.ne.s32.totalorder %s46_s25, %s1944_s11  ;;  %p1950_p7 = scmp.lt.s32.totalorder %s1944_s11, %s1944_s11 }
  0x2f   :  { %p1951_p8 = por %p1950_p7, %p1949_p6 }
  0x31   :  { %p1952_p9 = pnand %p1951_p8, %p1945_p5 }
  0x33   :  { %1955 = shalt.err (!%p1952_p9)
}
  0x34   :  { %51 = dma.hbm_to_vmem [thread:$0]  %s2709_s2, 4096, %s46_s25, [#allocation9], %s2031_s7, %s2031_s7, %s2032_s8  }
  0x35   :  { %2022 = dma.done.wait [#allocation6], 512  }
  0x36   :  { %2023 = vsyncadd [#allocation6], 4294966784 }
  0x37   :  { %2024 = dma.done.wait [#allocation9], 5120  }
  0x38   :  { %2025 = vsyncadd [#allocation9], 4294962176  ;;  %v2714_v0 = vmov 0   ;;  %v1666_v1 = vld [vmem:[#allocation8 + $0x4] ss:$16 sps:$4 sm:$0xff]   ;;  %vm146_vm0 = vcmask 261120   ;;  %v307_v46 = vlaneseq }
  0x39   :  { %191 = vmatprep.mubr.bf16.mxu0 %v2714_v0  ;;  %68 = vst [vmem:[#allocation3] sm:$0xf] %v2714_v0  ;;  %264 = vmatprep.mubr.bf16.mxu1 %v2714_v0  ;;  %v1668_v2 = vld [vmem:[#allocation8 + $0xc] ss:$16 sps:$4 sm:$0xff]   ;;  %v1670_v3 = vld [vmem:[#allocation8] ss:$16 sps:$4 sm:$0xff]  }
  0x3a   :  { %159 = vmatprep.subr.bf16.mxu0 %v1666_v1  ;;  %v1671_v4 = vld [vmem:[#allocation8 + $0x8] ss:$16 sps:$4 sm:$0xff]   ;;  %232 = vmatprep.subr.bf16.mxu1 %v1668_v2  ;;  %v1672_v5 = vld [vmem:[#allocation8 + $0x24] ss:$16 sps:$4 sm:$0xff]   ;;  %v1674_v6 = vld [vmem:[#allocation8 + $0x2c] ss:$16 sps:$4 sm:$0xff]  }
  0x3b   :  { %160 = vmatpush1.bf16.msra.mxu0 %v1670_v3  ;;  %233 = vmatpush1.bf16.msra.mxu1 %v1671_v4  ;;  %v1676_v7 = vld [vmem:[#allocation8 + $0x20] ss:$16 sps:$4 sm:$0xff]   ;;  %v1677_v8 = vld [vmem:[#allocation8 + $0x28] ss:$16 sps:$4 sm:$0xff]   ;;  %v2124_v10 = vld [vmem:[#allocation10 + $0x4] ss:$16 sps:$4 sm:$0xff]  }
  0x3c   :  { %161 = vmatprep.subr.bf16.mxu0 %v1672_v5  ;;  %234 = vmatprep.subr.bf16.mxu1 %v1674_v6  ;;  %v1678_v9 = vld [vmem:[#allocation5] sm:$0xff]   ;;  %v2126_v11 = vld [vmem:[#allocation10 + $0xc] ss:$16 sps:$4 sm:$0xff]   ;;  %v2130_v13 = vld [vmem:[#allocation10 + $0x8] ss:$16 sps:$4 sm:$0xff]   ;;  %v308_v47 = vshrl.u32 %v307_v46, 7 }
  0x3d   :  { %v2128_v12 = vld [vmem:[#allocation10] ss:$16 sps:$4 sm:$0xff]   ;;  %v2133_v14 = vld [vmem:[#allocation10 + $0x24] ss:$16 sps:$4 sm:$0xff]   ;;  %v2136_v15 = vld [vmem:[#allocation10 + $0x2c] ss:$16 sps:$4 sm:$0xff]  }
  0x3e   :  { %v2140_v16 = vld [vmem:[#allocation10 + $0x20] ss:$16 sps:$4 sm:$0xff]   ;;  %v2144_v17 = vld [vmem:[#allocation10 + $0x28] ss:$16 sps:$4 sm:$0xff]   ;;  %v2148_v18 = vld [vmem:[#allocation10 + $0x44] ss:$16 sps:$4 sm:$0xff]  }
  0x3f   :  { %162 = vmatpush1.bf16.msra.mxu0 %v1676_v7  ;;  %235 = vmatpush1.bf16.msra.mxu1 %v1677_v8  ;;  %v1691_v19 = vld [vmem:[#allocation5 + $0x8] sm:$0xff]   ;;  %v2154_v21 = vld [vmem:[#allocation10 + $0x40] ss:$16 sps:$4 sm:$0xff]   ;;  %v2162_v23 = vld [vmem:[#allocation10 + $0x64] ss:$16 sps:$4 sm:$0xff]   ;;  %v317_v48 = vsub.s32 2, %v308_v47 }
  0x40   :  { %589 = vmatprep.subr.bf16.mxu0 %v2124_v10  ;;  %630 = vmatprep.subr.bf16.mxu1 %v2126_v11  ;;  %v2152_v20 = vld [vmem:[#allocation10 + $0x4c] ss:$16 sps:$4 sm:$0xff]   ;;  %v2158_v22 = vld [vmem:[#allocation10 + $0x48] ss:$16 sps:$4 sm:$0xff]   ;;  %v2168_v25 = vld [vmem:[#allocation10 + $0x60] ss:$16 sps:$4 sm:$0xff]  }
  0x41   :  { %v2164_v24 = vld [vmem:[#allocation10 + $0x6c] ss:$16 sps:$4 sm:$0xff]   ;;  %v2172_v26 = vld [vmem:[#allocation10 + $0x68] ss:$16 sps:$4 sm:$0xff]   ;;  %v2176_v27 = vld [vmem:[#allocation10 + $0x84] ss:$16 sps:$4 sm:$0xff]  }
  0x42   :  { %1591 = vmatmul.mubr.msk.bf16.vlgmr.msra.gmra.mrb[0].mxu0 %vm146_vm0, %v1678_v9  ;;  %1595 = vmatmul.mubr.msk.bf16.vlgmr.msra.gmra.mrb[0].mxu1 %vm146_vm0, %v1678_v9  ;;  %v2178_v28 = vld [vmem:[#allocation10 + $0x8c] ss:$16 sps:$4 sm:$0xff]   ;;  %v1704_v29 = vld [vmem:[#allocation5 + $0x10] sm:$0xff]   ;;  %v2184_v31 = vld [vmem:[#allocation10 + $0x88] ss:$16 sps:$4 sm:$0xff]   ;;  %v321_v49 = vsub.s32 3, %v308_v47 }
  0x43   :  { %590 = vmatpush1.bf16.msra.mxu0 %v2128_v12  ;;  %631 = vmatpush1.bf16.msra.mxu1 %v2130_v13  ;;  %v2182_v30 = vld [vmem:[#allocation10 + $0x80] ss:$16 sps:$4 sm:$0xff]   ;;  %v2188_v32 = vld [vmem:[#allocation10 + $0xa4] ss:$16 sps:$4 sm:$0xff]   ;;  %v2192_v33 = vld [vmem:[#allocation10 + $0xac] ss:$16 sps:$4 sm:$0xff]  }
  0x44   :  { %591 = vmatprep.subr.bf16.mxu0 %v2133_v14  ;;  %632 = vmatprep.subr.bf16.mxu1 %v2136_v15  ;;  %v2196_v34 = vld [vmem:[#allocation10 + $0xa0] ss:$16 sps:$4 sm:$0xff]   ;;  %v2198_v35 = vld [vmem:[#allocation10 + $0xa8] ss:$16 sps:$4 sm:$0xff]   ;;  %v2202_v36 = vld [vmem:[#allocation10 + $0xc4] ss:$16 sps:$4 sm:$0xff]  }
  0x45   :  { %201 = vmatprep.mubr.bf16.mxu0 %v2714_v0  ;;  %274 = vmatprep.mubr.bf16.mxu1 %v2714_v0  ;;  %v2206_v37 = vld [vmem:[#allocation10 + $0xcc] ss:$16 sps:$4 sm:$0xff]   ;;  %v2212_v39 = vld [vmem:[#allocation10 + $0xc0] ss:$16 sps:$4 sm:$0xff]   ;;  %v2214_v40 = vld [vmem:[#allocation10 + $0xc8] ss:$16 sps:$4 sm:$0xff]  }
  0x46   :  { %v1717_v38 = vld [vmem:[#allocation5 + $0x18] sm:$0xff]   ;;  %v2218_v41 = vld [vmem:[#allocation10 + $0xe4] ss:$16 sps:$4 sm:$0xff]   ;;  %v2226_v43 = vld [vmem:[#allocation10 + $0xe0] ss:$16 sps:$4 sm:$0xff]   ;;  %v309_v50 = vsub.s32 0, %v308_v47 }
  0x47   :  { %592 = vmatpush1.bf16.msra.mxu0 %v2140_v16  ;;  %633 = vmatpush1.bf16.msra.mxu1 %v2144_v17  ;;  %v2220_v42 = vld [vmem:[#allocation10 + $0xec] ss:$16 sps:$4 sm:$0xff]   ;;  %v2228_v44 = vld [vmem:[#allocation10 + $0xe8] ss:$16 sps:$4 sm:$0xff]   ;;  %v313_v52 = vsub.s32 1, %v308_v47  ;;  %s2039_s13 = smov [#allocation11]  }
  0x48   :  { %593 = vmatprep.subr.bf16.mxu0 %v2148_v18  ;;  %634 = vmatprep.subr.bf16.mxu1 %v2152_v20  ;;  %v423_v45 = vld [vmem:[#allocation3] sm:$0xf]  ;;  %s1539_s14 = sshll.u32 %s2039_s13, 4  ;;  %s2040_s15 = smov [#allocation14]   ;;  %s2654_s14 = int_to_ptr.vmem [resolvable:$true] %s1539_s14 }
  0x49   :  { %v305_v51 = vld [vmem:[%s2710_s3] sm:$0xf]  ;;  %s2038_s3 = smov [#allocation12]   ;;  %s1562_s16 = sshll.u32 %s2040_s15, 4  ;;  %s2656_s16 = int_to_ptr.vmem [resolvable:$true] %s1562_s16 }
  0x4a   :  { %1592 = vmatmul.mubr.msk.bf16.gmra.mrb[4].mxu0 %vm146_vm0, %v1691_v19  ;;  %1596 = vmatmul.mubr.msk.bf16.gmra.mrb[4].mxu1 %vm146_vm0, %v1691_v19  ;;  %v2275_v53 = vrot.slane %v305_v51, %v317_v48  ;;  %v2281_v56 = vrot.slane %v305_v51, %v321_v49  ;;  %v310_v57 = vrot.slane %v305_v51, %v309_v50  ;;  %s1552_s8 = sshll.u32 %s2038_s3, 4  ;;  %s1553_s8 = int_to_ptr.vmem [resolvable:$true] %s1552_s8 }
  0x4b   :  { %594 = vmatpush1.bf16.msra.mxu0 %v2154_v21  ;;  %635 = vmatpush1.bf16.msra.mxu1 %v2158_v22  ;;  %v314_v60 = vrot.slane %v305_v51, %v313_v52  ;;  %s1956_s17 = scalar_lea.vmem %s1553_s8, 64  ;;  %p1961_p11 = scmp.lt.s32.totalorder %s1553_s8, %s1553_s8 }
  0x4c   :  { %595 = vmatprep.subr.bf16.mxu0 %v2162_v23  ;;  %636 = vmatprep.subr.bf16.mxu1 %v2164_v24  ;;  %p1957_p10 = scmp.ne.s32.totalorder %s1553_s8, %s1956_s17  ;;  %p1962_p12 = scmp.lt.s32.totalorder %s1956_s17, %s1956_s17 }
  0x4d   :  { %211 = vmatprep.mubr.bf16.mxu0 %v2714_v0  ;;  %284 = vmatprep.mubr.bf16.mxu1 %v2714_v0 }
  0x4e   :  { %p1963_p13 = por %p1962_p12, %p1961_p11 }
  0x4f   :  { %596 = vmatpush1.bf16.msra.mxu0 %v2168_v25  ;;  %637 = vmatpush1.bf16.msra.mxu1 %v2172_v26 }
  0x50   :  { %597 = vmatprep.subr.bf16.mxu0 %v2176_v27  ;;  %638 = vmatprep.subr.bf16.mxu1 %v2178_v28  ;;  %p1964_p0 = pnand %p1963_p13, %p1957_p10 }
  0x52   :  { %1593 = vmatmul.mubr.msk.bf16.gmra.mrb[8].mxu0 %vm146_vm0, %v1704_v29  ;;  %1597 = vmatmul.mubr.msk.bf16.gmra.mrb[8].mxu1 %vm146_vm0, %v1704_v29 }
  0x53   :  { %598 = vmatpush1.bf16.msra.mxu0 %v2182_v30  ;;  %639 = vmatpush1.bf16.msra.mxu1 %v2184_v31 }
  0x54   :  { %599 = vmatprep.subr.bf16.mxu0 %v2188_v32  ;;  %640 = vmatprep.subr.bf16.mxu1 %v2192_v33 }
  0x55   :  { %221 = vmatprep.mubr.bf16.mxu0 %v2714_v0  ;;  %294 = vmatprep.mubr.bf16.mxu1 %v2714_v0 }
  0x57   :  { %600 = vmatpush1.bf16.msra.mxu0 %v2196_v34  ;;  %641 = vmatpush1.bf16.msra.mxu1 %v2198_v35 }
  0x58   :  { %601 = vmatprep.subr.bf16.mxu0 %v2202_v36  ;;  %642 = vmatprep.subr.bf16.mxu1 %v2206_v37 }
  0x5a   :  { %1594 = vmatmul.mubr.msk.bf16.gmra.mrb[12].mxu0 %vm146_vm0, %v1717_v38  ;;  %1598 = vmatmul.mubr.msk.bf16.gmra.mrb[12].mxu1 %vm146_vm0, %v1717_v38 }
  0x5b   :  { %602 = vmatpush1.bf16.msra.mxu0 %v2212_v39  ;;  %643 = vmatpush1.bf16.msra.mxu1 %v2214_v40 }
  0x5c   :  { %603 = vmatprep.subr.bf16.mxu0 %v2218_v41  ;;  %644 = vmatprep.subr.bf16.mxu1 %v2220_v42 }
  0x5d   :  { %621 = vmatprep.mubr.bf16.mxu0 %v2714_v0  ;;  %662 = vmatprep.mubr.bf16.mxu1 %v2714_v0 }
  0x5f   :  { %604 = vmatpush1.bf16.msra.mxu0 %v2226_v43  ;;  %645 = vmatpush1.bf16.msra.mxu1 %v2228_v44 }
  0x60   :  { %706 = vmatprep.subr.bf16.mxu0 %v2124_v10  ;;  %747 = vmatprep.subr.bf16.mxu1 %v2126_v11 }
  0x62   :  { %622 = vmatmul.mubr.bf16.vlgmr.msra.gmra.mrb[16].mxu0 %v423_v45  ;;  %663 = vmatmul.mubr.bf16.vlgmr.msra.gmra.mrb[16].mxu1 %v423_v45 }
  0x63   :  { %707 = vmatpush1.bf16.msra.mxu0 %v2128_v12  ;;  %748 = vmatpush1.bf16.msra.mxu1 %v2130_v13 }
  0x64   :  { %708 = vmatprep.subr.bf16.mxu0 %v2133_v14  ;;  %749 = vmatprep.subr.bf16.mxu1 %v2136_v15 }
  0x65   :  { %738 = vmatprep.mubr.bf16.mxu0 %v2714_v0  ;;  %779 = vmatprep.mubr.bf16.mxu1 %v2714_v0 }
  0x67   :  { %709 = vmatpush1.bf16.msra.mxu0 %v2140_v16  ;;  %750 = vmatpush1.bf16.msra.mxu1 %v2144_v17 }
  0x68   :  { %710 = vmatprep.subr.bf16.mxu0 %v2148_v18  ;;  %751 = vmatprep.subr.bf16.mxu1 %v2152_v20 }
  0x6b   :  { %711 = vmatpush1.bf16.msra.mxu0 %v2154_v21  ;;  %752 = vmatpush1.bf16.msra.mxu1 %v2158_v22 }
  0x6c   :  { %712 = vmatprep.subr.bf16.mxu0 %v2162_v23  ;;  %753 = vmatprep.subr.bf16.mxu1 %v2164_v24 }
  0x6f   :  { %713 = vmatpush1.bf16.msra.mxu0 %v2168_v25  ;;  %754 = vmatpush1.bf16.msra.mxu1 %v2172_v26 }
  0x70   :  { %714 = vmatprep.subr.bf16.mxu0 %v2176_v27  ;;  %755 = vmatprep.subr.bf16.mxu1 %v2178_v28 }
  0x73   :  { %715 = vmatpush1.bf16.msra.mxu0 %v2182_v30  ;;  %756 = vmatpush1.bf16.msra.mxu1 %v2184_v31 }
  0x74   :  { %716 = vmatprep.subr.bf16.mxu0 %v2188_v32  ;;  %757 = vmatprep.subr.bf16.mxu1 %v2192_v33 }
  0x77   :  { %717 = vmatpush1.bf16.msra.mxu0 %v2196_v34  ;;  %758 = vmatpush1.bf16.msra.mxu1 %v2198_v35 }
  0x78   :  { %718 = vmatprep.subr.bf16.mxu0 %v2202_v36  ;;  %759 = vmatprep.subr.bf16.mxu1 %v2206_v37 }
  0x7b   :  { %719 = vmatpush1.bf16.msra.mxu0 %v2212_v39  ;;  %760 = vmatpush1.bf16.msra.mxu1 %v2214_v40 }
  0x7c   :  { %720 = vmatprep.subr.bf16.mxu0 %v2218_v41  ;;  %761 = vmatprep.subr.bf16.mxu1 %v2220_v42 }
  0x7f   :  { %721 = vmatpush1.bf16.msra.mxu0 %v2226_v43  ;;  %762 = vmatpush1.bf16.msra.mxu1 %v2228_v44 }
  0x80   :  { %824 = vmatprep.subr.bf16.mxu0 %v2124_v10  ;;  %865 = vmatprep.subr.bf16.mxu1 %v2126_v11 }
 0x115   :  { %v2277_v54 = vpop.f32.mrb[0].mxu0  ;;  %v2279_v55 = vpop.f32.mrb[0].mxu1 }
 0x116   :  { %v195_v58 = vpop.f32.mrb[1].mxu0  ;;  %v268_v59 = vpop.f32.mrb[1].mxu1 }
 0x117   :  { %v197_v61 = vpop.f32.mrb[2].mxu0  ;;  %v270_v62 = vpop.f32.mrb[2].mxu1 }
 0x118   :  { %v2283_v63 = vadd.f32 %v310_v57, %v197_v61  ;;  %v199_v1 = vpop.f32.mrb[3].mxu0  ;;  %v2286_v2 = vadd.f32 %v2275_v53, %v270_v62  ;;  %v272_v3 = vpop.f32.mrb[3].mxu1 }
 0x119   :  { %v2288_v4 = vadd.f32 %v314_v60, %v199_v1  ;;  %v2291_v5 = vadd.f32 %v2281_v56, %v272_v3 }
 0x11d   :  { %v203_v6 = vpop.f32.mrb[4].mxu0  ;;  %v276_v7 = vpop.f32.mrb[4].mxu1 }
 0x11e   :  { %v2293_v8 = vadd.f32 %v310_v57, %v203_v6  ;;  %v205_v9 = vpop.f32.mrb[5].mxu0  ;;  %v2296_v19 = vadd.f32 %v2275_v53, %v276_v7  ;;  %v278_v29 = vpop.f32.mrb[5].mxu1 }
 0x11f   :  { %v2298_v38 = vadd.f32 %v314_v60, %v205_v9  ;;  %v207_v45 = vpop.f32.mrb[6].mxu0  ;;  %v2301_v46 = vadd.f32 %v2281_v56, %v278_v29  ;;  %v280_v47 = vpop.f32.mrb[6].mxu1 }
 0x120   :  { %v2303_v48 = vadd.f32 %v310_v57, %v207_v45  ;;  %v209_v49 = vpop.f32.mrb[7].mxu0  ;;  %v2306_v50 = vadd.f32 %v2275_v53, %v280_v47  ;;  %v282_v51 = vpop.f32.mrb[7].mxu1 }
 0x121   :  { %2716 = vst [vmem:[#allocation19_spill] sm:$0xff] %v2301_v46  ;;  %v2308_v52 = vadd.f32 %v314_v60, %v209_v49  ;;  %v2311_v61 = vadd.f32 %v2281_v56, %v282_v51 }
 0x122   :  { %2717 = vst [vmem:[#allocation20_spill] sm:$0xff] %v2303_v48  ;;  %2718 = vst [vmem:[#allocation21_spill] sm:$0xff] %v2306_v50 }
 0x123   :  { %2719 = vst [vmem:[#allocation22_spill] sm:$0xff] %v2308_v52  ;;  %2720 = vst [vmem:[#allocation23_spill] sm:$0xff] %v2311_v61 }
 0x125   :  { %v213_v62 = vpop.f32.mrb[8].mxu0  ;;  %v286_v1 = vpop.f32.mrb[8].mxu1 }
 0x126   :  { %v2313_v3 = vadd.f32 %v310_v57, %v213_v62  ;;  %v215_v6 = vpop.f32.mrb[9].mxu0  ;;  %v2316_v7 = vadd.f32 %v2275_v53, %v286_v1  ;;  %v288_v9 = vpop.f32.mrb[9].mxu1 }
 0x127   :  { %v2318_v29 = vadd.f32 %v314_v60, %v215_v6  ;;  %v217_v45 = vpop.f32.mrb[10].mxu0  ;;  %v2321_v47 = vadd.f32 %v2281_v56, %v288_v9  ;;  %v290_v49 = vpop.f32.mrb[10].mxu1 }
 0x128   :  { %2721 = vst [vmem:[#allocation24_spill] sm:$0xff] %v2313_v3  ;;  %2722 = vst [vmem:[#allocation25_spill] sm:$0xff] %v2316_v7  ;;  %v2323_v0 = vadd.f32 %v310_v57, %v217_v45  ;;  %v219_v51 = vpop.f32.mrb[11].mxu0  ;;  %v2326_v61 = vadd.f32 %v2275_v53, %v290_v49  ;;  %v292_v62 = vpop.f32.mrb[11].mxu1 }
 0x129   :  { %2723 = vst [vmem:[#allocation26_spill] sm:$0xff] %v2318_v29  ;;  %2724 = vst [vmem:[#allocation27_spill] sm:$0xff] %v2321_v47  ;;  %v2328_v3 = vadd.f32 %v314_v60, %v219_v51  ;;  %v2331_v1 = vadd.f32 %v2281_v56, %v292_v62 }
 0x12a   :  { %2725 = vst [vmem:[#allocation28_spill] sm:$0xff] %v2323_v0  ;;  %2726 = vst [vmem:[#allocation29_spill] sm:$0xff] %v2326_v61 }
 0x12b   :  { %2727 = vst [vmem:[#allocation30_spill] sm:$0xff] %v2328_v3  ;;  %2728 = vst [vmem:[#allocation31_spill] sm:$0xff] %v2331_v1 }
 0x12d   :  { %v223_v7 = vpop.f32.mrb[12].mxu0  ;;  %v296_v6 = vpop.f32.mrb[12].mxu1 }
 0x12e   :  { %v2333_v29 = vadd.f32 %v310_v57, %v223_v7  ;;  %v225_v52 = vpop.f32.mrb[13].mxu0  ;;  %v2336_v9 = vadd.f32 %v2275_v53, %v296_v6  ;;  %v298_v45 = vpop.f32.mrb[13].mxu1 }
 0x12f   :  { %v2338_v0 = vadd.f32 %v314_v60, %v225_v52  ;;  %v227_v47 = vpop.f32.mrb[14].mxu0  ;;  %v2341_v49 = vadd.f32 %v2281_v56, %v298_v45  ;;  %v300_v51 = vpop.f32.mrb[14].mxu1  ;;  %v327_v52 = vadd.f32 %v310_v57, %v2277_v54  ;;  %v328_v45 = vadd.f32 %v314_v60, %v195_v58 }
 0x130   :  { %2729 = vst [vmem:[#allocation32_spill] sm:$0xff] %v2333_v29  ;;  %2730 = vst [vmem:[#allocation33_spill] sm:$0xff] %v2336_v9  ;;  %v2343_v3 = vadd.f32 %v310_v57, %v227_v47  ;;  %v229_v62 = vpop.f32.mrb[15].mxu0  ;;  %v2346_v1 = vadd.f32 %v2275_v53, %v300_v51  ;;  %v302_v7 = vpop.f32.mrb[15].mxu1 }
 0x131   :  { %2731 = vst [vmem:[#allocation34_spill] sm:$0xff] %v2338_v0  ;;  %2732 = vst [vmem:[#allocation35_spill] sm:$0xff] %v2341_v49  ;;  %v2348_v29 = vadd.f32 %v314_v60, %v229_v62  ;;  %v2351_v6 = vadd.f32 %v2281_v56, %v302_v7  ;;  %v329_v0 = vadd.f32 %v2275_v53, %v2279_v55 }
 0x132   :  { %2733 = vst [vmem:[#allocation36_spill] sm:$0xff] %v2343_v3  ;;  %2734 = vst [vmem:[#allocation37_spill] sm:$0xff] %v2346_v1  ;;  %v330_v49 = vadd.f32 %v2281_v56, %v268_v59 }
 0x133   :  { %2735 = vst [vmem:[#allocation38_spill] sm:$0xff] %v2348_v29  ;;  %2736 = vst [vmem:[#allocation39_spill] sm:$0xff] %v2351_v6 }
 0x135   :  { %v623_v47 = vpop.f32.mrb[16].mxu0  ;;  %v664_v3 = vpop.f32.mrb[16].mxu1 }
 0x136   :  { %v671_v9 = vadd.f32 %v623_v47, %v327_v52  ;;  %v673_v61 = vadd.f32 %v664_v3, %v329_v0  ;;  %v625_v51 = vpop.f32.mrb[17].mxu0  ;;  %v666_v1 = vpop.f32.mrb[17].mxu1 }
 0x137   :  { %v672_v50 = vadd.f32 %v625_v51, %v328_v45  ;;  %v674_v62 = vadd.f32 %v666_v1, %v330_v49  ;;  %v627_v29 = vpop.f32.mrb[18].mxu0  ;;  %v668_v48 = vpop.f32.mrb[18].mxu1 }
 0x138   :  { %v1631_v7 = vmul.f32 -1.442695, %v671_v9  ;;  %v628_v6 = vpop.f32.mrb[19].mxu0  ;;  %v669_v46 = vpop.f32.mrb[19].mxu1  ;;  %v1633_v53 = vmul.f32 -1.442695, %v673_v61 }
 0x139   :  { %v1632_v54 = vmul.f32 -1.442695, %v672_v50  ;;  %v2737_v6 = vmov 0  }
 0x13a   :  { %1730 = vpow2.f32 %v1631_v7 }
 0x13b   :  { %1732 = vpow2.f32 %v1632_v54 }
 0x13c   :  { %1734 = vtanh.f32 %v674_v62 }
 0x13d   :  { %1736 = vpow2.f32 %v1633_v53 }
 0x144   :  { %v1731_v55 = vpop.eup %1730 }
 0x145   :  { %v684_v57 = vadd.f32 1.0, %v1731_v55  ;;  %v1733_v56 = vpop.eup %1732 }
 0x146   :  { %v685_v0 = vadd.f32 1.0, %v1733_v56  ;;  %v1735_v58 = vpop.eup %1734 }
 0x147   :  { %1738 = vrcp.f32 %v684_v57  ;;  %v1737_v59 = vpop.eup %1736 }
 0x148   :  { %1740 = vrcp.f32 %v685_v0  ;;  %v686_v29 = vadd.f32 1.0, %v1737_v59 }
 0x14a   :  { %1742 = vrcp.f32 %v686_v29 }
 0x151   :  { %v1739_v60 = vpop.eup %1738 }
 0x152   :  { %v695_v3 = vmul.f32 %v1739_v60, %v1735_v58  ;;  %v1741_v48 = vpop.eup %1740 }
 0x153   :  { %v694_v1 = vmul.f32 0.0, %v1741_v48 }
 0x154   :  { %v1743_v50 = vpop.eup %1742 }
 0x155   :  { %v2357_v46 = vadd.f32 %v695_v3, %v694_v1 }
 0x157   :  { %1744 = vtanh.f32 %v2357_v46 }
 0x161   :  { %v1745_v61 = vpop.eup %1744 }
 0x162   :  { %v698_v9 = vmul.f32 %v1745_v61, %v1743_v50 }
 0x164   :  { %v699_v49 = vpack.c.bf16 %v698_v9, %v698_v9 }
 0x166   :  { %700 = vst [vmem:[#allocation11] sm:$0xf] %v699_v49  ;;  %739 = vmatmul.mubr.bf16.vlgmr.msra.gmra.mrb[20].mxu0 %v699_v49  ;;  %780 = vmatmul.mubr.bf16.vlgmr.msra.gmra.mrb[20].mxu1 %v699_v49 }
 0x167   :  { %825 = vmatpush1.bf16.msra.mxu0 %v2128_v12  ;;  %866 = vmatpush1.bf16.msra.mxu1 %v2130_v13 }
 0x168   :  { %826 = vmatprep.subr.bf16.mxu0 %v2133_v14  ;;  %867 = vmatprep.subr.bf16.mxu1 %v2136_v15 }
 0x169   :  { %856 = vmatprep.mubr.bf16.mxu0 %v2737_v6  ;;  %897 = vmatprep.mubr.bf16.mxu1 %v2737_v6 }
 0x16b   :  { %827 = vmatpush1.bf16.msra.mxu0 %v2140_v16  ;;  %868 = vmatpush1.bf16.msra.mxu1 %v2144_v17 }
 0x16c   :  { %828 = vmatprep.subr.bf16.mxu0 %v2148_v18  ;;  %869 = vmatprep.subr.bf16.mxu1 %v2152_v20 }
 0x16f   :  { %829 = vmatpush1.bf16.msra.mxu0 %v2154_v21  ;;  %870 = vmatpush1.bf16.msra.mxu1 %v2158_v22 }
 0x170   :  { %830 = vmatprep.subr.bf16.mxu0 %v2162_v23  ;;  %871 = vmatprep.subr.bf16.mxu1 %v2164_v24 }
 0x173   :  { %831 = vmatpush1.bf16.msra.mxu0 %v2168_v25  ;;  %872 = vmatpush1.bf16.msra.mxu1 %v2172_v26 }
 0x174   :  { %832 = vmatprep.subr.bf16.mxu0 %v2176_v27  ;;  %873 = vmatprep.subr.bf16.mxu1 %v2178_v28 }
 0x177   :  { %833 = vmatpush1.bf16.msra.mxu0 %v2182_v30  ;;  %874 = vmatpush1.bf16.msra.mxu1 %v2184_v31 }
 0x178   :  { %834 = vmatprep.subr.bf16.mxu0 %v2188_v32  ;;  %875 = vmatprep.subr.bf16.mxu1 %v2192_v33 }
 0x17b   :  { %835 = vmatpush1.bf16.msra.mxu0 %v2196_v34  ;;  %876 = vmatpush1.bf16.msra.mxu1 %v2198_v35 }
 0x17c   :  { %836 = vmatprep.subr.bf16.mxu0 %v2202_v36  ;;  %877 = vmatprep.subr.bf16.mxu1 %v2206_v37 }
 0x17f   :  { %837 = vmatpush1.bf16.msra.mxu0 %v2212_v39  ;;  %878 = vmatpush1.bf16.msra.mxu1 %v2214_v40 }
 0x180   :  { %838 = vmatprep.subr.bf16.mxu0 %v2218_v41  ;;  %879 = vmatprep.subr.bf16.mxu1 %v2220_v42 }
 0x183   :  { %839 = vmatpush1.bf16.msra.mxu0 %v2226_v43  ;;  %880 = vmatpush1.bf16.msra.mxu1 %v2228_v44 }
 0x184   :  { %942 = vmatprep.subr.bf16.mxu0 %v2124_v10  ;;  %983 = vmatprep.subr.bf16.mxu1 %v2126_v11 }
 0x239   :  { %v740_v52 = vpop.f32.mrb[20].mxu0  ;;  %v781_v45 = vpop.f32.mrb[20].mxu1 }
 0x23a   :  { %v788_v47 = vadd.f32 %v740_v52, %v2283_v63  ;;  %v790_v51 = vadd.f32 %v781_v45, %v2286_v2  ;;  %v742_v62 = vpop.f32.mrb[21].mxu0  ;;  %v783_v7 = vpop.f32.mrb[21].mxu1 }
 0x23b   :  { %v789_v54 = vadd.f32 %v742_v62, %v2288_v4  ;;  %v791_v53 = vadd.f32 %v783_v7, %v2291_v5  ;;  %v744_v55 = vpop.f32.mrb[22].mxu0  ;;  %v785_v57 = vpop.f32.mrb[22].mxu1 }
 0x23c   :  { %v1634_v56 = vmul.f32 -1.442695, %v788_v47  ;;  %v745_v0 = vpop.f32.mrb[23].mxu0  ;;  %v786_v58 = vpop.f32.mrb[23].mxu1  ;;  %v1636_v60 = vmul.f32 -1.442695, %v790_v51 }
 0x23d   :  { %v1635_v59 = vmul.f32 -1.442695, %v789_v54 }
 0x23e   :  { %1746 = vpow2.f32 %v1634_v56  ;;  %v2738_v56 = vld [vmem:[#allocation19_spill] sm:$0xff] }
 0x23f   :  { %1748 = vpow2.f32 %v1635_v59 }
 0x240   :  { %1750 = vtanh.f32 %v791_v53 }
 0x241   :  { %1752 = vpow2.f32 %v1636_v60 }
 0x248   :  { %v1747_v3 = vpop.eup %1746 }
 0x249   :  { %v801_v48 = vadd.f32 1.0, %v1747_v3  ;;  %v1749_v63 = vpop.eup %1748 }
 0x24a   :  { %v802_v2 = vadd.f32 1.0, %v1749_v63  ;;  %v1751_v4 = vpop.eup %1750 }
 0x24b   :  { %1754 = vrcp.f32 %v801_v48  ;;  %v1753_v29 = vpop.eup %1752 }
 0x24c   :  { %1756 = vrcp.f32 %v802_v2  ;;  %v803_v61 = vadd.f32 1.0, %v1753_v29 }
 0x24e   :  { %1758 = vrcp.f32 %v803_v61 }
 0x255   :  { %v1755_v5 = vpop.eup %1754 }
 0x256   :  { %v812_v1 = vmul.f32 %v1755_v5, %v1751_v4  ;;  %v1757_v50 = vpop.eup %1756 }
 0x257   :  { %v811_v9 = vmul.f32 %v1757_v50, %v2357_v46 }
 0x258   :  { %v1759_v52 = vpop.eup %1758 }
 0x259   :  { %v2399_v49 = vadd.f32 %v812_v1, %v811_v9 }
 0x25b   :  { %1760 = vtanh.f32 %v2399_v49 }
 0x265   :  { %v1761_v45 = vpop.eup %1760 }
 0x266   :  { %v815_v47 = vmul.f32 %v1761_v45, %v1759_v52 }
 0x268   :  { %v816_v51 = vpack.c.bf16 %v815_v47, %v815_v47 }
 0x26a   :  { %818 = vst [vmem:[#allocation11 + $0x4] sm:$0xf] %v816_v51  ;;  %857 = vmatmul.mubr.bf16.vlgmr.msra.gmra.mrb[24].mxu0 %v816_v51  ;;  %898 = vmatmul.mubr.bf16.vlgmr.msra.gmra.mrb[24].mxu1 %v816_v51 }
 0x26b   :  { %943 = vmatpush1.bf16.msra.mxu0 %v2128_v12  ;;  %984 = vmatpush1.bf16.msra.mxu1 %v2130_v13 }
 0x26c   :  { %944 = vmatprep.subr.bf16.mxu0 %v2133_v14  ;;  %985 = vmatprep.subr.bf16.mxu1 %v2136_v15 }
 0x26d   :  { %974 = vmatprep.mubr.bf16.mxu0 %v2737_v6  ;;  %1015 = vmatprep.mubr.bf16.mxu1 %v2737_v6 }
 0x26f   :  { %945 = vmatpush1.bf16.msra.mxu0 %v2140_v16  ;;  %986 = vmatpush1.bf16.msra.mxu1 %v2144_v17 }
 0x270   :  { %946 = vmatprep.subr.bf16.mxu0 %v2148_v18  ;;  %987 = vmatprep.subr.bf16.mxu1 %v2152_v20 }
 0x273   :  { %947 = vmatpush1.bf16.msra.mxu0 %v2154_v21  ;;  %988 = vmatpush1.bf16.msra.mxu1 %v2158_v22 }
 0x274   :  { %948 = vmatprep.subr.bf16.mxu0 %v2162_v23  ;;  %989 = vmatprep.subr.bf16.mxu1 %v2164_v24 }
 0x277   :  { %949 = vmatpush1.bf16.msra.mxu0 %v2168_v25  ;;  %990 = vmatpush1.bf16.msra.mxu1 %v2172_v26 }
 0x278   :  { %950 = vmatprep.subr.bf16.mxu0 %v2176_v27  ;;  %991 = vmatprep.subr.bf16.mxu1 %v2178_v28 }
 0x27b   :  { %951 = vmatpush1.bf16.msra.mxu0 %v2182_v30  ;;  %992 = vmatpush1.bf16.msra.mxu1 %v2184_v31 }
 0x27c   :  { %952 = vmatprep.subr.bf16.mxu0 %v2188_v32  ;;  %993 = vmatprep.subr.bf16.mxu1 %v2192_v33 }
 0x27f   :  { %953 = vmatpush1.bf16.msra.mxu0 %v2196_v34  ;;  %994 = vmatpush1.bf16.msra.mxu1 %v2198_v35 }
 0x280   :  { %954 = vmatprep.subr.bf16.mxu0 %v2202_v36  ;;  %995 = vmatprep.subr.bf16.mxu1 %v2206_v37 }
 0x283   :  { %955 = vmatpush1.bf16.msra.mxu0 %v2212_v39  ;;  %996 = vmatpush1.bf16.msra.mxu1 %v2214_v40 }
 0x284   :  { %956 = vmatprep.subr.bf16.mxu0 %v2218_v41  ;;  %997 = vmatprep.subr.bf16.mxu1 %v2220_v42 }
 0x287   :  { %957 = vmatpush1.bf16.msra.mxu0 %v2226_v43  ;;  %998 = vmatpush1.bf16.msra.mxu1 %v2228_v44 }
 0x288   :  { %1060 = vmatprep.subr.bf16.mxu0 %v2124_v10  ;;  %1101 = vmatprep.subr.bf16.mxu1 %v2126_v11 }
 0x33d   :  { %v858_v46 = vpop.f32.mrb[24].mxu0  ;;  %v899_v62 = vpop.f32.mrb[24].mxu1 }
 0x33e   :  { %v906_v7 = vadd.f32 %v858_v46, %v2293_v8  ;;  %v908_v54 = vadd.f32 %v899_v62, %v2296_v19  ;;  %v860_v53 = vpop.f32.mrb[25].mxu0  ;;  %v901_v55 = vpop.f32.mrb[25].mxu1 }
 0x33f   :  { %v907_v57 = vadd.f32 %v860_v53, %v2298_v38  ;;  %v909_v0 = vadd.f32 %v901_v55, %v2738_v56  ;;  %v862_v58 = vpop.f32.mrb[26].mxu0  ;;  %v903_v59 = vpop.f32.mrb[26].mxu1  ;;  %v2740_v55 = vld [vmem:[#allocation21_spill] sm:$0xff] }
 0x340   :  { %v1637_v60 = vmul.f32 -1.442695, %v906_v7  ;;  %v863_v3 = vpop.f32.mrb[27].mxu0  ;;  %v904_v48 = vpop.f32.mrb[27].mxu1  ;;  %v1639_v2 = vmul.f32 -1.442695, %v908_v54 }
 0x341   :  { %v1638_v63 = vmul.f32 -1.442695, %v907_v57  ;;  %v2739_v54 = vld [vmem:[#allocation20_spill] sm:$0xff]  ;;  %v2741_v58 = vld [vmem:[#allocation22_spill] sm:$0xff] }
 0x342   :  { %1762 = vpow2.f32 %v1637_v60  ;;  %v2742_v60 = vld [vmem:[#allocation23_spill] sm:$0xff] }
 0x343   :  { %1764 = vpow2.f32 %v1638_v63 }
 0x344   :  { %1766 = vtanh.f32 %v909_v0 }
 0x345   :  { %1768 = vpow2.f32 %v1639_v2 }
 0x34c   :  { %v1763_v4 = vpop.eup %1762 }
 0x34d   :  { %v919_v29 = vadd.f32 1.0, %v1763_v4  ;;  %v1765_v8 = vpop.eup %1764 }
 0x34e   :  { %v920_v19 = vadd.f32 1.0, %v1765_v8  ;;  %v1767_v38 = vpop.eup %1766 }
 0x34f   :  { %1770 = vrcp.f32 %v919_v29  ;;  %v1769_v5 = vpop.eup %1768 }
 0x350   :  { %1772 = vrcp.f32 %v920_v19  ;;  %v921_v9 = vadd.f32 1.0, %v1769_v5 }
 0x352   :  { %1774 = vrcp.f32 %v921_v9 }
 0x359   :  { %v1771_v1 = vpop.eup %1770 }
 0x35a   :  { %v930_v50 = vmul.f32 %v1771_v1, %v1767_v38  ;;  %v1773_v61 = vpop.eup %1772 }
 0x35b   :  { %v929_v52 = vmul.f32 %v1773_v61, %v2399_v49 }
 0x35c   :  { %v1775_v47 = vpop.eup %1774 }
 0x35d   :  { %v2441_v45 = vadd.f32 %v930_v50, %v929_v52 }
 0x35f   :  { %1776 = vtanh.f32 %v2441_v45 }
 0x369   :  { %v1777_v51 = vpop.eup %1776 }
 0x36a   :  { %v933_v46 = vmul.f32 %v1777_v51, %v1775_v47 }
 0x36c   :  { %v934_v62 = vpack.c.bf16 %v933_v46, %v933_v46 }
 0x36e   :  { %936 = vst [vmem:[#allocation11 + $0x8] sm:$0xf] %v934_v62  ;;  %975 = vmatmul.mubr.bf16.vlgmr.msra.gmra.mrb[28].mxu0 %v934_v62  ;;  %1016 = vmatmul.mubr.bf16.vlgmr.msra.gmra.mrb[28].mxu1 %v934_v62 }
 0x36f   :  { %1061 = vmatpush1.bf16.msra.mxu0 %v2128_v12  ;;  %1102 = vmatpush1.bf16.msra.mxu1 %v2130_v13 }
 0x370   :  { %1062 = vmatprep.subr.bf16.mxu0 %v2133_v14  ;;  %1103 = vmatprep.subr.bf16.mxu1 %v2136_v15 }
 0x371   :  { %1092 = vmatprep.mubr.bf16.mxu0 %v2737_v6  ;;  %1133 = vmatprep.mubr.bf16.mxu1 %v2737_v6 }
 0x373   :  { %1063 = vmatpush1.bf16.msra.mxu0 %v2140_v16  ;;  %1104 = vmatpush1.bf16.msra.mxu1 %v2144_v17 }
 0x374   :  { %1064 = vmatprep.subr.bf16.mxu0 %v2148_v18  ;;  %1105 = vmatprep.subr.bf16.mxu1 %v2152_v20 }
 0x377   :  { %1065 = vmatpush1.bf16.msra.mxu0 %v2154_v21  ;;  %1106 = vmatpush1.bf16.msra.mxu1 %v2158_v22 }
 0x378   :  { %1066 = vmatprep.subr.bf16.mxu0 %v2162_v23  ;;  %1107 = vmatprep.subr.bf16.mxu1 %v2164_v24 }
 0x37b   :  { %1067 = vmatpush1.bf16.msra.mxu0 %v2168_v25  ;;  %1108 = vmatpush1.bf16.msra.mxu1 %v2172_v26 }
 0x37c   :  { %1068 = vmatprep.subr.bf16.mxu0 %v2176_v27  ;;  %1109 = vmatprep.subr.bf16.mxu1 %v2178_v28 }
 0x37f   :  { %1069 = vmatpush1.bf16.msra.mxu0 %v2182_v30  ;;  %1110 = vmatpush1.bf16.msra.mxu1 %v2184_v31 }
 0x380   :  { %1070 = vmatprep.subr.bf16.mxu0 %v2188_v32  ;;  %1111 = vmatprep.subr.bf16.mxu1 %v2192_v33 }
 0x383   :  { %1071 = vmatpush1.bf16.msra.mxu0 %v2196_v34  ;;  %1112 = vmatpush1.bf16.msra.mxu1 %v2198_v35 }
 0x384   :  { %1072 = vmatprep.subr.bf16.mxu0 %v2202_v36  ;;  %1113 = vmatprep.subr.bf16.mxu1 %v2206_v37 }
 0x387   :  { %1073 = vmatpush1.bf16.msra.mxu0 %v2212_v39  ;;  %1114 = vmatpush1.bf16.msra.mxu1 %v2214_v40 }
 0x388   :  { %1074 = vmatprep.subr.bf16.mxu0 %v2218_v41  ;;  %1115 = vmatprep.subr.bf16.mxu1 %v2220_v42 }
 0x38b   :  { %1075 = vmatpush1.bf16.msra.mxu0 %v2226_v43  ;;  %1116 = vmatpush1.bf16.msra.mxu1 %v2228_v44 }
 0x38c   :  { %1178 = vmatprep.subr.bf16.mxu0 %v2124_v10  ;;  %1219 = vmatprep.subr.bf16.mxu1 %v2126_v11 }
 0x441   :  { %v976_v49 = vpop.f32.mrb[28].mxu0  ;;  %v1017_v7 = vpop.f32.mrb[28].mxu1 }
 0x442   :  { %v1024_v53 = vadd.f32 %v976_v49, %v2739_v54  ;;  %v1026_v57 = vadd.f32 %v1017_v7, %v2740_v55  ;;  %v978_v56 = vpop.f32.mrb[29].mxu0  ;;  %v1019_v0 = vpop.f32.mrb[29].mxu1 }
 0x443   :  { %v1025_v59 = vadd.f32 %v978_v56, %v2741_v58  ;;  %v1027_v3 = vadd.f32 %v1019_v0, %v2742_v60  ;;  %v980_v48 = vpop.f32.mrb[30].mxu0  ;;  %v1021_v63 = vpop.f32.mrb[30].mxu1 }
 0x444   :  { %v1640_v2 = vmul.f32 -1.442695, %v1024_v53  ;;  %v981_v4 = vpop.f32.mrb[31].mxu0  ;;  %v1022_v29 = vpop.f32.mrb[31].mxu1  ;;  %v1642_v11 = vmul.f32 -1.442695, %v1026_v57 }
 0x445   :  { %v1641_v10 = vmul.f32 -1.442695, %v1025_v59  ;;  %v2532_v29 = vld [vmem:[#allocation10] ss:$16 sps:$4 sm:$0xff]  }
 0x446   :  { %1778 = vpow2.f32 %v1640_v2 }
 0x447   :  { %1780 = vpow2.f32 %v1641_v10  ;;  %v2535_v10 = vld [vmem:[#allocation10 + $0x8] ss:$16 sps:$4 sm:$0xff]  }
 0x448   :  { %1782 = vtanh.f32 %v1027_v3 }
 0x449   :  { %1784 = vpow2.f32 %v1642_v11  ;;  %v2538_v11 = vld [vmem:[#allocation10 + $0x24] ss:$16 sps:$4 sm:$0xff]  }
 0x450   :  { %v1779_v8 = vpop.eup %1778 }
 0x451   :  { %v1037_v19 = vadd.f32 1.0, %v1779_v8  ;;  %v1781_v38 = vpop.eup %1780  ;;  %v2541_v8 = vld [vmem:[#allocation10 + $0x2c] ss:$16 sps:$4 sm:$0xff]  }
 0x452   :  { %v1038_v5 = vadd.f32 1.0, %v1781_v38  ;;  %v1783_v1 = vpop.eup %1782  ;;  %v2549_v38 = vld [vmem:[#allocation10 + $0x28] ss:$16 sps:$4 sm:$0xff]  }
 0x453   :  { %1786 = vrcp.f32 %v1037_v19  ;;  %v1785_v50 = vpop.eup %1784  ;;  %v2546_v19 = vld [vmem:[#allocation10 + $0x20] ss:$16 sps:$4 sm:$0xff]  }
 0x454   :  { %1788 = vrcp.f32 %v1038_v5  ;;  %v1039_v47 = vadd.f32 1.0, %v1785_v50  ;;  %v2552_v5 = vld [vmem:[#allocation10 + $0x44] ss:$16 sps:$4 sm:$0xff]   ;;  %v2558_v50 = vld [vmem:[#allocation10 + $0x40] ss:$16 sps:$4 sm:$0xff]  }
 0x456   :  { %1790 = vrcp.f32 %v1039_v47  ;;  %v2570_v47 = vld [vmem:[#allocation10 + $0x60] ss:$16 sps:$4 sm:$0xff]  }
 0x45d   :  { %v1787_v61 = vpop.eup %1786 }
 0x45e   :  { %v1048_v9 = vmul.f32 %v1787_v61, %v1783_v1  ;;  %v1789_v52 = vpop.eup %1788  ;;  %v2555_v1 = vld [vmem:[#allocation10 + $0x4c] ss:$16 sps:$4 sm:$0xff]   ;;  %v2561_v61 = vld [vmem:[#allocation10 + $0x48] ss:$16 sps:$4 sm:$0xff]  }
 0x45f   :  { %v1047_v51 = vmul.f32 %v1789_v52, %v2441_v45  ;;  %v2567_v52 = vld [vmem:[#allocation10 + $0x6c] ss:$16 sps:$4 sm:$0xff]  }
 0x460   :  { %v1791_v62 = vpop.eup %1790 }
 0x461   :  { %v2483_v46 = vadd.f32 %v1048_v9, %v1047_v51  ;;  %v2564_v9 = vld [vmem:[#allocation10 + $0x64] ss:$16 sps:$4 sm:$0xff]   ;;  %v2573_v51 = vld [vmem:[#allocation10 + $0x68] ss:$16 sps:$4 sm:$0xff]  }
 0x463   :  { %1792 = vtanh.f32 %v2483_v46 }
 0x46d   :  { %v1793_v49 = vpop.eup %1792 }
 0x46e   :  { %v1051_v7 = vmul.f32 %v1793_v49, %v1791_v62  ;;  %v2579_v62 = vld [vmem:[#allocation10 + $0x8c] ss:$16 sps:$4 sm:$0xff]   ;;  %v2582_v49 = vld [vmem:[#allocation10 + $0x80] ss:$16 sps:$4 sm:$0xff]  }
 0x470   :  { %v1052_v54 = vpack.c.bf16 %v1051_v7, %v1051_v7  ;;  %v2585_v7 = vld [vmem:[#allocation10 + $0x88] ss:$16 sps:$4 sm:$0xff]  }
 0x472   :  { %1054 = vst [vmem:[#allocation11 + $0xc] sm:$0xf] %v1052_v54  ;;  %1093 = vmatmul.mubr.bf16.vlgmr.msra.gmra.mrb[32].mxu0 %v1052_v54  ;;  %1134 = vmatmul.mubr.bf16.vlgmr.msra.gmra.mrb[32].mxu1 %v1052_v54  ;;  %v2588_v54 = vld [vmem:[#allocation10 + $0xa4] ss:$16 sps:$4 sm:$0xff]  }
 0x473   :  { %1179 = vmatpush1.bf16.msra.mxu0 %v2128_v12  ;;  %1220 = vmatpush1.bf16.msra.mxu1 %v2130_v13  ;;  %v2518_v12 = vld [vmem:[#allocation10 + $0x4] ss:$16 sps:$4 sm:$0xff]   ;;  %v2521_v13 = vld [vmem:[#allocation10 + $0xc] ss:$16 sps:$4 sm:$0xff]  }
 0x474   :  { %1180 = vmatprep.subr.bf16.mxu0 %v2133_v14  ;;  %1221 = vmatprep.subr.bf16.mxu1 %v2136_v15 }
 0x475   :  { %1210 = vmatprep.mubr.bf16.mxu0 %v2737_v6  ;;  %1251 = vmatprep.mubr.bf16.mxu1 %v2737_v6 }
 0x477   :  { %1181 = vmatpush1.bf16.msra.mxu0 %v2140_v16  ;;  %1222 = vmatpush1.bf16.msra.mxu1 %v2144_v17  ;;  %v2743_v16 = vld [vmem:[#allocation24_spill] sm:$0xff] }
 0x478   :  { %1182 = vmatprep.subr.bf16.mxu0 %v2148_v18  ;;  %1223 = vmatprep.subr.bf16.mxu1 %v2152_v20  ;;  %v2744_v18 = vld [vmem:[#allocation25_spill] sm:$0xff] }
 0x47b   :  { %1183 = vmatpush1.bf16.msra.mxu0 %v2154_v21  ;;  %1224 = vmatpush1.bf16.msra.mxu1 %v2158_v22 }
 0x47c   :  { %1184 = vmatprep.subr.bf16.mxu0 %v2162_v23  ;;  %1225 = vmatprep.subr.bf16.mxu1 %v2164_v24  ;;  %v2745_v23 = vld [vmem:[#allocation26_spill] sm:$0xff] }
 0x47f   :  { %1185 = vmatpush1.bf16.msra.mxu0 %v2168_v25  ;;  %1226 = vmatpush1.bf16.msra.mxu1 %v2172_v26  ;;  %v2746_v25 = vld [vmem:[#allocation27_spill] sm:$0xff] }
 0x480   :  { %1186 = vmatprep.subr.bf16.mxu0 %v2176_v27  ;;  %1227 = vmatprep.subr.bf16.mxu1 %v2178_v28 }
 0x483   :  { %1187 = vmatpush1.bf16.msra.mxu0 %v2182_v30  ;;  %1228 = vmatpush1.bf16.msra.mxu1 %v2184_v31 }
 0x484   :  { %1188 = vmatprep.subr.bf16.mxu0 %v2188_v32  ;;  %1229 = vmatprep.subr.bf16.mxu1 %v2192_v33 }
 0x487   :  { %1189 = vmatpush1.bf16.msra.mxu0 %v2196_v34  ;;  %1230 = vmatpush1.bf16.msra.mxu1 %v2198_v35 }
 0x488   :  { %1190 = vmatprep.subr.bf16.mxu0 %v2202_v36  ;;  %1231 = vmatprep.subr.bf16.mxu1 %v2206_v37 }
 0x48b   :  { %1191 = vmatpush1.bf16.msra.mxu0 %v2212_v39  ;;  %1232 = vmatpush1.bf16.msra.mxu1 %v2214_v40 }
 0x48c   :  { %1192 = vmatprep.subr.bf16.mxu0 %v2218_v41  ;;  %1233 = vmatprep.subr.bf16.mxu1 %v2220_v42 }
 0x48f   :  { %1193 = vmatpush1.bf16.msra.mxu0 %v2226_v43  ;;  %1234 = vmatpush1.bf16.msra.mxu1 %v2228_v44 }
 0x490   :  { %1296 = vmatprep.subr.bf16.mxu0 %v2518_v12  ;;  %1337 = vmatprep.subr.bf16.mxu1 %v2521_v13 }
 0x545   :  { %v1094_v14 = vpop.f32.mrb[32].mxu0  ;;  %v1135_v15 = vpop.f32.mrb[32].mxu1 }
 0x546   :  { %v1142_v17 = vadd.f32 %v1094_v14, %v2743_v16  ;;  %v1144_v20 = vadd.f32 %v1135_v15, %v2744_v18  ;;  %v1096_v21 = vpop.f32.mrb[33].mxu0  ;;  %v1137_v22 = vpop.f32.mrb[33].mxu1  ;;  %v2591_v14 = vld [vmem:[#allocation10 + $0xac] ss:$16 sps:$4 sm:$0xff]   ;;  %v2594_v15 = vld [vmem:[#allocation10 + $0xa0] ss:$16 sps:$4 sm:$0xff]  }
 0x547   :  { %v1143_v24 = vadd.f32 %v1096_v21, %v2745_v23  ;;  %v1145_v26 = vadd.f32 %v1137_v22, %v2746_v25  ;;  %v1098_v27 = vpop.f32.mrb[34].mxu0  ;;  %v1139_v28 = vpop.f32.mrb[34].mxu1  ;;  %v2597_v16 = vld [vmem:[#allocation10 + $0xa8] ss:$16 sps:$4 sm:$0xff]   ;;  %v2748_v22 = vld [vmem:[#allocation29_spill] sm:$0xff]  ;;  %v2750_v25 = vld [vmem:[#allocation31_spill] sm:$0xff] }
 0x548   :  { %v1643_v30 = vmul.f32 -1.442695, %v1142_v17  ;;  %v1099_v31 = vpop.f32.mrb[35].mxu0  ;;  %v1140_v32 = vpop.f32.mrb[35].mxu1  ;;  %v1645_v34 = vmul.f32 -1.442695, %v1144_v20 }
 0x549   :  { %v1644_v33 = vmul.f32 -1.442695, %v1143_v24  ;;  %v2600_v17 = vld [vmem:[#allocation10 + $0xc4] ss:$16 sps:$4 sm:$0xff]  }
 0x54a   :  { %1794 = vpow2.f32 %v1643_v30  ;;  %v2747_v21 = vld [vmem:[#allocation28_spill] sm:$0xff]  ;;  %v2749_v24 = vld [vmem:[#allocation30_spill] sm:$0xff] }
 0x54b   :  { %1796 = vpow2.f32 %v1644_v33 }
 0x54c   :  { %1798 = vtanh.f32 %v1145_v26 }
 0x54d   :  { %1800 = vpow2.f32 %v1645_v34 }
 0x554   :  { %v1795_v35 = vpop.eup %1794 }
 0x555   :  { %v1155_v36 = vadd.f32 1.0, %v1795_v35  ;;  %v1797_v45 = vpop.eup %1796 }
 0x556   :  { %v1156_v53 = vadd.f32 1.0, %v1797_v45  ;;  %v1799_v55 = vpop.eup %1798 }
 0x557   :  { %1802 = vrcp.f32 %v1155_v36  ;;  %v1801_v57 = vpop.eup %1800 }
 0x558   :  { %1804 = vrcp.f32 %v1156_v53  ;;  %v1157_v59 = vadd.f32 1.0, %v1801_v57 }
 0x55a   :  { %1806 = vrcp.f32 %v1157_v59 }
 0x561   :  { %v1803_v56 = vpop.eup %1802 }
 0x562   :  { %v1166_v0 = vmul.f32 %v1803_v56, %v1799_v55  ;;  %v1805_v58 = vpop.eup %1804 }
 0x563   :  { %v1165_v60 = vmul.f32 %v1805_v58, %v2483_v46  ;;  %v2576_v46 = vld [vmem:[#allocation10 + $0x84] ss:$16 sps:$4 sm:$0xff]  }
 0x564   :  { %v1807_v48 = vpop.eup %1806 }
 0x565   :  { %v2529_v3 = vadd.f32 %v1166_v0, %v1165_v60 }
 0x567   :  { %1808 = vtanh.f32 %v2529_v3 }
 0x571   :  { %v1809_v63 = vpop.eup %1808 }
 0x572   :  { %v1169_v2 = vmul.f32 %v1809_v63, %v1807_v48  ;;  %v1885_v48 = vld [vmem:[#allocation10 + $0xc8] ss:$16 sps:$4 sm:$0xff]   ;;  %v1886_v63 = vld [vmem:[#allocation10 + $0xe4] ss:$16 sps:$4 sm:$0xff]  }
 0x574   :  { %v1170_v4 = vpack.c.bf16 %v1169_v2, %v1169_v2  ;;  %v1887_v2 = vld [vmem:[#allocation10 + $0xec] ss:$16 sps:$4 sm:$0xff]  }
 0x576   :  { %1172 = vst [vmem:[#allocation11 + $0x10] sm:$0xf] %v1170_v4  ;;  %1211 = vmatmul.mubr.bf16.vlgmr.msra.gmra.mrb[36].mxu0 %v1170_v4  ;;  %1252 = vmatmul.mubr.bf16.vlgmr.msra.gmra.mrb[36].mxu1 %v1170_v4  ;;  %v1888_v4 = vld [vmem:[#allocation10 + $0xe0] ss:$16 sps:$4 sm:$0xff]  }
 0x577   :  { %1297 = vmatpush1.bf16.msra.mxu0 %v2532_v29  ;;  %1338 = vmatpush1.bf16.msra.mxu1 %v2535_v10 }
 0x578   :  { %1298 = vmatprep.subr.bf16.mxu0 %v2538_v11  ;;  %1339 = vmatprep.subr.bf16.mxu1 %v2541_v8 }
 0x579   :  { %1328 = vmatprep.mubr.bf16.mxu0 %v2737_v6  ;;  %1369 = vmatprep.mubr.bf16.mxu1 %v2737_v6 }
 0x57b   :  { %1299 = vmatpush1.bf16.msra.mxu0 %v2546_v19  ;;  %1340 = vmatpush1.bf16.msra.mxu1 %v2549_v38 }
 0x57c   :  { %1300 = vmatprep.subr.bf16.mxu0 %v2552_v5  ;;  %1341 = vmatprep.subr.bf16.mxu1 %v2555_v1 }
 0x57f   :  { %1301 = vmatpush1.bf16.msra.mxu0 %v2558_v50  ;;  %1342 = vmatpush1.bf16.msra.mxu1 %v2561_v61 }
 0x580   :  { %1302 = vmatprep.subr.bf16.mxu0 %v2564_v9  ;;  %1343 = vmatprep.subr.bf16.mxu1 %v2567_v52 }
 0x583   :  { %1303 = vmatpush1.bf16.msra.mxu0 %v2570_v47  ;;  %1344 = vmatpush1.bf16.msra.mxu1 %v2573_v51 }
 0x584   :  { %1304 = vmatprep.subr.bf16.mxu0 %v2576_v46  ;;  %1345 = vmatprep.subr.bf16.mxu1 %v2579_v62 }
 0x587   :  { %1305 = vmatpush1.bf16.msra.mxu0 %v2582_v49  ;;  %1346 = vmatpush1.bf16.msra.mxu1 %v2585_v7 }
 0x588   :  { %1306 = vmatprep.subr.bf16.mxu0 %v2588_v54  ;;  %1347 = vmatprep.subr.bf16.mxu1 %v2591_v14 }
 0x58b   :  { %1307 = vmatpush1.bf16.msra.mxu0 %v2594_v15  ;;  %1348 = vmatpush1.bf16.msra.mxu1 %v2597_v16 }
 0x58c   :  { %1308 = vmatprep.subr.bf16.mxu0 %v2600_v17  ;;  %1349 = vmatprep.subr.bf16.mxu1 %v2206_v37 }
 0x58f   :  { %1309 = vmatpush1.bf16.msra.mxu0 %v2212_v39  ;;  %1350 = vmatpush1.bf16.msra.mxu1 %v2214_v40 }
 0x590   :  { %1310 = vmatprep.subr.bf16.mxu0 %v2218_v41  ;;  %1351 = vmatprep.subr.bf16.mxu1 %v2220_v42 }
 0x593   :  { %1311 = vmatpush1.bf16.msra.mxu0 %v2226_v43  ;;  %1352 = vmatpush1.bf16.msra.mxu1 %v2228_v44 }
 0x594   :  { %1414 = vmatprep.subr.bf16.mxu0 %v2518_v12  ;;  %1455 = vmatprep.subr.bf16.mxu1 %v2521_v13 }
 0x649   :  { %v1212_v18 = vpop.f32.mrb[36].mxu0  ;;  %v1253_v20 = vpop.f32.mrb[36].mxu1 }
 0x64a   :  { %v1260_v37 = vadd.f32 %v1212_v18, %v2747_v21  ;;  %v1262_v39 = vadd.f32 %v1253_v20, %v2748_v22  ;;  %v1214_v23 = vpop.f32.mrb[37].mxu0  ;;  %v1255_v40 = vpop.f32.mrb[37].mxu1 }
 0x64b   :  { %v1261_v41 = vadd.f32 %v1214_v23, %v2749_v24  ;;  %v1263_v42 = vadd.f32 %v1255_v40, %v2750_v25  ;;  %v1216_v26 = vpop.f32.mrb[38].mxu0  ;;  %v1257_v43 = vpop.f32.mrb[38].mxu1 }
 0x64c   :  { %v1646_v27 = vmul.f32 -1.442695, %v1260_v37  ;;  %v1217_v44 = vpop.f32.mrb[39].mxu0  ;;  %v1258_v28 = vpop.f32.mrb[39].mxu1  ;;  %v1648_v13 = vmul.f32 -1.442695, %v1262_v39 }
 0x64d   :  { %v1647_v12 = vmul.f32 -1.442695, %v1261_v41  ;;  %v2755_v44 = vld [vmem:[#allocation36_spill] sm:$0xff] }
 0x64e   :  { %1810 = vpow2.f32 %v1646_v27 }
 0x64f   :  { %1812 = vpow2.f32 %v1647_v12  ;;  %v2756_v12 = vld [vmem:[#allocation37_spill] sm:$0xff] }
 0x650   :  { %1814 = vtanh.f32 %v1263_v42 }
 0x651   :  { %1816 = vpow2.f32 %v1648_v13 }
 0x658   :  { %v1811_v30 = vpop.eup %1810 }
 0x659   :  { %v1273_v31 = vadd.f32 1.0, %v1811_v30  ;;  %v1813_v32 = vpop.eup %1812 }
 0x65a   :  { %v1274_v33 = vadd.f32 1.0, %v1813_v32  ;;  %v1815_v34 = vpop.eup %1814  ;;  %v2757_v32 = vld [vmem:[#allocation38_spill] sm:$0xff] }
 0x65b   :  { %1818 = vrcp.f32 %v1273_v31  ;;  %v1817_v35 = vpop.eup %1816 }
 0x65c   :  { %1820 = vrcp.f32 %v1274_v33  ;;  %v1275_v55 = vadd.f32 1.0, %v1817_v35 }
 0x65e   :  { %1822 = vrcp.f32 %v1275_v55 }
 0x665   :  { %v1819_v36 = vpop.eup %1818 }
 0x666   :  { %v1284_v45 = vmul.f32 %v1819_v36, %v1815_v34  ;;  %v1821_v53 = vpop.eup %1820  ;;  %v2758_v34 = vld [vmem:[#allocation39_spill] sm:$0xff] }
 0x667   :  { %v1283_v57 = vmul.f32 %v1821_v53, %v2529_v3  ;;  %v1884_v3 = vld [vmem:[#allocation10 + $0xc0] ss:$16 sps:$4 sm:$0xff]  }
 0x668   :  { %v1823_v0 = vpop.eup %1822 }
 0x669   :  { %v2617_v56 = vadd.f32 %v1284_v45, %v1283_v57 }
 0x66b   :  { %1824 = vtanh.f32 %v2617_v56 }
 0x675   :  { %v1825_v58 = vpop.eup %1824 }
 0x676   :  { %v1287_v59 = vmul.f32 %v1825_v58, %v1823_v0 }
 0x678   :  { %v1288_v60 = vpack.c.bf16 %v1287_v59, %v1287_v59 }
 0x67a   :  { %1290 = vst [vmem:[#allocation11 + $0x14] sm:$0xf] %v1288_v60  ;;  %1329 = vmatmul.mubr.bf16.vlgmr.msra.gmra.mrb[40].mxu0 %v1288_v60  ;;  %1370 = vmatmul.mubr.bf16.vlgmr.msra.gmra.mrb[40].mxu1 %v1288_v60 }
 0x67b   :  { %1415 = vmatpush1.bf16.msra.mxu0 %v2532_v29  ;;  %1456 = vmatpush1.bf16.msra.mxu1 %v2535_v10  ;;  %v1889_v29 = vld [vmem:[#allocation10 + $0xe8] ss:$16 sps:$4 sm:$0xff]  }
 0x67c   :  { %1416 = vmatprep.subr.bf16.mxu0 %v2538_v11  ;;  %1457 = vmatprep.subr.bf16.mxu1 %v2541_v8  ;;  %v2751_v8 = vld [vmem:[#allocation32_spill] sm:$0xff] }
 0x67d   :  { %1446 = vmatprep.mubr.bf16.mxu0 %v2737_v6  ;;  %1487 = vmatprep.mubr.bf16.mxu1 %v2737_v6  ;;  %v1883_v6 = vld [vmem:[#allocation10 + $0xcc] ss:$16 sps:$4 sm:$0xff]  }
 0x67f   :  { %1417 = vmatpush1.bf16.msra.mxu0 %v2546_v19  ;;  %1458 = vmatpush1.bf16.msra.mxu1 %v2549_v38  ;;  %v2752_v38 = vld [vmem:[#allocation33_spill] sm:$0xff] }
 0x680   :  { %1418 = vmatprep.subr.bf16.mxu0 %v2552_v5  ;;  %1459 = vmatprep.subr.bf16.mxu1 %v2555_v1 }
 0x683   :  { %1419 = vmatpush1.bf16.msra.mxu0 %v2558_v50  ;;  %1460 = vmatpush1.bf16.msra.mxu1 %v2561_v61  ;;  %v2753_v61 = vld [vmem:[#allocation34_spill] sm:$0xff] }
 0x684   :  { %1420 = vmatprep.subr.bf16.mxu0 %v2564_v9  ;;  %1461 = vmatprep.subr.bf16.mxu1 %v2567_v52  ;;  %v2754_v52 = vld [vmem:[#allocation35_spill] sm:$0xff] }
 0x687   :  { %1421 = vmatpush1.bf16.msra.mxu0 %v2570_v47  ;;  %1462 = vmatpush1.bf16.msra.mxu1 %v2573_v51 }
 0x688   :  { %1422 = vmatprep.subr.bf16.mxu0 %v2576_v46  ;;  %1463 = vmatprep.subr.bf16.mxu1 %v2579_v62 }
 0x68b   :  { %1423 = vmatpush1.bf16.msra.mxu0 %v2582_v49  ;;  %1464 = vmatpush1.bf16.msra.mxu1 %v2585_v7 }
 0x68c   :  { %1424 = vmatprep.subr.bf16.mxu0 %v2588_v54  ;;  %1465 = vmatprep.subr.bf16.mxu1 %v2591_v14 }
 0x68f   :  { %1425 = vmatpush1.bf16.msra.mxu0 %v2594_v15  ;;  %1466 = vmatpush1.bf16.msra.mxu1 %v2597_v16 }
 0x690   :  { %1426 = vmatprep.subr.bf16.mxu0 %v2600_v17  ;;  %1467 = vmatprep.subr.bf16.mxu1 %v1883_v6 }
 0x693   :  { %1427 = vmatpush1.bf16.msra.mxu0 %v1884_v3  ;;  %1468 = vmatpush1.bf16.msra.mxu1 %v1885_v48 }
 0x694   :  { %1428 = vmatprep.subr.bf16.mxu0 %v1886_v63  ;;  %1469 = vmatprep.subr.bf16.mxu1 %v1887_v2 }
 0x697   :  { %1429 = vmatpush1.bf16.msra.mxu0 %v1888_v4  ;;  %1470 = vmatpush1.bf16.msra.mxu1 %v1889_v29 }
 0x74d   :  { %v1330_v10 = vpop.f32.mrb[40].mxu0  ;;  %v1371_v11 = vpop.f32.mrb[40].mxu1 }
 0x74e   :  { %v1378_v19 = vadd.f32 %v1330_v10, %v2751_v8  ;;  %v1380_v5 = vadd.f32 %v1371_v11, %v2752_v38  ;;  %v1332_v1 = vpop.f32.mrb[41].mxu0  ;;  %v1373_v50 = vpop.f32.mrb[41].mxu1 }
 0x74f   :  { %v1379_v9 = vadd.f32 %v1332_v1, %v2753_v61  ;;  %v1381_v47 = vadd.f32 %v1373_v50, %v2754_v52  ;;  %v1334_v51 = vpop.f32.mrb[42].mxu0  ;;  %v1375_v46 = vpop.f32.mrb[42].mxu1 }
 0x750   :  { %v1649_v62 = vmul.f32 -1.442695, %v1378_v19  ;;  %v1335_v49 = vpop.f32.mrb[43].mxu0  ;;  %v1376_v7 = vpop.f32.mrb[43].mxu1  ;;  %v1651_v14 = vmul.f32 -1.442695, %v1380_v5 }
 0x751   :  { %v1650_v54 = vmul.f32 -1.442695, %v1379_v9 }
 0x752   :  { %1826 = vpow2.f32 %v1649_v62 }
 0x753   :  { %1828 = vpow2.f32 %v1650_v54 }
 0x754   :  { %1830 = vtanh.f32 %v1381_v47 }
 0x755   :  { %1832 = vpow2.f32 %v1651_v14 }
 0x75c   :  { %v1827_v15 = vpop.eup %1826 }
 0x75d   :  { %v1391_v16 = vadd.f32 1.0, %v1827_v15  ;;  %v1829_v17 = vpop.eup %1828 }
 0x75e   :  { %v1392_v18 = vadd.f32 1.0, %v1829_v17  ;;  %v1831_v20 = vpop.eup %1830 }
 0x75f   :  { %1834 = vrcp.f32 %v1391_v16  ;;  %v1833_v21 = vpop.eup %1832 }
 0x760   :  { %1836 = vrcp.f32 %v1392_v18  ;;  %v1393_v23 = vadd.f32 1.0, %v1833_v21 }
 0x762   :  { %1838 = vrcp.f32 %v1393_v23 }
 0x769   :  { %v1835_v37 = vpop.eup %1834 }
 0x76a   :  { %v1402_v22 = vmul.f32 %v1835_v37, %v1831_v20  ;;  %v1837_v39 = vpop.eup %1836 }
 0x76b   :  { %v1401_v40 = vmul.f32 %v1837_v39, %v2617_v56 }
 0x76c   :  { %v1839_v41 = vpop.eup %1838 }
 0x76d   :  { %v1403_v24 = vadd.f32 %v1402_v22, %v1401_v40 }
 0x76f   :  { %1840 = vtanh.f32 %v1403_v24 }
 0x779   :  { %v1841_v25 = vpop.eup %1840 }
 0x77a   :  { %v1405_v42 = vmul.f32 %v1841_v25, %v1839_v41 }
 0x77c   :  { %v1406_v26 = vpack.c.bf16 %v1405_v42, %v1405_v42 }
 0x77e   :  { %1408 = vst [vmem:[#allocation11 + $0x18] sm:$0xf] %v1406_v26  ;;  %1447 = vmatmul.mubr.bf16.vlgmr.msra.gmra.mrb[44].mxu0 %v1406_v26  ;;  %1488 = vmatmul.mubr.bf16.vlgmr.msra.gmra.mrb[44].mxu1 %v1406_v26 }
 0x851   :  { %v1448_v43 = vpop.f32.mrb[44].mxu0  ;;  %v1489_v27 = vpop.f32.mrb[44].mxu1 }
 0x852   :  { %v1496_v28 = vadd.f32 %v1448_v43, %v2755_v44  ;;  %v1498_v13 = vadd.f32 %v1489_v27, %v2756_v12  ;;  %v1450_v30 = vpop.f32.mrb[45].mxu0  ;;  %v1491_v31 = vpop.f32.mrb[45].mxu1 }
 0x853   :  { %v1497_v33 = vadd.f32 %v1450_v30, %v2757_v32  ;;  %v1499_v35 = vadd.f32 %v1491_v31, %v2758_v34  ;;  %v1452_v36 = vpop.f32.mrb[46].mxu0  ;;  %v1493_v45 = vpop.f32.mrb[46].mxu1 }
 0x854   :  { %v1652_v53 = vmul.f32 -1.442695, %v1496_v28  ;;  %v1453_v55 = vpop.f32.mrb[47].mxu0  ;;  %v1494_v57 = vpop.f32.mrb[47].mxu1  ;;  %v1654_v0 = vmul.f32 -1.442695, %v1498_v13 }
 0x855   :  { %v1653_v56 = vmul.f32 -1.442695, %v1497_v33 }
 0x856   :  { %1842 = vpow2.f32 %v1652_v53 }
 0x857   :  { %1844 = vpow2.f32 %v1653_v56 }
 0x858   :  { %1846 = vtanh.f32 %v1499_v35 }
 0x859   :  { %1848 = vpow2.f32 %v1654_v0 }
 0x860   :  { %v1843_v58 = vpop.eup %1842 }
 0x861   :  { %v1509_v59 = vadd.f32 1.0, %v1843_v58  ;;  %v1845_v60 = vpop.eup %1844 }
 0x862   :  { %v1510_v6 = vadd.f32 1.0, %v1845_v60  ;;  %v1847_v3 = vpop.eup %1846 }
 0x863   :  { %1850 = vrcp.f32 %v1509_v59  ;;  %v1849_v48 = vpop.eup %1848 }
 0x864   :  { %1852 = vrcp.f32 %v1510_v6  ;;  %v1511_v29 = vadd.f32 1.0, %v1849_v48 }
 0x866   :  { %1854 = vrcp.f32 %v1511_v29 }
 0x86d   :  { %v1851_v63 = vpop.eup %1850 }
 0x86e   :  { %v1520_v2 = vmul.f32 %v1851_v63, %v1847_v3  ;;  %v1853_v4 = vpop.eup %1852 }
 0x86f   :  { %v1519_v10 = vmul.f32 %v1853_v4, %v1403_v24 }
 0x870   :  { %v1855_v8 = vpop.eup %1854 }
 0x871   :  { %v1521_v11 = vadd.f32 %v1520_v2, %v1519_v10 }
 0x873   :  { %1856 = vtanh.f32 %v1521_v11  ;;  %1533 = vst [vmem:[#allocation14] sm:$0xff] %v1521_v11 }
 0x87d   :  { %v1857_v19 = vpop.eup %1856 }
 0x87e   :  { %v1523_v38 = vmul.f32 %v1857_v19, %v1855_v8 }
 0x880   :  { %v1524_v5 = vpack.c.bf16 %v1523_v38, %v1523_v38 }
 0x882   :  { %1526 = vst [vmem:[#allocation11 + $0x1c] sm:$0xf] %v1524_v5  ;;  %1527 = vst [vmem:[#allocation3] sm:$0xf] %v1524_v5 }
 0x883   :  { %1532 = vst [vmem:[#allocation12] sm:$0xf] %v1524_v5 }
 0x884   :  { %1967 = shalt.err (!%p1964_p0)
}
 0x885   :  { %s1968_s20 = scalar_lea.hbm %s2712_s5, 64 }
 0x886   :  { %p1969_p1 = scmp.ne.s32.totalorder %s2712_s5, %s1968_s20  ;;  %p1972_p2 = scmp.lt.u32.totalorder %s1968_s20, %s2712_s5 }
 0x888   :  { %p1974_p3 = pnand %p1972_p2, %p1969_p1 }
 0x88a   :  { %1977 = shalt.err (!%p1974_p3)
}
 0x88b   :  { %1555 = dma.vmem_to_hbm [thread:$0]  %s1553_s8, 64, %s2712_s5, [#allocation13]  }
 0x88c   :  { %s1978_s28 = scalar_lea.vmem %s2654_s14, 512  ;;  %p1983_p5 = scmp.lt.s32.totalorder %s2654_s14, %s2654_s14 }
 0x88d   :  { %p1979_p4 = scmp.ne.s32.totalorder %s2654_s14, %s1978_s28  ;;  %p1984_p6 = scmp.lt.s32.totalorder %s1978_s28, %s1978_s28 }
 0x88f   :  { %p1985_p7 = por %p1984_p6, %p1983_p5 }
 0x891   :  { %p1986_p8 = pnand %p1985_p7, %p1979_p4 }
 0x893   :  { %1989 = shalt.err (!%p1986_p8)
}
 0x894   :  { %s1990_s9 = scalar_lea.hbm %s2711_s4, 512 }
 0x895   :  { %p1991_p9 = scmp.ne.s32.totalorder %s2711_s4, %s1990_s9  ;;  %p1994_p10 = scmp.lt.u32.totalorder %s1990_s9, %s2711_s4 }
 0x897   :  { %p1996_p11 = pnand %p1994_p10, %p1991_p9 }
 0x899   :  { %1999 = shalt.err (!%p1996_p11)
}
 0x89a   :  { %1545 = dma.vmem_to_hbm [thread:$0]  %s2654_s14, 512, %s2711_s4, [#allocation7], %s2034_s1, %s2034_s1, %s2035_s21  }
 0x89b   :  { %s2000_s7 = scalar_lea.vmem %s2656_s16, 128  ;;  %p2005_p13 = scmp.lt.s32.totalorder %s2656_s16, %s2656_s16 }
 0x89c   :  { %p2001_p12 = scmp.ne.s32.totalorder %s2656_s16, %s2000_s7  ;;  %p2006_p0 = scmp.lt.s32.totalorder %s2000_s7, %s2000_s7 }
 0x89e   :  { %p2007_p1 = por %p2006_p0, %p2005_p13 }
 0x8a0   :  { %p2008_p2 = pnand %p2007_p1, %p2001_p12 }
 0x8a2   :  { %2011 = shalt.err (!%p2008_p2)
}
 0x8a3   :  { %s2012_s13 = scalar_lea.hbm %s2713_s6, 128 }
 0x8a4   :  { %p2013_p3 = scmp.ne.s32.totalorder %s2713_s6, %s2012_s13  ;;  %p2016_p4 = scmp.lt.u32.totalorder %s2012_s13, %s2713_s6 }
 0x8a6   :  { %p2018_p5 = pnand %p2016_p4, %p2013_p3 }
 0x8a8   :  { %2021 = shalt.err (!%p2018_p5)
}
 0x8a9   :  { %1565 = dma.vmem_to_hbm [thread:$0]  %s2656_s16, 128, %s2713_s6, [#allocation13]  }
 0x8aa   :  { %2026 = dma.done.wait [#allocation7], 512  }
 0x8ab   :  { %2027 = vsyncadd [#allocation7], 4294966784 }
 0x8ac   :  { %2028 = dma.done.wait [#allocation13], 192  }
 0x8ad   :  { %2029 = vsyncadd [#allocation13], 4294967104 }
 0x8ae   :  { %1575 = vsyncpa [#allocation6], 1 }
 0x8af   :  { %1576 = vsyncpa [#allocation9], 1 }
 0x8b0   :  { %1577 = vsyncpa [#allocation7], 1 }
 0x8b1   :  { %1578 = vsyncpa [#allocation13], 1 }

// kernel: tpu_custom_call.1
= control target key start
LH: loop header
LB: loop body
LE: loop exit
PB: predicated region body
PF: predicated region fallthrough
CT: control target
= control target key end

     0   :  { %12 = vsyncpa [#allocation6], 0  ;;  %s2707_s0 = inlined_call_operand.hbm [shape: bf16[8,8,32], index: 0, kind: input, shape index: {}]   ;;  %s2708_s1 = inlined_call_operand.hbm [shape: bf16[32,512], index: 1, kind: input, shape index: {}]   ;;  %s2709_s2 = inlined_call_operand.hbm [shape: bf16[128,512], index: 2, kind: input, shape index: {}]   ;;  %s2710_s3 = inlined_call_operand.vmem [shape: f32[1,512], index: 3, kind: input, shape index: {}]   ;;  %s2711_s4 = inlined_call_operand.hbm [shape: bf16[8,8,128], index: 4, kind: output, shape index: {0}]   ;;  %s2712_s5 = inlined_call_operand.hbm [shape: bf16[8,128], index: 5, kind: output, shape index: {1}]   ;;  %s2713_s6 = inlined_call_operand.hbm [shape: f32[8,128], index: 6, kind: output, shape index: {2}]  }
   0x1   :  { %13 = vsyncpa [#allocation9], 0 }
   0x2   :  { %14 = vsyncpa [#allocation7], 0 }
   0x3   :  { %15 = vsyncpa [#allocation13], 0  ;;  %s2030_s21 = smov [#allocation8]   ;;  %s1890_s25 = scalar_lea.hbm %s2708_s1, 1024 }
   0x4   :  { %s33_s22 = sshll.u32 %s2030_s21, 4  ;;  %p1891_p0 = scmp.ne.s32.totalorder %s2708_s1, %s1890_s25  ;;  %s34_s22 = int_to_ptr.vmem [resolvable:$true] %s33_s22 }
   0x5   :  { %p1894_p1 = scmp.lt.u32.totalorder %s1890_s25, %s2708_s1 }
   0x7   :  { %p1896_p2 = pnand %p1894_p1, %p1891_p0 }
   0x9   :  { %1899 = shalt.err (!%p1896_p2)
}
   0xa   :  { %s1900_s30 = scalar_lea.vmem %s34_s22, 1024  ;;  %p1905_p4 = scmp.lt.s32.totalorder %s34_s22, %s34_s22 }
   0xb   :  { %p1901_p3 = scmp.ne.s32.totalorder %s34_s22, %s1900_s30  ;;  %p1906_p5 = scmp.lt.s32.totalorder %s1900_s30, %s1900_s30 }
   0xd   :  { %p1907_p6 = por %p1906_p5, %p1905_p4 }
   0xf   :  { %p1908_p7 = pnand %p1907_p6, %p1901_p3 }
  0x11   :  { %1911 = shalt.err (!%p1908_p7)
}
  0x12   :  { %s2031_s7 = smov 256   ;;  %s2032_s8 = smov 16  }
  0x13   :  { %39 = dma.hbm_to_vmem [thread:$0]  %s2708_s1, 1024, %s34_s22, [#allocation9], %s2031_s7, %s2031_s7, %s2032_s8  }
  0x14   :  { %s2033_s11 = smov [#allocation5]   ;;  %s1912_s15 = scalar_lea.hbm %s2707_s0, 512 }
  0x15   :  { %s21_s12 = sshll.u32 %s2033_s11, 4  ;;  %p1913_p8 = scmp.ne.s32.totalorder %s2707_s0, %s1912_s15  ;;  %s22_s12 = int_to_ptr.vmem [resolvable:$true] %s21_s12 }
  0x16   :  { %p1916_p9 = scmp.lt.u32.totalorder %s1912_s15, %s2707_s0 }
  0x18   :  { %p1918_p10 = pnand %p1916_p9, %p1913_p8 }
  0x1a   :  { %1921 = shalt.err (!%p1918_p10)
}
  0x1b   :  { %s1922_s20 = scalar_lea.vmem %s22_s12, 512  ;;  %p1927_p12 = scmp.lt.s32.totalorder %s22_s12, %s22_s12 }
  0x1c   :  { %p1923_p11 = scmp.ne.s32.totalorder %s22_s12, %s1922_s20  ;;  %p1928_p13 = scmp.lt.s32.totalorder %s1922_s20, %s1922_s20 }
  0x1e   :  { %p1929_p0 = por %p1928_p13, %p1927_p12 }
  0x20   :  { %p1930_p1 = pnand %p1929_p0, %p1923_p11 }
  0x22   :  { %1933 = shalt.err (!%p1930_p1)
}
  0x23   :  { %s2034_s1 = smov 64   ;;  %s2035_s21 = smov 4  }
  0x24   :  { %27 = dma.hbm_to_vmem [thread:$0]  %s2707_s0, 512, %s22_s12, [#allocation6], %s2034_s1, %s2034_s1, %s2035_s21  }
  0x25   :  { %s2036_s24 = smov [#allocation10]   ;;  %s1934_s28 = scalar_lea.hbm %s2709_s2, 4096 }
  0x26   :  { %s45_s25 = sshll.u32 %s2036_s24, 4  ;;  %p1935_p2 = scmp.ne.s32.totalorder %s2709_s2, %s1934_s28  ;;  %s46_s25 = int_to_ptr.vmem [resolvable:$true] %s45_s25 }
  0x27   :  { %p1938_p3 = scmp.lt.u32.totalorder %s1934_s28, %s2709_s2 }
  0x29   :  { %p1940_p4 = pnand %p1938_p3, %p1935_p2 }
  0x2b   :  { %1943 = shalt.err (!%p1940_p4)
}
  0x2c   :  { %s1944_s11 = scalar_lea.vmem %s46_s25, 4096  ;;  %p1949_p6 = scmp.lt.s32.totalorder %s46_s25, %s46_s25 }
  0x2d   :  { %p1945_p5 = scmp.ne.s32.totalorder %s46_s25, %s1944_s11  ;;  %p1950_p7 = scmp.lt.s32.totalorder %s1944_s11, %s1944_s11 }
  0x2f   :  { %p1951_p8 = por %p1950_p7, %p1949_p6 }
  0x31   :  { %p1952_p9 = pnand %p1951_p8, %p1945_p5 }
  0x33   :  { %1955 = shalt.err (!%p1952_p9)
}
  0x34   :  { %51 = dma.hbm_to_vmem [thread:$0]  %s2709_s2, 4096, %s46_s25, [#allocation9], %s2031_s7, %s2031_s7, %s2032_s8  }
  0x35   :  { %2022 = dma.done.wait [#allocation6], 512  }
  0x36   :  { %2023 = vsyncadd [#allocation6], 4294966784 }
  0x37   :  { %2024 = dma.done.wait [#allocation9], 5120  }
  0x38   :  { %2025 = vsyncadd [#allocation9], 4294962176  ;;  %v2714_v0 = vmov 0   ;;  %v1666_v1 = vld [vmem:[#allocation8 + $0x4] ss:$16 sps:$4 sm:$0xff]   ;;  %vm146_vm0 = vcmask 261120   ;;  %v307_v46 = vlaneseq }
  0x39   :  { %191 = vmatprep.mubr.bf16.mxu0 %v2714_v0  ;;  %68 = vst [vmem:[#allocation3] sm:$0xf] %v2714_v0  ;;  %264 = vmatprep.mubr.bf16.mxu1 %v2714_v0  ;;  %v1668_v2 = vld [vmem:[#allocation8 + $0xc] ss:$16 sps:$4 sm:$0xff]   ;;  %v1670_v3 = vld [vmem:[#allocation8] ss:$16 sps:$4 sm:$0xff]  }
  0x3a   :  { %159 = vmatprep.subr.bf16.mxu0 %v1666_v1  ;;  %v1671_v4 = vld [vmem:[#allocation8 + $0x8] ss:$16 sps:$4 sm:$0xff]   ;;  %232 = vmatprep.subr.bf16.mxu1 %v1668_v2  ;;  %v1672_v5 = vld [vmem:[#allocation8 + $0x24] ss:$16 sps:$4 sm:$0xff]   ;;  %v1674_v6 = vld [vmem:[#allocation8 + $0x2c] ss:$16 sps:$4 sm:$0xff]  }
  0x3b   :  { %160 = vmatpush1.bf16.msra.mxu0 %v1670_v3  ;;  %233 = vmatpush1.bf16.msra.mxu1 %v1671_v4  ;;  %v1676_v7 = vld [vmem:[#allocation8 + $0x20] ss:$16 sps:$4 sm:$0xff]   ;;  %v1677_v8 = vld [vmem:[#allocation8 + $0x28] ss:$16 sps:$4 sm:$0xff]   ;;  %v2124_v10 = vld [vmem:[#allocation10 + $0x4] ss:$16 sps:$4 sm:$0xff]  }
  0x3c   :  { %161 = vmatprep.subr.bf16.mxu0 %v1672_v5  ;;  %234 = vmatprep.subr.bf16.mxu1 %v1674_v6  ;;  %v1678_v9 = vld [vmem:[#allocation5] sm:$0xff]   ;;  %v2126_v11 = vld [vmem:[#allocation10 + $0xc] ss:$16 sps:$4 sm:$0xff]   ;;  %v2130_v13 = vld [vmem:[#allocation10 + $0x8] ss:$16 sps:$4 sm:$0xff]   ;;  %v308_v47 = vshrl.u32 %v307_v46, 7 }
  0x3d   :  { %v2128_v12 = vld [vmem:[#allocation10] ss:$16 sps:$4 sm:$0xff]   ;;  %v2133_v14 = vld [vmem:[#allocation10 + $0x24] ss:$16 sps:$4 sm:$0xff]   ;;  %v2136_v15 = vld [vmem:[#allocation10 + $0x2c] ss:$16 sps:$4 sm:$0xff]  }
  0x3e   :  { %v2140_v16 = vld [vmem:[#allocation10 + $0x20] ss:$16 sps:$4 sm:$0xff]   ;;  %v2144_v17 = vld [vmem:[#allocation10 + $0x28] ss:$16 sps:$4 sm:$0xff]   ;;  %v2148_v18 = vld [vmem:[#allocation10 + $0x44] ss:$16 sps:$4 sm:$0xff]  }
  0x3f   :  { %162 = vmatpush1.bf16.msra.mxu0 %v1676_v7  ;;  %235 = vmatpush1.bf16.msra.mxu1 %v1677_v8  ;;  %v1691_v19 = vld [vmem:[#allocation5 + $0x8] sm:$0xff]   ;;  %v2154_v21 = vld [vmem:[#allocation10 + $0x40] ss:$16 sps:$4 sm:$0xff]   ;;  %v2162_v23 = vld [vmem:[#allocation10 + $0x64] ss:$16 sps:$4 sm:$0xff]   ;;  %v317_v48 = vsub.s32 2, %v308_v47 }
  0x40   :  { %589 = vmatprep.subr.bf16.mxu0 %v2124_v10  ;;  %630 = vmatprep.subr.bf16.mxu1 %v2126_v11  ;;  %v2152_v20 = vld [vmem:[#allocation10 + $0x4c] ss:$16 sps:$4 sm:$0xff]   ;;  %v2158_v22 = vld [vmem:[#allocation10 + $0x48] ss:$16 sps:$4 sm:$0xff]   ;;  %v2168_v25 = vld [vmem:[#allocation10 + $0x60] ss:$16 sps:$4 sm:$0xff]  }
  0x41   :  { %v2164_v24 = vld [vmem:[#allocation10 + $0x6c] ss:$16 sps:$4 sm:$0xff]   ;;  %v2172_v26 = vld [vmem:[#allocation10 + $0x68] ss:$16 sps:$4 sm:$0xff]   ;;  %v2176_v27 = vld [vmem:[#allocation10 + $0x84] ss:$16 sps:$4 sm:$0xff]  }
  0x42   :  { %1591 = vmatmul.mubr.msk.bf16.vlgmr.msra.gmra.mrb[0].mxu0 %vm146_vm0, %v1678_v9  ;;  %1595 = vmatmul.mubr.msk.bf16.vlgmr.msra.gmra.mrb[0].mxu1 %vm146_vm0, %v1678_v9  ;;  %v2178_v28 = vld [vmem:[#allocation10 + $0x8c] ss:$16 sps:$4 sm:$0xff]   ;;  %v1704_v29 = vld [vmem:[#allocation5 + $0x10] sm:$0xff]   ;;  %v2184_v31 = vld [vmem:[#allocation10 + $0x88] ss:$16 sps:$4 sm:$0xff]   ;;  %v321_v49 = vsub.s32 3, %v308_v47 }
  0x43   :  { %590 = vmatpush1.bf16.msra.mxu0 %v2128_v12  ;;  %631 = vmatpush1.bf16.msra.mxu1 %v2130_v13  ;;  %v2182_v30 = vld [vmem:[#allocation10 + $0x80] ss:$16 sps:$4 sm:$0xff]   ;;  %v2188_v32 = vld [vmem:[#allocation10 + $0xa4] ss:$16 sps:$4 sm:$0xff]   ;;  %v2192_v33 = vld [vmem:[#allocation10 + $0xac] ss:$16 sps:$4 sm:$0xff]  }
  0x44   :  { %591 = vmatprep.subr.bf16.mxu0 %v2133_v14  ;;  %632 = vmatprep.subr.bf16.mxu1 %v2136_v15  ;;  %v2196_v34 = vld [vmem:[#allocation10 + $0xa0] ss:$16 sps:$4 sm:$0xff]   ;;  %v2198_v35 = vld [vmem:[#allocation10 + $0xa8] ss:$16 sps:$4 sm:$0xff]   ;;  %v2202_v36 = vld [vmem:[#allocation10 + $0xc4] ss:$16 sps:$4 sm:$0xff]  }
  0x45   :  { %201 = vmatprep.mubr.bf16.mxu0 %v2714_v0  ;;  %274 = vmatprep.mubr.bf16.mxu1 %v2714_v0  ;;  %v2206_v37 = vld [vmem:[#allocation10 + $0xcc] ss:$16 sps:$4 sm:$0xff]   ;;  %v2212_v39 = vld [vmem:[#allocation10 + $0xc0] ss:$16 sps:$4 sm:$0xff]   ;;  %v2214_v40 = vld [vmem:[#allocation10 + $0xc8] ss:$16 sps:$4 sm:$0xff]  }
  0x46   :  { %v1717_v38 = vld [vmem:[#allocation5 + $0x18] sm:$0xff]   ;;  %v2218_v41 = vld [vmem:[#allocation10 + $0xe4] ss:$16 sps:$4 sm:$0xff]   ;;  %v2226_v43 = vld [vmem:[#allocation10 + $0xe0] ss:$16 sps:$4 sm:$0xff]   ;;  %v309_v50 = vsub.s32 0, %v308_v47 }
  0x47   :  { %592 = vmatpush1.bf16.msra.mxu0 %v2140_v16  ;;  %633 = vmatpush1.bf16.msra.mxu1 %v2144_v17  ;;  %v2220_v42 = vld [vmem:[#allocation10 + $0xec] ss:$16 sps:$4 sm:$0xff]   ;;  %v2228_v44 = vld [vmem:[#allocation10 + $0xe8] ss:$16 sps:$4 sm:$0xff]   ;;  %v313_v52 = vsub.s32 1, %v308_v47  ;;  %s2039_s13 = smov [#allocation11]  }
  0x48   :  { %593 = vmatprep.subr.bf16.mxu0 %v2148_v18  ;;  %634 = vmatprep.subr.bf16.mxu1 %v2152_v20  ;;  %v423_v45 = vld [vmem:[#allocation3] sm:$0xf]  ;;  %s1539_s14 = sshll.u32 %s2039_s13, 4  ;;  %s2040_s15 = smov [#allocation14]   ;;  %s2654_s14 = int_to_ptr.vmem [resolvable:$true] %s1539_s14 }
  0x49   :  { %v305_v51 = vld [vmem:[%s2710_s3] sm:$0xf]  ;;  %s2038_s3 = smov [#allocation12]   ;;  %s1562_s16 = sshll.u32 %s2040_s15, 4  ;;  %s2656_s16 = int_to_ptr.vmem [resolvable:$true] %s1562_s16 }
  0x4a   :  { %1592 = vmatmul.mubr.msk.bf16.gmra.mrb[4].mxu0 %vm146_vm0, %v1691_v19  ;;  %1596 = vmatmul.mubr.msk.bf16.gmra.mrb[4].mxu1 %vm146_vm0, %v1691_v19  ;;  %v2275_v53 = vrot.slane %v305_v51, %v317_v48  ;;  %v2281_v56 = vrot.slane %v305_v51, %v321_v49  ;;  %v310_v57 = vrot.slane %v305_v51, %v309_v50  ;;  %s1552_s8 = sshll.u32 %s2038_s3, 4  ;;  %s1553_s8 = int_to_ptr.vmem [resolvable:$true] %s1552_s8 }
  0x4b   :  { %594 = vmatpush1.bf16.msra.mxu0 %v2154_v21  ;;  %635 = vmatpush1.bf16.msra.mxu1 %v2158_v22  ;;  %v314_v60 = vrot.slane %v305_v51, %v313_v52  ;;  %s1956_s17 = scalar_lea.vmem %s1553_s8, 64  ;;  %p1961_p11 = scmp.lt.s32.totalorder %s1553_s8, %s1553_s8 }
  0x4c   :  { %595 = vmatprep.subr.bf16.mxu0 %v2162_v23  ;;  %636 = vmatprep.subr.bf16.mxu1 %v2164_v24  ;;  %p1957_p10 = scmp.ne.s32.totalorder %s1553_s8, %s1956_s17  ;;  %p1962_p12 = scmp.lt.s32.totalorder %s1956_s17, %s1956_s17 }
  0x4d   :  { %211 = vmatprep.mubr.bf16.mxu0 %v2714_v0  ;;  %284 = vmatprep.mubr.bf16.mxu1 %v2714_v0 }
  0x4e   :  { %p1963_p13 = por %p1962_p12, %p1961_p11 }
  0x4f   :  { %596 = vmatpush1.bf16.msra.mxu0 %v2168_v25  ;;  %637 = vmatpush1.bf16.msra.mxu1 %v2172_v26 }
  0x50   :  { %597 = vmatprep.subr.bf16.mxu0 %v2176_v27  ;;  %638 = vmatprep.subr.bf16.mxu1 %v2178_v28  ;;  %p1964_p0 = pnand %p1963_p13, %p1957_p10 }
  0x52   :  { %1593 = vmatmul.mubr.msk.bf16.gmra.mrb[8].mxu0 %vm146_vm0, %v1704_v29  ;;  %1597 = vmatmul.mubr.msk.bf16.gmra.mrb[8].mxu1 %vm146_vm0, %v1704_v29 }
  0x53   :  { %598 = vmatpush1.bf16.msra.mxu0 %v2182_v30  ;;  %639 = vmatpush1.bf16.msra.mxu1 %v2184_v31 }
  0x54   :  { %599 = vmatprep.subr.bf16.mxu0 %v2188_v32  ;;  %640 = vmatprep.subr.bf16.mxu1 %v2192_v33 }
  0x55   :  { %221 = vmatprep.mubr.bf16.mxu0 %v2714_v0  ;;  %294 = vmatprep.mubr.bf16.mxu1 %v2714_v0 }
  0x57   :  { %600 = vmatpush1.bf16.msra.mxu0 %v2196_v34  ;;  %641 = vmatpush1.bf16.msra.mxu1 %v2198_v35 }
  0x58   :  { %601 = vmatprep.subr.bf16.mxu0 %v2202_v36  ;;  %642 = vmatprep.subr.bf16.mxu1 %v2206_v37 }
  0x5a   :  { %1594 = vmatmul.mubr.msk.bf16.gmra.mrb[12].mxu0 %vm146_vm0, %v1717_v38  ;;  %1598 = vmatmul.mubr.msk.bf16.gmra.mrb[12].mxu1 %vm146_vm0, %v1717_v38 }
  0x5b   :  { %602 = vmatpush1.bf16.msra.mxu0 %v2212_v39  ;;  %643 = vmatpush1.bf16.msra.mxu1 %v2214_v40 }
  0x5c   :  { %603 = vmatprep.subr.bf16.mxu0 %v2218_v41  ;;  %644 = vmatprep.subr.bf16.mxu1 %v2220_v42 }
  0x5d   :  { %621 = vmatprep.mubr.bf16.mxu0 %v2714_v0  ;;  %662 = vmatprep.mubr.bf16.mxu1 %v2714_v0 }
  0x5f   :  { %604 = vmatpush1.bf16.msra.mxu0 %v2226_v43  ;;  %645 = vmatpush1.bf16.msra.mxu1 %v2228_v44 }
  0x60   :  { %706 = vmatprep.subr.bf16.mxu0 %v2124_v10  ;;  %747 = vmatprep.subr.bf16.mxu1 %v2126_v11 }
  0x62   :  { %622 = vmatmul.mubr.bf16.vlgmr.msra.gmra.mrb[16].mxu0 %v423_v45  ;;  %663 = vmatmul.mubr.bf16.vlgmr.msra.gmra.mrb[16].mxu1 %v423_v45 }
  0x63   :  { %707 = vmatpush1.bf16.msra.mxu0 %v2128_v12  ;;  %748 = vmatpush1.bf16.msra.mxu1 %v2130_v13 }
  0x64   :  { %708 = vmatprep.subr.bf16.mxu0 %v2133_v14  ;;  %749 = vmatprep.subr.bf16.mxu1 %v2136_v15 }
  0x65   :  { %738 = vmatprep.mubr.bf16.mxu0 %v2714_v0  ;;  %779 = vmatprep.mubr.bf16.mxu1 %v2714_v0 }
  0x67   :  { %709 = vmatpush1.bf16.msra.mxu0 %v2140_v16  ;;  %750 = vmatpush1.bf16.msra.mxu1 %v2144_v17 }
  0x68   :  { %710 = vmatprep.subr.bf16.mxu0 %v2148_v18  ;;  %751 = vmatprep.subr.bf16.mxu1 %v2152_v20 }
  0x6b   :  { %711 = vmatpush1.bf16.msra.mxu0 %v2154_v21  ;;  %752 = vmatpush1.bf16.msra.mxu1 %v2158_v22 }
  0x6c   :  { %712 = vmatprep.subr.bf16.mxu0 %v2162_v23  ;;  %753 = vmatprep.subr.bf16.mxu1 %v2164_v24 }
  0x6f   :  { %713 = vmatpush1.bf16.msra.mxu0 %v2168_v25  ;;  %754 = vmatpush1.bf16.msra.mxu1 %v2172_v26 }
  0x70   :  { %714 = vmatprep.subr.bf16.mxu0 %v2176_v27  ;;  %755 = vmatprep.subr.bf16.mxu1 %v2178_v28 }
  0x73   :  { %715 = vmatpush1.bf16.msra.mxu0 %v2182_v30  ;;  %756 = vmatpush1.bf16.msra.mxu1 %v2184_v31 }
  0x74   :  { %716 = vmatprep.subr.bf16.mxu0 %v2188_v32  ;;  %757 = vmatprep.subr.bf16.mxu1 %v2192_v33 }
  0x77   :  { %717 = vmatpush1.bf16.msra.mxu0 %v2196_v34  ;;  %758 = vmatpush1.bf16.msra.mxu1 %v2198_v35 }
  0x78   :  { %718 = vmatprep.subr.bf16.mxu0 %v2202_v36  ;;  %759 = vmatprep.subr.bf16.mxu1 %v2206_v37 }
  0x7b   :  { %719 = vmatpush1.bf16.msra.mxu0 %v2212_v39  ;;  %760 = vmatpush1.bf16.msra.mxu1 %v2214_v40 }
  0x7c   :  { %720 = vmatprep.subr.bf16.mxu0 %v2218_v41  ;;  %761 = vmatprep.subr.bf16.mxu1 %v2220_v42 }
  0x7f   :  { %721 = vmatpush1.bf16.msra.mxu0 %v2226_v43  ;;  %762 = vmatpush1.bf16.msra.mxu1 %v2228_v44 }
  0x80   :  { %824 = vmatprep.subr.bf16.mxu0 %v2124_v10  ;;  %865 = vmatprep.subr.bf16.mxu1 %v2126_v11 }
 0x115   :  { %v2277_v54 = vpop.f32.mrb[0].mxu0  ;;  %v2279_v55 = vpop.f32.mrb[0].mxu1 }
 0x116   :  { %v195_v58 = vpop.f32.mrb[1].mxu0  ;;  %v268_v59 = vpop.f32.mrb[1].mxu1 }
 0x117   :  { %v197_v61 = vpop.f32.mrb[2].mxu0  ;;  %v270_v62 = vpop.f32.mrb[2].mxu1 }
 0x118   :  { %v2283_v63 = vadd.f32 %v310_v57, %v197_v61  ;;  %v199_v1 = vpop.f32.mrb[3].mxu0  ;;  %v2286_v2 = vadd.f32 %v2275_v53, %v270_v62  ;;  %v272_v3 = vpop.f32.mrb[3].mxu1 }
 0x119   :  { %v2288_v4 = vadd.f32 %v314_v60, %v199_v1  ;;  %v2291_v5 = vadd.f32 %v2281_v56, %v272_v3 }
 0x11d   :  { %v203_v6 = vpop.f32.mrb[4].mxu0  ;;  %v276_v7 = vpop.f32.mrb[4].mxu1 }
 0x11e   :  { %v2293_v8 = vadd.f32 %v310_v57, %v203_v6  ;;  %v205_v9 = vpop.f32.mrb[5].mxu0  ;;  %v2296_v19 = vadd.f32 %v2275_v53, %v276_v7  ;;  %v278_v29 = vpop.f32.mrb[5].mxu1 }
 0x11f   :  { %v2298_v38 = vadd.f32 %v314_v60, %v205_v9  ;;  %v207_v45 = vpop.f32.mrb[6].mxu0  ;;  %v2301_v46 = vadd.f32 %v2281_v56, %v278_v29  ;;  %v280_v47 = vpop.f32.mrb[6].mxu1 }
 0x120   :  { %v2303_v48 = vadd.f32 %v310_v57, %v207_v45  ;;  %v209_v49 = vpop.f32.mrb[7].mxu0  ;;  %v2306_v50 = vadd.f32 %v2275_v53, %v280_v47  ;;  %v282_v51 = vpop.f32.mrb[7].mxu1 }
 0x121   :  { %2716 = vst [vmem:[#allocation19_spill] sm:$0xff] %v2301_v46  ;;  %v2308_v52 = vadd.f32 %v314_v60, %v209_v49  ;;  %v2311_v61 = vadd.f32 %v2281_v56, %v282_v51 }
 0x122   :  { %2717 = vst [vmem:[#allocation20_spill] sm:$0xff] %v2303_v48  ;;  %2718 = vst [vmem:[#allocation21_spill] sm:$0xff] %v2306_v50 }
 0x123   :  { %2719 = vst [vmem:[#allocation22_spill] sm:$0xff] %v2308_v52  ;;  %2720 = vst [vmem:[#allocation23_spill] sm:$0xff] %v2311_v61 }
 0x125   :  { %v213_v62 = vpop.f32.mrb[8].mxu0  ;;  %v286_v1 = vpop.f32.mrb[8].mxu1 }
 0x126   :  { %v2313_v3 = vadd.f32 %v310_v57, %v213_v62  ;;  %v215_v6 = vpop.f32.mrb[9].mxu0  ;;  %v2316_v7 = vadd.f32 %v2275_v53, %v286_v1  ;;  %v288_v9 = vpop.f32.mrb[9].mxu1 }
 0x127   :  { %v2318_v29 = vadd.f32 %v314_v60, %v215_v6  ;;  %v217_v45 = vpop.f32.mrb[10].mxu0  ;;  %v2321_v47 = vadd.f32 %v2281_v56, %v288_v9  ;;  %v290_v49 = vpop.f32.mrb[10].mxu1 }
 0x128   :  { %2721 = vst [vmem:[#allocation24_spill] sm:$0xff] %v2313_v3  ;;  %2722 = vst [vmem:[#allocation25_spill] sm:$0xff] %v2316_v7  ;;  %v2323_v0 = vadd.f32 %v310_v57, %v217_v45  ;;  %v219_v51 = vpop.f32.mrb[11].mxu0  ;;  %v2326_v61 = vadd.f32 %v2275_v53, %v290_v49  ;;  %v292_v62 = vpop.f32.mrb[11].mxu1 }
 0x129   :  { %2723 = vst [vmem:[#allocation26_spill] sm:$0xff] %v2318_v29  ;;  %2724 = vst [vmem:[#allocation27_spill] sm:$0xff] %v2321_v47  ;;  %v2328_v3 = vadd.f32 %v314_v60, %v219_v51  ;;  %v2331_v1 = vadd.f32 %v2281_v56, %v292_v62 }
 0x12a   :  { %2725 = vst [vmem:[#allocation28_spill] sm:$0xff] %v2323_v0  ;;  %2726 = vst [vmem:[#allocation29_spill] sm:$0xff] %v2326_v61 }
 0x12b   :  { %2727 = vst [vmem:[#allocation30_spill] sm:$0xff] %v2328_v3  ;;  %2728 = vst [vmem:[#allocation31_spill] sm:$0xff] %v2331_v1 }
 0x12d   :  { %v223_v7 = vpop.f32.mrb[12].mxu0  ;;  %v296_v6 = vpop.f32.mrb[12].mxu1 }
 0x12e   :  { %v2333_v29 = vadd.f32 %v310_v57, %v223_v7  ;;  %v225_v52 = vpop.f32.mrb[13].mxu0  ;;  %v2336_v9 = vadd.f32 %v2275_v53, %v296_v6  ;;  %v298_v45 = vpop.f32.mrb[13].mxu1 }
 0x12f   :  { %v2338_v0 = vadd.f32 %v314_v60, %v225_v52  ;;  %v227_v47 = vpop.f32.mrb[14].mxu0  ;;  %v2341_v49 = vadd.f32 %v2281_v56, %v298_v45  ;;  %v300_v51 = vpop.f32.mrb[14].mxu1  ;;  %v327_v52 = vadd.f32 %v310_v57, %v2277_v54  ;;  %v328_v45 = vadd.f32 %v314_v60, %v195_v58 }
 0x130   :  { %2729 = vst [vmem:[#allocation32_spill] sm:$0xff] %v2333_v29  ;;  %2730 = vst [vmem:[#allocation33_spill] sm:$0xff] %v2336_v9  ;;  %v2343_v3 = vadd.f32 %v310_v57, %v227_v47  ;;  %v229_v62 = vpop.f32.mrb[15].mxu0  ;;  %v2346_v1 = vadd.f32 %v2275_v53, %v300_v51  ;;  %v302_v7 = vpop.f32.mrb[15].mxu1 }
 0x131   :  { %2731 = vst [vmem:[#allocation34_spill] sm:$0xff] %v2338_v0  ;;  %2732 = vst [vmem:[#allocation35_spill] sm:$0xff] %v2341_v49  ;;  %v2348_v29 = vadd.f32 %v314_v60, %v229_v62  ;;  %v2351_v6 = vadd.f32 %v2281_v56, %v302_v7  ;;  %v329_v0 = vadd.f32 %v2275_v53, %v2279_v55 }
 0x132   :  { %2733 = vst [vmem:[#allocation36_spill] sm:$0xff] %v2343_v3  ;;  %2734 = vst [vmem:[#allocation37_spill] sm:$0xff] %v2346_v1  ;;  %v330_v49 = vadd.f32 %v2281_v56, %v268_v59 }
 0x133   :  { %2735 = vst [vmem:[#allocation38_spill] sm:$0xff] %v2348_v29  ;;  %2736 = vst [vmem:[#allocation39_spill] sm:$0xff] %v2351_v6 }
 0x135   :  { %v623_v47 = vpop.f32.mrb[16].mxu0  ;;  %v664_v3 = vpop.f32.mrb[16].mxu1 }
 0x136   :  { %v671_v9 = vadd.f32 %v623_v47, %v327_v52  ;;  %v673_v61 = vadd.f32 %v664_v3, %v329_v0  ;;  %v625_v51 = vpop.f32.mrb[17].mxu0  ;;  %v666_v1 = vpop.f32.mrb[17].mxu1 }
 0x137   :  { %v672_v50 = vadd.f32 %v625_v51, %v328_v45  ;;  %v674_v62 = vadd.f32 %v666_v1, %v330_v49  ;;  %v627_v29 = vpop.f32.mrb[18].mxu0  ;;  %v668_v48 = vpop.f32.mrb[18].mxu1 }
 0x138   :  { %v1631_v7 = vmul.f32 -1.442695, %v671_v9  ;;  %v628_v6 = vpop.f32.mrb[19].mxu0  ;;  %v669_v46 = vpop.f32.mrb[19].mxu1  ;;  %v1633_v53 = vmul.f32 -1.442695, %v673_v61 }
 0x139   :  { %v1632_v54 = vmul.f32 -1.442695, %v672_v50  ;;  %v2737_v6 = vmov 0  }
 0x13a   :  { %1730 = vpow2.f32 %v1631_v7 }
 0x13b   :  { %1732 = vpow2.f32 %v1632_v54 }
 0x13c   :  { %1734 = vtanh.f32 %v674_v62 }
 0x13d   :  { %1736 = vpow2.f32 %v1633_v53 }
 0x144   :  { %v1731_v55 = vpop.eup %1730 }
 0x145   :  { %v684_v57 = vadd.f32 1.0, %v1731_v55  ;;  %v1733_v56 = vpop.eup %1732 }
 0x146   :  { %v685_v0 = vadd.f32 1.0, %v1733_v56  ;;  %v1735_v58 = vpop.eup %1734 }
 0x147   :  { %1738 = vrcp.f32 %v684_v57  ;;  %v1737_v59 = vpop.eup %1736 }
 0x148   :  { %1740 = vrcp.f32 %v685_v0  ;;  %v686_v29 = vadd.f32 1.0, %v1737_v59 }
 0x14a   :  { %1742 = vrcp.f32 %v686_v29 }
 0x151   :  { %v1739_v60 = vpop.eup %1738 }
 0x152   :  { %v695_v3 = vmul.f32 %v1739_v60, %v1735_v58  ;;  %v1741_v48 = vpop.eup %1740 }
 0x153   :  { %v694_v1 = vmul.f32 0.0, %v1741_v48 }
 0x154   :  { %v1743_v50 = vpop.eup %1742 }
 0x155   :  { %v2357_v46 = vadd.f32 %v695_v3, %v694_v1 }
 0x157   :  { %1744 = vtanh.f32 %v2357_v46 }
 0x161   :  { %v1745_v61 = vpop.eup %1744 }
 0x162   :  { %v698_v9 = vmul.f32 %v1745_v61, %v1743_v50 }
 0x164   :  { %v699_v49 = vpack.c.bf16 %v698_v9, %v698_v9 }
 0x166   :  { %700 = vst [vmem:[#allocation11] sm:$0xf] %v699_v49  ;;  %739 = vmatmul.mubr.bf16.vlgmr.msra.gmra.mrb[20].mxu0 %v699_v49  ;;  %780 = vmatmul.mubr.bf16.vlgmr.msra.gmra.mrb[20].mxu1 %v699_v49 }
 0x167   :  { %825 = vmatpush1.bf16.msra.mxu0 %v2128_v12  ;;  %866 = vmatpush1.bf16.msra.mxu1 %v2130_v13 }
 0x168   :  { %826 = vmatprep.subr.bf16.mxu0 %v2133_v14  ;;  %867 = vmatprep.subr.bf16.mxu1 %v2136_v15 }
 0x169   :  { %856 = vmatprep.mubr.bf16.mxu0 %v2737_v6  ;;  %897 = vmatprep.mubr.bf16.mxu1 %v2737_v6 }
 0x16b   :  { %827 = vmatpush1.bf16.msra.mxu0 %v2140_v16  ;;  %868 = vmatpush1.bf16.msra.mxu1 %v2144_v17 }
 0x16c   :  { %828 = vmatprep.subr.bf16.mxu0 %v2148_v18  ;;  %869 = vmatprep.subr.bf16.mxu1 %v2152_v20 }
 0x16f   :  { %829 = vmatpush1.bf16.msra.mxu0 %v2154_v21  ;;  %870 = vmatpush1.bf16.msra.mxu1 %v2158_v22 }
 0x170   :  { %830 = vmatprep.subr.bf16.mxu0 %v2162_v23  ;;  %871 = vmatprep.subr.bf16.mxu1 %v2164_v24 }
 0x173   :  { %831 = vmatpush1.bf16.msra.mxu0 %v2168_v25  ;;  %872 = vmatpush1.bf16.msra.mxu1 %v2172_v26 }
 0x174   :  { %832 = vmatprep.subr.bf16.mxu0 %v2176_v27  ;;  %873 = vmatprep.subr.bf16.mxu1 %v2178_v28 }
 0x177   :  { %833 = vmatpush1.bf16.msra.mxu0 %v2182_v30  ;;  %874 = vmatpush1.bf16.msra.mxu1 %v2184_v31 }
 0x178   :  { %834 = vmatprep.subr.bf16.mxu0 %v2188_v32  ;;  %875 = vmatprep.subr.bf16.mxu1 %v2192_v33 }
 0x17b   :  { %835 = vmatpush1.bf16.msra.mxu0 %v2196_v34  ;;  %876 = vmatpush1.bf16.msra.mxu1 %v2198_v35 }
 0x17c   :  { %836 = vmatprep.subr.bf16.mxu0 %v2202_v36  ;;  %877 = vmatprep.subr.bf16.mxu1 %v2206_v37 }
 0x17f   :  { %837 = vmatpush1.bf16.msra.mxu0 %v2212_v39  ;;  %878 = vmatpush1.bf16.msra.mxu1 %v2214_v40 }
 0x180   :  { %838 = vmatprep.subr.bf16.mxu0 %v2218_v41  ;;  %879 = vmatprep.subr.bf16.mxu1 %v2220_v42 }
 0x183   :  { %839 = vmatpush1.bf16.msra.mxu0 %v2226_v43  ;;  %880 = vmatpush1.bf16.msra.mxu1 %v2228_v44 }
 0x184   :  { %942 = vmatprep.subr.bf16.mxu0 %v2124_v10  ;;  %983 = vmatprep.subr.bf16.mxu1 %v2126_v11 }
 0x239   :  { %v740_v52 = vpop.f32.mrb[20].mxu0  ;;  %v781_v45 = vpop.f32.mrb[20].mxu1 }
 0x23a   :  { %v788_v47 = vadd.f32 %v740_v52, %v2283_v63  ;;  %v790_v51 = vadd.f32 %v781_v45, %v2286_v2  ;;  %v742_v62 = vpop.f32.mrb[21].mxu0  ;;  %v783_v7 = vpop.f32.mrb[21].mxu1 }
 0x23b   :  { %v789_v54 = vadd.f32 %v742_v62, %v2288_v4  ;;  %v791_v53 = vadd.f32 %v783_v7, %v2291_v5  ;;  %v744_v55 = vpop.f32.mrb[22].mxu0  ;;  %v785_v57 = vpop.f32.mrb[22].mxu1 }
 0x23c   :  { %v1634_v56 = vmul.f32 -1.442695, %v788_v47  ;;  %v745_v0 = vpop.f32.mrb[23].mxu0  ;;  %v786_v58 = vpop.f32.mrb[23].mxu1  ;;  %v1636_v60 = vmul.f32 -1.442695, %v790_v51 }
 0x23d   :  { %v1635_v59 = vmul.f32 -1.442695, %v789_v54 }
 0x23e   :  { %1746 = vpow2.f32 %v1634_v56  ;;  %v2738_v56 = vld [vmem:[#allocation19_spill] sm:$0xff] }
 0x23f   :  { %1748 = vpow2.f32 %v1635_v59 }
 0x240   :  { %1750 = vtanh.f32 %v791_v53 }
 0x241   :  { %1752 = vpow2.f32 %v1636_v60 }
 0x248   :  { %v1747_v3 = vpop.eup %1746 }
 0x249   :  { %v801_v48 = vadd.f32 1.0, %v1747_v3  ;;  %v1749_v63 = vpop.eup %1748 }
 0x24a   :  { %v802_v2 = vadd.f32 1.0, %v1749_v63  ;;  %v1751_v4 = vpop.eup %1750 }
 0x24b   :  { %1754 = vrcp.f32 %v801_v48  ;;  %v1753_v29 = vpop.eup %1752 }
 0x24c   :  { %1756 = vrcp.f32 %v802_v2  ;;  %v803_v61 = vadd.f32 1.0, %v1753_v29 }
 0x24e   :  { %1758 = vrcp.f32 %v803_v61 }
 0x255   :  { %v1755_v5 = vpop.eup %1754 }
 0x256   :  { %v812_v1 = vmul.f32 %v1755_v5, %v1751_v4  ;;  %v1757_v50 = vpop.eup %1756 }
 0x257   :  { %v811_v9 = vmul.f32 %v1757_v50, %v2357_v46 }
 0x258   :  { %v1759_v52 = vpop.eup %1758 }
 0x259   :  { %v2399_v49 = vadd.f32 %v812_v1, %v811_v9 }
 0x25b   :  { %1760 = vtanh.f32 %v2399_v49 }
 0x265   :  { %v1761_v45 = vpop.eup %1760 }
 0x266   :  { %v815_v47 = vmul.f32 %v1761_v45, %v1759_v52 }
 0x268   :  { %v816_v51 = vpack.c.bf16 %v815_v47, %v815_v47 }
 0x26a   :  { %818 = vst [vmem:[#allocation11 + $0x4] sm:$0xf] %v816_v51  ;;  %857 = vmatmul.mubr.bf16.vlgmr.msra.gmra.mrb[24].mxu0 %v816_v51  ;;  %898 = vmatmul.mubr.bf16.vlgmr.msra.gmra.mrb[24].mxu1 %v816_v51 }
 0x26b   :  { %943 = vmatpush1.bf16.msra.mxu0 %v2128_v12  ;;  %984 = vmatpush1.bf16.msra.mxu1 %v2130_v13 }
 0x26c   :  { %944 = vmatprep.subr.bf16.mxu0 %v2133_v14  ;;  %985 = vmatprep.subr.bf16.mxu1 %v2136_v15 }
 0x26d   :  { %974 = vmatprep.mubr.bf16.mxu0 %v2737_v6  ;;  %1015 = vmatprep.mubr.bf16.mxu1 %v2737_v6 }
 0x26f   :  { %945 = vmatpush1.bf16.msra.mxu0 %v2140_v16  ;;  %986 = vmatpush1.bf16.msra.mxu1 %v2144_v17 }
 0x270   :  { %946 = vmatprep.subr.bf16.mxu0 %v2148_v18  ;;  %987 = vmatprep.subr.bf16.mxu1 %v2152_v20 }
 0x273   :  { %947 = vmatpush1.bf16.msra.mxu0 %v2154_v21  ;;  %988 = vmatpush1.bf16.msra.mxu1 %v2158_v22 }
 0x274   :  { %948 = vmatprep.subr.bf16.mxu0 %v2162_v23  ;;  %989 = vmatprep.subr.bf16.mxu1 %v2164_v24 }
 0x277   :  { %949 = vmatpush1.bf16.msra.mxu0 %v2168_v25  ;;  %990 = vmatpush1.bf16.msra.mxu1 %v2172_v26 }
 0x278   :  { %950 = vmatprep.subr.bf16.mxu0 %v2176_v27  ;;  %991 = vmatprep.subr.bf16.mxu1 %v2178_v28 }
 0x27b   :  { %951 = vmatpush1.bf16.msra.mxu0 %v2182_v30  ;;  %992 = vmatpush1.bf16.msra.mxu1 %v2184_v31 }
 0x27c   :  { %952 = vmatprep.subr.bf16.mxu0 %v2188_v32  ;;  %993 = vmatprep.subr.bf16.mxu1 %v2192_v33 }
 0x27f   :  { %953 = vmatpush1.bf16.msra.mxu0 %v2196_v34  ;;  %994 = vmatpush1.bf16.msra.mxu1 %v2198_v35 }
 0x280   :  { %954 = vmatprep.subr.bf16.mxu0 %v2202_v36  ;;  %995 = vmatprep.subr.bf16.mxu1 %v2206_v37 }
 0x283   :  { %955 = vmatpush1.bf16.msra.mxu0 %v2212_v39  ;;  %996 = vmatpush1.bf16.msra.mxu1 %v2214_v40 }
 0x284   :  { %956 = vmatprep.subr.bf16.mxu0 %v2218_v41  ;;  %997 = vmatprep.subr.bf16.mxu1 %v2220_v42 }
 0x287   :  { %957 = vmatpush1.bf16.msra.mxu0 %v2226_v43  ;;  %998 = vmatpush1.bf16.msra.mxu1 %v2228_v44 }
 0x288   :  { %1060 = vmatprep.subr.bf16.mxu0 %v2124_v10  ;;  %1101 = vmatprep.subr.bf16.mxu1 %v2126_v11 }
 0x33d   :  { %v858_v46 = vpop.f32.mrb[24].mxu0  ;;  %v899_v62 = vpop.f32.mrb[24].mxu1 }
 0x33e   :  { %v906_v7 = vadd.f32 %v858_v46, %v2293_v8  ;;  %v908_v54 = vadd.f32 %v899_v62, %v2296_v19  ;;  %v860_v53 = vpop.f32.mrb[25].mxu0  ;;  %v901_v55 = vpop.f32.mrb[25].mxu1 }
 0x33f   :  { %v907_v57 = vadd.f32 %v860_v53, %v2298_v38  ;;  %v909_v0 = vadd.f32 %v901_v55, %v2738_v56  ;;  %v862_v58 = vpop.f32.mrb[26].mxu0  ;;  %v903_v59 = vpop.f32.mrb[26].mxu1  ;;  %v2740_v55 = vld [vmem:[#allocation21_spill] sm:$0xff] }
 0x340   :  { %v1637_v60 = vmul.f32 -1.442695, %v906_v7  ;;  %v863_v3 = vpop.f32.mrb[27].mxu0  ;;  %v904_v48 = vpop.f32.mrb[27].mxu1  ;;  %v1639_v2 = vmul.f32 -1.442695, %v908_v54 }
 0x341   :  { %v1638_v63 = vmul.f32 -1.442695, %v907_v57  ;;  %v2739_v54 = vld [vmem:[#allocation20_spill] sm:$0xff]  ;;  %v2741_v58 = vld [vmem:[#allocation22_spill] sm:$0xff] }
 0x342   :  { %1762 = vpow2.f32 %v1637_v60  ;;  %v2742_v60 = vld [vmem:[#allocation23_spill] sm:$0xff] }
 0x343   :  { %1764 = vpow2.f32 %v1638_v63 }
 0x344   :  { %1766 = vtanh.f32 %v909_v0 }
 0x345   :  { %1768 = vpow2.f32 %v1639_v2 }
 0x34c   :  { %v1763_v4 = vpop.eup %1762 }
 0x34d   :  { %v919_v29 = vadd.f32 1.0, %v1763_v4  ;;  %v1765_v8 = vpop.eup %1764 }
 0x34e   :  { %v920_v19 = vadd.f32 1.0, %v1765_v8  ;;  %v1767_v38 = vpop.eup %1766 }
 0x34f   :  { %1770 = vrcp.f32 %v919_v29  ;;  %v1769_v5 = vpop.eup %1768 }
 0x350   :  { %1772 = vrcp.f32 %v920_v19  ;;  %v921_v9 = vadd.f32 1.0, %v1769_v5 }
 0x352   :  { %1774 = vrcp.f32 %v921_v9 }
 0x359   :  { %v1771_v1 = vpop.eup %1770 }
 0x35a   :  { %v930_v50 = vmul.f32 %v1771_v1, %v1767_v38  ;;  %v1773_v61 = vpop.eup %1772 }
 0x35b   :  { %v929_v52 = vmul.f32 %v1773_v61, %v2399_v49 }
 0x35c   :  { %v1775_v47 = vpop.eup %1774 }
 0x35d   :  { %v2441_v45 = vadd.f32 %v930_v50, %v929_v52 }
 0x35f   :  { %1776 = vtanh.f32 %v2441_v45 }
 0x369   :  { %v1777_v51 = vpop.eup %1776 }
 0x36a   :  { %v933_v46 = vmul.f32 %v1777_v51, %v1775_v47 }
 0x36c   :  { %v934_v62 = vpack.c.bf16 %v933_v46, %v933_v46 }
 0x36e   :  { %936 = vst [vmem:[#allocation11 + $0x8] sm:$0xf] %v934_v62  ;;  %975 = vmatmul.mubr.bf16.vlgmr.msra.gmra.mrb[28].mxu0 %v934_v62  ;;  %1016 = vmatmul.mubr.bf16.vlgmr.msra.gmra.mrb[28].mxu1 %v934_v62 }
 0x36f   :  { %1061 = vmatpush1.bf16.msra.mxu0 %v2128_v12  ;;  %1102 = vmatpush1.bf16.msra.mxu1 %v2130_v13 }
 0x370   :  { %1062 = vmatprep.subr.bf16.mxu0 %v2133_v14  ;;  %1103 = vmatprep.subr.bf16.mxu1 %v2136_v15 }
 0x371   :  { %1092 = vmatprep.mubr.bf16.mxu0 %v2737_v6  ;;  %1133 = vmatprep.mubr.bf16.mxu1 %v2737_v6 }
 0x373   :  { %1063 = vmatpush1.bf16.msra.mxu0 %v2140_v16  ;;  %1104 = vmatpush1.bf16.msra.mxu1 %v2144_v17 }
 0x374   :  { %1064 = vmatprep.subr.bf16.mxu0 %v2148_v18  ;;  %1105 = vmatprep.subr.bf16.mxu1 %v2152_v20 }
 0x377   :  { %1065 = vmatpush1.bf16.msra.mxu0 %v2154_v21  ;;  %1106 = vmatpush1.bf16.msra.mxu1 %v2158_v22 }
 0x378   :  { %1066 = vmatprep.subr.bf16.mxu0 %v2162_v23  ;;  %1107 = vmatprep.subr.bf16.mxu1 %v2164_v24 }
 0x37b   :  { %1067 = vmatpush1.bf16.msra.mxu0 %v2168_v25  ;;  %1108 = vmatpush1.bf16.msra.mxu1 %v2172_v26 }
 0x37c   :  { %1068 = vmatprep.subr.bf16.mxu0 %v2176_v27  ;;  %1109 = vmatprep.subr.bf16.mxu1 %v2178_v28 }
 0x37f   :  { %1069 = vmatpush1.bf16.msra.mxu0 %v2182_v30  ;;  %1110 = vmatpush1.bf16.msra.mxu1 %v2184_v31 }
 0x380   :  { %1070 = vmatprep.subr.bf16.mxu0 %v2188_v32  ;;  %1111 = vmatprep.subr.bf16.mxu1 %v2192_v33 }
 0x383   :  { %1071 = vmatpush1.bf16.msra.mxu0 %v2196_v34  ;;  %1112 = vmatpush1.bf16.msra.mxu1 %v2198_v35 }
 0x384   :  { %1072 = vmatprep.subr.bf16.mxu0 %v2202_v36  ;;  %1113 = vmatprep.subr.bf16.mxu1 %v2206_v37 }
 0x387   :  { %1073 = vmatpush1.bf16.msra.mxu0 %v2212_v39  ;;  %1114 = vmatpush1.bf16.msra.mxu1 %v2214_v40 }
 0x388   :  { %1074 = vmatprep.subr.bf16.mxu0 %v2218_v41  ;;  %1115 = vmatprep.subr.bf16.mxu1 %v2220_v42 }
 0x38b   :  { %1075 = vmatpush1.bf16.msra.mxu0 %v2226_v43  ;;  %1116 = vmatpush1.bf16.msra.mxu1 %v2228_v44 }
 0x38c   :  { %1178 = vmatprep.subr.bf16.mxu0 %v2124_v10  ;;  %1219 = vmatprep.subr.bf16.mxu1 %v2126_v11 }
 0x441   :  { %v976_v49 = vpop.f32.mrb[28].mxu0  ;;  %v1017_v7 = vpop.f32.mrb[28].mxu1 }
 0x442   :  { %v1024_v53 = vadd.f32 %v976_v49, %v2739_v54  ;;  %v1026_v57 = vadd.f32 %v1017_v7, %v2740_v55  ;;  %v978_v56 = vpop.f32.mrb[29].mxu0  ;;  %v1019_v0 = vpop.f32.mrb[29].mxu1 }
 0x443   :  { %v1025_v59 = vadd.f32 %v978_v56, %v2741_v58  ;;  %v1027_v3 = vadd.f32 %v1019_v0, %v2742_v60  ;;  %v980_v48 = vpop.f32.mrb[30].mxu0  ;;  %v1021_v63 = vpop.f32.mrb[30].mxu1 }
 0x444   :  { %v1640_v2 = vmul.f32 -1.442695, %v1024_v53  ;;  %v981_v4 = vpop.f32.mrb[31].mxu0  ;;  %v1022_v29 = vpop.f32.mrb[31].mxu1  ;;  %v1642_v11 = vmul.f32 -1.442695, %v1026_v57 }
 0x445   :  { %v1641_v10 = vmul.f32 -1.442695, %v1025_v59  ;;  %v2532_v29 = vld [vmem:[#allocation10] ss:$16 sps:$4 sm:$0xff]  }
 0x446   :  { %1778 = vpow2.f32 %v1640_v2 }
 0x447   :  { %1780 = vpow2.f32 %v1641_v10  ;;  %v2535_v10 = vld [vmem:[#allocation10 + $0x8] ss:$16 sps:$4 sm:$0xff]  }
 0x448   :  { %1782 = vtanh.f32 %v1027_v3 }
 0x449   :  { %1784 = vpow2.f32 %v1642_v11  ;;  %v2538_v11 = vld [vmem:[#allocation10 + $0x24] ss:$16 sps:$4 sm:$0xff]  }
 0x450   :  { %v1779_v8 = vpop.eup %1778 }
 0x451   :  { %v1037_v19 = vadd.f32 1.0, %v1779_v8  ;;  %v1781_v38 = vpop.eup %1780  ;;  %v2541_v8 = vld [vmem:[#allocation10 + $0x2c] ss:$16 sps:$4 sm:$0xff]  }
 0x452   :  { %v1038_v5 = vadd.f32 1.0, %v1781_v38  ;;  %v1783_v1 = vpop.eup %1782  ;;  %v2549_v38 = vld [vmem:[#allocation10 + $0x28] ss:$16 sps:$4 sm:$0xff]  }
 0x453   :  { %1786 = vrcp.f32 %v1037_v19  ;;  %v1785_v50 = vpop.eup %1784  ;;  %v2546_v19 = vld [vmem:[#allocation10 + $0x20] ss:$16 sps:$4 sm:$0xff]  }
 0x454   :  { %1788 = vrcp.f32 %v1038_v5  ;;  %v1039_v47 = vadd.f32 1.0, %v1785_v50  ;;  %v2552_v5 = vld [vmem:[#allocation10 + $0x44] ss:$16 sps:$4 sm:$0xff]   ;;  %v2558_v50 = vld [vmem:[#allocation10 + $0x40] ss:$16 sps:$4 sm:$0xff]  }
 0x456   :  { %1790 = vrcp.f32 %v1039_v47  ;;  %v2570_v47 = vld [vmem:[#allocation10 + $0x60] ss:$16 sps:$4 sm:$0xff]  }
 0x45d   :  { %v1787_v61 = vpop.eup %1786 }
 0x45e   :  { %v1048_v9 = vmul.f32 %v1787_v61, %v1783_v1  ;;  %v1789_v52 = vpop.eup %1788  ;;  %v2555_v1 = vld [vmem:[#allocation10 + $0x4c] ss:$16 sps:$4 sm:$0xff]   ;;  %v2561_v61 = vld [vmem:[#allocation10 + $0x48] ss:$16 sps:$4 sm:$0xff]  }
 0x45f   :  { %v1047_v51 = vmul.f32 %v1789_v52, %v2441_v45  ;;  %v2567_v52 = vld [vmem:[#allocation10 + $0x6c] ss:$16 sps:$4 sm:$0xff]  }
 0x460   :  { %v1791_v62 = vpop.eup %1790 }
 0x461   :  { %v2483_v46 = vadd.f32 %v1048_v9, %v1047_v51  ;;  %v2564_v9 = vld [vmem:[#allocation10 + $0x64] ss:$16 sps:$4 sm:$0xff]   ;;  %v2573_v51 = vld [vmem:[#allocation10 + $0x68] ss:$16 sps:$4 sm:$0xff]  }
 0x463   :  { %1792 = vtanh.f32 %v2483_v46 }
 0x46d   :  { %v1793_v49 = vpop.eup %1792 }
 0x46e   :  { %v1051_v7 = vmul.f32 %v1793_v49, %v1791_v62  ;;  %v2579_v62 = vld [vmem:[#allocation10 + $0x8c] ss:$16 sps:$4 sm:$0xff]   ;;  %v2582_v49 = vld [vmem:[#allocation10 + $0x80] ss:$16 sps:$4 sm:$0xff]  }
 0x470   :  { %v1052_v54 = vpack.c.bf16 %v1051_v7, %v1051_v7  ;;  %v2585_v7 = vld [vmem:[#allocation10 + $0x88] ss:$16 sps:$4 sm:$0xff]  }
 0x472   :  { %1054 = vst [vmem:[#allocation11 + $0xc] sm:$0xf] %v1052_v54  ;;  %1093 = vmatmul.mubr.bf16.vlgmr.msra.gmra.mrb[32].mxu0 %v1052_v54  ;;  %1134 = vmatmul.mubr.bf16.vlgmr.msra.gmra.mrb[32].mxu1 %v1052_v54  ;;  %v2588_v54 = vld [vmem:[#allocation10 + $0xa4] ss:$16 sps:$4 sm:$0xff]  }
 0x473   :  { %1179 = vmatpush1.bf16.msra.mxu0 %v2128_v12  ;;  %1220 = vmatpush1.bf16.msra.mxu1 %v2130_v13  ;;  %v2518_v12 = vld [vmem:[#allocation10 + $0x4] ss:$16 sps:$4 sm:$0xff]   ;;  %v2521_v13 = vld [vmem:[#allocation10 + $0xc] ss:$16 sps:$4 sm:$0xff]  }
 0x474   :  { %1180 = vmatprep.subr.bf16.mxu0 %v2133_v14  ;;  %1221 = vmatprep.subr.bf16.mxu1 %v2136_v15 }
 0x475   :  { %1210 = vmatprep.mubr.bf16.mxu0 %v2737_v6  ;;  %1251 = vmatprep.mubr.bf16.mxu1 %v2737_v6 }
 0x477   :  { %1181 = vmatpush1.bf16.msra.mxu0 %v2140_v16  ;;  %1222 = vmatpush1.bf16.msra.mxu1 %v2144_v17  ;;  %v2743_v16 = vld [vmem:[#allocation24_spill] sm:$0xff] }
 0x478   :  { %1182 = vmatprep.subr.bf16.mxu0 %v2148_v18  ;;  %1223 = vmatprep.subr.bf16.mxu1 %v2152_v20  ;;  %v2744_v18 = vld [vmem:[#allocation25_spill] sm:$0xff] }
 0x47b   :  { %1183 = vmatpush1.bf16.msra.mxu0 %v2154_v21  ;;  %1224 = vmatpush1.bf16.msra.mxu1 %v2158_v22 }
 0x47c   :  { %1184 = vmatprep.subr.bf16.mxu0 %v2162_v23  ;;  %1225 = vmatprep.subr.bf16.mxu1 %v2164_v24  ;;  %v2745_v23 = vld [vmem:[#allocation26_spill] sm:$0xff] }
 0x47f   :  { %1185 = vmatpush1.bf16.msra.mxu0 %v2168_v25  ;;  %1226 = vmatpush1.bf16.msra.mxu1 %v2172_v26  ;;  %v2746_v25 = vld [vmem:[#allocation27_spill] sm:$0xff] }
 0x480   :  { %1186 = vmatprep.subr.bf16.mxu0 %v2176_v27  ;;  %1227 = vmatprep.subr.bf16.mxu1 %v2178_v28 }
 0x483   :  { %1187 = vmatpush1.bf16.msra.mxu0 %v2182_v30  ;;  %1228 = vmatpush1.bf16.msra.mxu1 %v2184_v31 }
 0x484   :  { %1188 = vmatprep.subr.bf16.mxu0 %v2188_v32  ;;  %1229 = vmatprep.subr.bf16.mxu1 %v2192_v33 }
 0x487   :  { %1189 = vmatpush1.bf16.msra.mxu0 %v2196_v34  ;;  %1230 = vmatpush1.bf16.msra.mxu1 %v2198_v35 }
 0x488   :  { %1190 = vmatprep.subr.bf16.mxu0 %v2202_v36  ;;  %1231 = vmatprep.subr.bf16.mxu1 %v2206_v37 }
 0x48b   :  { %1191 = vmatpush1.bf16.msra.mxu0 %v2212_v39  ;;  %1232 = vmatpush1.bf16.msra.mxu1 %v2214_v40 }
 0x48c   :  { %1192 = vmatprep.subr.bf16.mxu0 %v2218_v41  ;;  %1233 = vmatprep.subr.bf16.mxu1 %v2220_v42 }
 0x48f   :  { %1193 = vmatpush1.bf16.msra.mxu0 %v2226_v43  ;;  %1234 = vmatpush1.bf16.msra.mxu1 %v2228_v44 }
 0x490   :  { %1296 = vmatprep.subr.bf16.mxu0 %v2518_v12  ;;  %1337 = vmatprep.subr.bf16.mxu1 %v2521_v13 }
 0x545   :  { %v1094_v14 = vpop.f32.mrb[32].mxu0  ;;  %v1135_v15 = vpop.f32.mrb[32].mxu1 }
 0x546   :  { %v1142_v17 = vadd.f32 %v1094_v14, %v2743_v16  ;;  %v1144_v20 = vadd.f32 %v1135_v15, %v2744_v18  ;;  %v1096_v21 = vpop.f32.mrb[33].mxu0  ;;  %v1137_v22 = vpop.f32.mrb[33].mxu1  ;;  %v2591_v14 = vld [vmem:[#allocation10 + $0xac] ss:$16 sps:$4 sm:$0xff]   ;;  %v2594_v15 = vld [vmem:[#allocation10 + $0xa0] ss:$16 sps:$4 sm:$0xff]  }
 0x547   :  { %v1143_v24 = vadd.f32 %v1096_v21, %v2745_v23  ;;  %v1145_v26 = vadd.f32 %v1137_v22, %v2746_v25  ;;  %v1098_v27 = vpop.f32.mrb[34].mxu0  ;;  %v1139_v28 = vpop.f32.mrb[34].mxu1  ;;  %v2597_v16 = vld [vmem:[#allocation10 + $0xa8] ss:$16 sps:$4 sm:$0xff]   ;;  %v2748_v22 = vld [vmem:[#allocation29_spill] sm:$0xff]  ;;  %v2750_v25 = vld [vmem:[#allocation31_spill] sm:$0xff] }
 0x548   :  { %v1643_v30 = vmul.f32 -1.442695, %v1142_v17  ;;  %v1099_v31 = vpop.f32.mrb[35].mxu0  ;;  %v1140_v32 = vpop.f32.mrb[35].mxu1  ;;  %v1645_v34 = vmul.f32 -1.442695, %v1144_v20 }
 0x549   :  { %v1644_v33 = vmul.f32 -1.442695, %v1143_v24  ;;  %v2600_v17 = vld [vmem:[#allocation10 + $0xc4] ss:$16 sps:$4 sm:$0xff]  }
 0x54a   :  { %1794 = vpow2.f32 %v1643_v30  ;;  %v2747_v21 = vld [vmem:[#allocation28_spill] sm:$0xff]  ;;  %v2749_v24 = vld [vmem:[#allocation30_spill] sm:$0xff] }
 0x54b   :  { %1796 = vpow2.f32 %v1644_v33 }
 0x54c   :  { %1798 = vtanh.f32 %v1145_v26 }
 0x54d   :  { %1800 = vpow2.f32 %v1645_v34 }
 0x554   :  { %v1795_v35 = vpop.eup %1794 }
 0x555   :  { %v1155_v36 = vadd.f32 1.0, %v1795_v35  ;;  %v1797_v45 = vpop.eup %1796 }
 0x556   :  { %v1156_v53 = vadd.f32 1.0, %v1797_v45  ;;  %v1799_v55 = vpop.eup %1798 }
 0x557   :  { %1802 = vrcp.f32 %v1155_v36  ;;  %v1801_v57 = vpop.eup %1800 }
 0x558   :  { %1804 = vrcp.f32 %v1156_v53  ;;  %v1157_v59 = vadd.f32 1.0, %v1801_v57 }
 0x55a   :  { %1806 = vrcp.f32 %v1157_v59 }
 0x561   :  { %v1803_v56 = vpop.eup %1802 }
 0x562   :  { %v1166_v0 = vmul.f32 %v1803_v56, %v1799_v55  ;;  %v1805_v58 = vpop.eup %1804 }
 0x563   :  { %v1165_v60 = vmul.f32 %v1805_v58, %v2483_v46  ;;  %v2576_v46 = vld [vmem:[#allocation10 + $0x84] ss:$16 sps:$4 sm:$0xff]  }
 0x564   :  { %v1807_v48 = vpop.eup %1806 }
 0x565   :  { %v2529_v3 = vadd.f32 %v1166_v0, %v1165_v60 }
 0x567   :  { %1808 = vtanh.f32 %v2529_v3 }
 0x571   :  { %v1809_v63 = vpop.eup %1808 }
 0x572   :  { %v1169_v2 = vmul.f32 %v1809_v63, %v1807_v48  ;;  %v1885_v48 = vld [vmem:[#allocation10 + $0xc8] ss:$16 sps:$4 sm:$0xff]   ;;  %v1886_v63 = vld [vmem:[#allocation10 + $0xe4] ss:$16 sps:$4 sm:$0xff]  }
 0x574   :  { %v1170_v4 = vpack.c.bf16 %v1169_v2, %v1169_v2  ;;  %v1887_v2 = vld [vmem:[#allocation10 + $0xec] ss:$16 sps:$4 sm:$0xff]  }
 0x576   :  { %1172 = vst [vmem:[#allocation11 + $0x10] sm:$0xf] %v1170_v4  ;;  %1211 = vmatmul.mubr.bf16.vlgmr.msra.gmra.mrb[36].mxu0 %v1170_v4  ;;  %1252 = vmatmul.mubr.bf16.vlgmr.msra.gmra.mrb[36].mxu1 %v1170_v4  ;;  %v1888_v4 = vld [vmem:[#allocation10 + $0xe0] ss:$16 sps:$4 sm:$0xff]  }
 0x577   :  { %1297 = vmatpush1.bf16.msra.mxu0 %v2532_v29  ;;  %1338 = vmatpush1.bf16.msra.mxu1 %v2535_v10 }
 0x578   :  { %1298 = vmatprep.subr.bf16.mxu0 %v2538_v11  ;;  %1339 = vmatprep.subr.bf16.mxu1 %v2541_v8 }
 0x579   :  { %1328 = vmatprep.mubr.bf16.mxu0 %v2737_v6  ;;  %1369 = vmatprep.mubr.bf16.mxu1 %v2737_v6 }
 0x57b   :  { %1299 = vmatpush1.bf16.msra.mxu0 %v2546_v19  ;;  %1340 = vmatpush1.bf16.msra.mxu1 %v2549_v38 }
 0x57c   :  { %1300 = vmatprep.subr.bf16.mxu0 %v2552_v5  ;;  %1341 = vmatprep.subr.bf16.mxu1 %v2555_v1 }
 0x57f   :  { %1301 = vmatpush1.bf16.msra.mxu0 %v2558_v50  ;;  %1342 = vmatpush1.bf16.msra.mxu1 %v2561_v61 }
 0x580   :  { %1302 = vmatprep.subr.bf16.mxu0 %v2564_v9  ;;  %1343 = vmatprep.subr.bf16.mxu1 %v2567_v52 }
 0x583   :  { %1303 = vmatpush1.bf16.msra.mxu0 %v2570_v47  ;;  %1344 = vmatpush1.bf16.msra.mxu1 %v2573_v51 }
 0x584   :  { %1304 = vmatprep.subr.bf16.mxu0 %v2576_v46  ;;  %1345 = vmatprep.subr.bf16.mxu1 %v2579_v62 }
 0x587   :  { %1305 = vmatpush1.bf16.msra.mxu0 %v2582_v49  ;;  %1346 = vmatpush1.bf16.msra.mxu1 %v2585_v7 }
 0x588   :  { %1306 = vmatprep.subr.bf16.mxu0 %v2588_v54  ;;  %1347 = vmatprep.subr.bf16.mxu1 %v2591_v14 }
 0x58b   :  { %1307 = vmatpush1.bf16.msra.mxu0 %v2594_v15  ;;  %1348 = vmatpush1.bf16.msra.mxu1 %v2597_v16 }
 0x58c   :  { %1308 = vmatprep.subr.bf16.mxu0 %v2600_v17  ;;  %1349 = vmatprep.subr.bf16.mxu1 %v2206_v37 }
 0x58f   :  { %1309 = vmatpush1.bf16.msra.mxu0 %v2212_v39  ;;  %1350 = vmatpush1.bf16.msra.mxu1 %v2214_v40 }
 0x590   :  { %1310 = vmatprep.subr.bf16.mxu0 %v2218_v41  ;;  %1351 = vmatprep.subr.bf16.mxu1 %v2220_v42 }
 0x593   :  { %1311 = vmatpush1.bf16.msra.mxu0 %v2226_v43  ;;  %1352 = vmatpush1.bf16.msra.mxu1 %v2228_v44 }
 0x594   :  { %1414 = vmatprep.subr.bf16.mxu0 %v2518_v12  ;;  %1455 = vmatprep.subr.bf16.mxu1 %v2521_v13 }
 0x649   :  { %v1212_v18 = vpop.f32.mrb[36].mxu0  ;;  %v1253_v20 = vpop.f32.mrb[36].mxu1 }
 0x64a   :  { %v1260_v37 = vadd.f32 %v1212_v18, %v2747_v21  ;;  %v1262_v39 = vadd.f32 %v1253_v20, %v2748_v22  ;;  %v1214_v23 = vpop.f32.mrb[37].mxu0  ;;  %v1255_v40 = vpop.f32.mrb[37].mxu1 }
 0x64b   :  { %v1261_v41 = vadd.f32 %v1214_v23, %v2749_v24  ;;  %v1263_v42 = vadd.f32 %v1255_v40, %v2750_v25  ;;  %v1216_v26 = vpop.f32.mrb[38].mxu0  ;;  %v1257_v43 = vpop.f32.mrb[38].mxu1 }
 0x64c   :  { %v1646_v27 = vmul.f32 -1.442695, %v1260_v37  ;;  %v1217_v44 = vpop.f32.mrb[39].mxu0  ;;  %v1258_v28 = vpop.f32.mrb[39].mxu1  ;;  %v1648_v13 = vmul.f32 -1.442695, %v1262_v39 }
 0x64d   :  { %v1647_v12 = vmul.f32 -1.442695, %v1261_v41  ;;  %v2755_v44 = vld [vmem:[#allocation36_spill] sm:$0xff] }
 0x64e   :  { %1810 = vpow2.f32 %v1646_v27 }
 0x64f   :  { %1812 = vpow2.f32 %v1647_v12  ;;  %v2756_v12 = vld [vmem:[#allocation37_spill] sm:$0xff] }
 0x650   :  { %1814 = vtanh.f32 %v1263_v42 }
 0x651   :  { %1816 = vpow2.f32 %v1648_v13 }
 0x658   :  { %v1811_v30 = vpop.eup %1810 }
 0x659   :  { %v1273_v31 = vadd.f32 1.0, %v1811_v30  ;;  %v1813_v32 = vpop.eup %1812 }
 0x65a   :  { %v1274_v33 = vadd.f32 1.0, %v1813_v32  ;;  %v1815_v34 = vpop.eup %1814  ;;  %v2757_v32 = vld [vmem:[#allocation38_spill] sm:$0xff] }
 0x65b   :  { %1818 = vrcp.f32 %v1273_v31  ;;  %v1817_v35 = vpop.eup %1816 }
 0x65c   :  { %1820 = vrcp.f32 %v1274_v33  ;;  %v1275_v55 = vadd.f32 1.0, %v1817_v35 }
 0x65e   :  { %1822 = vrcp.f32 %v1275_v55 }
 0x665   :  { %v1819_v36 = vpop.eup %1818 }
 0x666   :  { %v1284_v45 = vmul.f32 %v1819_v36, %v1815_v34  ;;  %v1821_v53 = vpop.eup %1820  ;;  %v2758_v34 = vld [vmem:[#allocation39_spill] sm:$0xff] }
 0x667   :  { %v1283_v57 = vmul.f32 %v1821_v53, %v2529_v3  ;;  %v1884_v3 = vld [vmem:[#allocation10 + $0xc0] ss:$16 sps:$4 sm:$0xff]  }
 0x668   :  { %v1823_v0 = vpop.eup %1822 }
 0x669   :  { %v2617_v56 = vadd.f32 %v1284_v45, %v1283_v57 }
 0x66b   :  { %1824 = vtanh.f32 %v2617_v56 }
 0x675   :  { %v1825_v58 = vpop.eup %1824 }
 0x676   :  { %v1287_v59 = vmul.f32 %v1825_v58, %v1823_v0 }
 0x678   :  { %v1288_v60 = vpack.c.bf16 %v1287_v59, %v1287_v59 }
 0x67a   :  { %1290 = vst [vmem:[#allocation11 + $0x14] sm:$0xf] %v1288_v60  ;;  %1329 = vmatmul.mubr.bf16.vlgmr.msra.gmra.mrb[40].mxu0 %v1288_v60  ;;  %1370 = vmatmul.mubr.bf16.vlgmr.msra.gmra.mrb[40].mxu1 %v1288_v60 }
 0x67b   :  { %1415 = vmatpush1.bf16.msra.mxu0 %v2532_v29  ;;  %1456 = vmatpush1.bf16.msra.mxu1 %v2535_v10  ;;  %v1889_v29 = vld [vmem:[#allocation10 + $0xe8] ss:$16 sps:$4 sm:$0xff]  }
 0x67c   :  { %1416 = vmatprep.subr.bf16.mxu0 %v2538_v11  ;;  %1457 = vmatprep.subr.bf16.mxu1 %v2541_v8  ;;  %v2751_v8 = vld [vmem:[#allocation32_spill] sm:$0xff] }
 0x67d   :  { %1446 = vmatprep.mubr.bf16.mxu0 %v2737_v6  ;;  %1487 = vmatprep.mubr.bf16.mxu1 %v2737_v6  ;;  %v1883_v6 = vld [vmem:[#allocation10 + $0xcc] ss:$16 sps:$4 sm:$0xff]  }
 0x67f   :  { %1417 = vmatpush1.bf16.msra.mxu0 %v2546_v19  ;;  %1458 = vmatpush1.bf16.msra.mxu1 %v2549_v38  ;;  %v2752_v38 = vld [vmem:[#allocation33_spill] sm:$0xff] }
 0x680   :  { %1418 = vmatprep.subr.bf16.mxu0 %v2552_v5  ;;  %1459 = vmatprep.subr.bf16.mxu1 %v2555_v1 }
 0x683   :  { %1419 = vmatpush1.bf16.msra.mxu0 %v2558_v50  ;;  %1460 = vmatpush1.bf16.msra.mxu1 %v2561_v61  ;;  %v2753_v61 = vld [vmem:[#allocation34_spill] sm:$0xff] }
 0x684   :  { %1420 = vmatprep.subr.bf16.mxu0 %v2564_v9  ;;  %1461 = vmatprep.subr.bf16.mxu1 %v2567_v52  ;;  %v2754_v52 = vld [vmem:[#allocation35_spill] sm:$0xff] }
 0x687   :  { %1421 = vmatpush1.bf16.msra.mxu0 %v2570_v47  ;;  %1462 = vmatpush1.bf16.msra.mxu1 %v2573_v51 }
 0x688   :  { %1422 = vmatprep.subr.bf16.mxu0 %v2576_v46  ;;  %1463 = vmatprep.subr.bf16.mxu1 %v2579_v62 }
 0x68b   :  { %1423 = vmatpush1.bf16.msra.mxu0 %v2582_v49  ;;  %1464 = vmatpush1.bf16.msra.mxu1 %v2585_v7 }
 0x68c   :  { %1424 = vmatprep.subr.bf16.mxu0 %v2588_v54  ;;  %1465 = vmatprep.subr.bf16.mxu1 %v2591_v14 }
 0x68f   :  { %1425 = vmatpush1.bf16.msra.mxu0 %v2594_v15  ;;  %1466 = vmatpush1.bf16.msra.mxu1 %v2597_v16 }
 0x690   :  { %1426 = vmatprep.subr.bf16.mxu0 %v2600_v17  ;;  %1467 = vmatprep.subr.bf16.mxu1 %v1883_v6 }
 0x693   :  { %1427 = vmatpush1.bf16.msra.mxu0 %v1884_v3  ;;  %1468 = vmatpush1.bf16.msra.mxu1 %v1885_v48 }
 0x694   :  { %1428 = vmatprep.subr.bf16.mxu0 %v1886_v63  ;;  %1469 = vmatprep.subr.bf16.mxu1 %v1887_v2 }
 0x697   :  { %1429 = vmatpush1.bf16.msra.mxu0 %v1888_v4  ;;  %1470 = vmatpush1.bf16.msra.mxu1 %v1889_v29 }
 0x74d   :  { %v1330_v10 = vpop.f32.mrb[40].mxu0  ;;  %v1371_v11 = vpop.f32.mrb[40].mxu1 }
 0x74e   :  { %v1378_v19 = vadd.f32 %v1330_v10, %v2751_v8  ;;  %v1380_v5 = vadd.f32 %v1371_v11, %v2752_v38  ;;  %v1332_v1 = vpop.f32.mrb[41].mxu0  ;;  %v1373_v50 = vpop.f32.mrb[41].mxu1 }
 0x74f   :  { %v1379_v9 = vadd.f32 %v1332_v1, %v2753_v61  ;;  %v1381_v47 = vadd.f32 %v1373_v50, %v2754_v52  ;;  %v1334_v51 = vpop.f32.mrb[42].mxu0  ;;  %v1375_v46 = vpop.f32.mrb[42].mxu1 }
 0x750   :  { %v1649_v62 = vmul.f32 -1.442695, %v1378_v19  ;;  %v1335_v49 = vpop.f32.mrb[43].mxu0  ;;  %v1376_v7 = vpop.f32.mrb[43].mxu1  ;;  %v1651_v14 = vmul.f32 -1.442695, %v1380_v5 }
 0x751   :  { %v1650_v54 = vmul.f32 -1.442695, %v1379_v9 }
 0x752   :  { %1826 = vpow2.f32 %v1649_v62 }
 0x753   :  { %1828 = vpow2.f32 %v1650_v54 }
 0x754   :  { %1830 = vtanh.f32 %v1381_v47 }
 0x755   :  { %1832 = vpow2.f32 %v1651_v14 }
 0x75c   :  { %v1827_v15 = vpop.eup %1826 }
 0x75d   :  { %v1391_v16 = vadd.f32 1.0, %v1827_v15  ;;  %v1829_v17 = vpop.eup %1828 }
 0x75e   :  { %v1392_v18 = vadd.f32 1.0, %v1829_v17  ;;  %v1831_v20 = vpop.eup %1830 }
 0x75f   :  { %1834 = vrcp.f32 %v1391_v16  ;;  %v1833_v21 = vpop.eup %1832 }
 0x760   :  { %1836 = vrcp.f32 %v1392_v18  ;;  %v1393_v23 = vadd.f32 1.0, %v1833_v21 }
 0x762   :  { %1838 = vrcp.f32 %v1393_v23 }
 0x769   :  { %v1835_v37 = vpop.eup %1834 }
 0x76a   :  { %v1402_v22 = vmul.f32 %v1835_v37, %v1831_v20  ;;  %v1837_v39 = vpop.eup %1836 }
 0x76b   :  { %v1401_v40 = vmul.f32 %v1837_v39, %v2617_v56 }
 0x76c   :  { %v1839_v41 = vpop.eup %1838 }
 0x76d   :  { %v1403_v24 = vadd.f32 %v1402_v22, %v1401_v40 }
 0x76f   :  { %1840 = vtanh.f32 %v1403_v24 }
 0x779   :  { %v1841_v25 = vpop.eup %1840 }
 0x77a   :  { %v1405_v42 = vmul.f32 %v1841_v25, %v1839_v41 }
 0x77c   :  { %v1406_v26 = vpack.c.bf16 %v1405_v42, %v1405_v42 }
 0x77e   :  { %1408 = vst [vmem:[#allocation11 + $0x18] sm:$0xf] %v1406_v26  ;;  %1447 = vmatmul.mubr.bf16.vlgmr.msra.gmra.mrb[44].mxu0 %v1406_v26  ;;  %1488 = vmatmul.mubr.bf16.vlgmr.msra.gmra.mrb[44].mxu1 %v1406_v26 }
 0x851   :  { %v1448_v43 = vpop.f32.mrb[44].mxu0  ;;  %v1489_v27 = vpop.f32.mrb[44].mxu1 }
 0x852   :  { %v1496_v28 = vadd.f32 %v1448_v43, %v2755_v44  ;;  %v1498_v13 = vadd.f32 %v1489_v27, %v2756_v12  ;;  %v1450_v30 = vpop.f32.mrb[45].mxu0  ;;  %v1491_v31 = vpop.f32.mrb[45].mxu1 }
 0x853   :  { %v1497_v33 = vadd.f32 %v1450_v30, %v2757_v32  ;;  %v1499_v35 = vadd.f32 %v1491_v31, %v2758_v34  ;;  %v1452_v36 = vpop.f32.mrb[46].mxu0  ;;  %v1493_v45 = vpop.f32.mrb[46].mxu1 }
 0x854   :  { %v1652_v53 = vmul.f32 -1.442695, %v1496_v28  ;;  %v1453_v55 = vpop.f32.mrb[47].mxu0  ;;  %v1494_v57 = vpop.f32.mrb[47].mxu1  ;;  %v1654_v0 = vmul.f32 -1.442695, %v1498_v13 }
 0x855   :  { %v1653_v56 = vmul.f32 -1.442695, %v1497_v33 }
 0x856   :  { %1842 = vpow2.f32 %v1652_v53 }
 0x857   :  { %1844 = vpow2.f32 %v1653_v56 }
 0x858   :  { %1846 = vtanh.f32 %v1499_v35 }
 0x859   :  { %1848 = vpow2.f32 %v1654_v0 }
 0x860   :  { %v1843_v58 = vpop.eup %1842 }
 0x861   :  { %v1509_v59 = vadd.f32 1.0, %v1843_v58  ;;  %v1845_v60 = vpop.eup %1844 }
 0x862   :  { %v1510_v6 = vadd.f32 1.0, %v1845_v60  ;;  %v1847_v3 = vpop.eup %1846 }
 0x863   :  { %1850 = vrcp.f32 %v1509_v59  ;;  %v1849_v48 = vpop.eup %1848 }
 0x864   :  { %1852 = vrcp.f32 %v1510_v6  ;;  %v1511_v29 = vadd.f32 1.0, %v1849_v48 }
 0x866   :  { %1854 = vrcp.f32 %v1511_v29 }
 0x86d   :  { %v1851_v63 = vpop.eup %1850 }
 0x86e   :  { %v1520_v2 = vmul.f32 %v1851_v63, %v1847_v3  ;;  %v1853_v4 = vpop.eup %1852 }
 0x86f   :  { %v1519_v10 = vmul.f32 %v1853_v4, %v1403_v24 }
 0x870   :  { %v1855_v8 = vpop.eup %1854 }
 0x871   :  { %v1521_v11 = vadd.f32 %v1520_v2, %v1519_v10 }
 0x873   :  { %1856 = vtanh.f32 %v1521_v11  ;;  %1533 = vst [vmem:[#allocation14] sm:$0xff] %v1521_v11 }
 0x87d   :  { %v1857_v19 = vpop.eup %1856 }
 0x87e   :  { %v1523_v38 = vmul.f32 %v1857_v19, %v1855_v8 }
 0x880   :  { %v1524_v5 = vpack.c.bf16 %v1523_v38, %v1523_v38 }
 0x882   :  { %1526 = vst [vmem:[#allocation11 + $0x1c] sm:$0xf] %v1524_v5  ;;  %1527 = vst [vmem:[#allocation3] sm:$0xf] %v1524_v5 }
 0x883   :  { %1532 = vst [vmem:[#allocation12] sm:$0xf] %v1524_v5 }
 0x884   :  { %1967 = shalt.err (!%p1964_p0)
}
 0x885   :  { %s1968_s20 = scalar_lea.hbm %s2712_s5, 64 }
 0x886   :  { %p1969_p1 = scmp.ne.s32.totalorder %s2712_s5, %s1968_s20  ;;  %p1972_p2 = scmp.lt.u32.totalorder %s1968_s20, %s2712_s5 }
 0x888   :  { %p1974_p3 = pnand %p1972_p2, %p1969_p1 }
 0x88a   :  { %1977 = shalt.err (!%p1974_p3)
}
 0x88b   :  { %1555 = dma.vmem_to_hbm [thread:$0]  %s1553_s8, 64, %s2712_s5, [#allocation13]  }
 0x88c   :  { %s1978_s28 = scalar_lea.vmem %s2654_s14, 512  ;;  %p1983_p5 = scmp.lt.s32.totalorder %s2654_s14, %s2654_s14 }
 0x88d   :  { %p1979_p4 = scmp.ne.s32.totalorder %s2654_s14, %s1978_s28  ;;  %p1984_p6 = scmp.lt.s32.totalorder %s1978_s28, %s1978_s28 }
 0x88f   :  { %p1985_p7 = por %p1984_p6, %p1983_p5 }
 0x891   :  { %p1986_p8 = pnand %p1985_p7, %p1979_p4 }
 0x893   :  { %1989 = shalt.err (!%p1986_p8)
}
 0x894   :  { %s1990_s9 = scalar_lea.hbm %s2711_s4, 512 }
 0x895   :  { %p1991_p9 = scmp.ne.s32.totalorder %s2711_s4, %s1990_s9  ;;  %p1994_p10 = scmp.lt.u32.totalorder %s1990_s9, %s2711_s4 }
 0x897   :  { %p1996_p11 = pnand %p1994_p10, %p1991_p9 }
 0x899   :  { %1999 = shalt.err (!%p1996_p11)
}
 0x89a   :  { %1545 = dma.vmem_to_hbm [thread:$0]  %s2654_s14, 512, %s2711_s4, [#allocation7], %s2034_s1, %s2034_s1, %s2035_s21  }
 0x89b   :  { %s2000_s7 = scalar_lea.vmem %s2656_s16, 128  ;;  %p2005_p13 = scmp.lt.s32.totalorder %s2656_s16, %s2656_s16 }
 0x89c   :  { %p2001_p12 = scmp.ne.s32.totalorder %s2656_s16, %s2000_s7  ;;  %p2006_p0 = scmp.lt.s32.totalorder %s2000_s7, %s2000_s7 }
 0x89e   :  { %p2007_p1 = por %p2006_p0, %p2005_p13 }
 0x8a0   :  { %p2008_p2 = pnand %p2007_p1, %p2001_p12 }
 0x8a2   :  { %2011 = shalt.err (!%p2008_p2)
}
 0x8a3   :  { %s2012_s13 = scalar_lea.hbm %s2713_s6, 128 }
 0x8a4   :  { %p2013_p3 = scmp.ne.s32.totalorder %s2713_s6, %s2012_s13  ;;  %p2016_p4 = scmp.lt.u32.totalorder %s2012_s13, %s2713_s6 }
 0x8a6   :  { %p2018_p5 = pnand %p2016_p4, %p2013_p3 }
 0x8a8   :  { %2021 = shalt.err (!%p2018_p5)
}
 0x8a9   :  { %1565 = dma.vmem_to_hbm [thread:$0]  %s2656_s16, 128, %s2713_s6, [#allocation13]  }
 0x8aa   :  { %2026 = dma.done.wait [#allocation7], 512  }
 0x8ab   :  { %2027 = vsyncadd [#allocation7], 4294966784 }
 0x8ac   :  { %2028 = dma.done.wait [#allocation13], 192  }
 0x8ad   :  { %2029 = vsyncadd [#allocation13], 4294967104 }
 0x8ae   :  { %1575 = vsyncpa [#allocation6], 1 }
 0x8af   :  { %1576 = vsyncpa [#allocation9], 1 }
 0x8b0   :  { %1577 = vsyncpa [#allocation7], 1 }
 0x8b1   :  { %1578 = vsyncpa [#allocation13], 1 }

</bundles_post_ra>
